<compile_context>
chip_gen: v6e
topology: v6e:2x2x1
jax: 0.10.0
libtpu: 0.0.40
codegen_flags: <defaults>
</compile_context>

<pallas_src>
import numpy as np
import jax
import jax.numpy as jnp
from jax import lax
from jax.experimental import pallas as pl
from jax.experimental.pallas import tpu as pltpu


def _layer_norm(x, gamma, beta, eps=1e-5):
    mu = jnp.mean(x, axis=-1, keepdims=True)
    xc = x - mu
    var = jnp.mean(xc * xc, axis=-1, keepdims=True)
    return xc / jnp.sqrt(var + eps) * gamma + beta


def _make_kernel(spatial_shapes, level_start, num_heads, num_levels, num_points):
    """Per-batch kernel. spatial_shapes/level_start are static Python ints."""
    H, L, P = num_heads, num_levels, num_points
    C = H * L * P

    def kernel(seg_ref, query_ref, qpos_ref, value_ref, refx_ref, refy_ref,
               wv_ref, bv_ref, wqp_ref, bqp_ref, wlc_ref, hlc_ref,
               wout_ref, bout_ref, g1_ref, b1_ref, w1_ref, w2_ref,
               g2_ref, b2_ref, out_ref, acc_ref):
        f32 = jnp.float32
        query = query_ref[0]                                # (Q, D) residual
        q = query + qpos_ref[0]                             # query + query_pos
        Q, D = query.shape
        Dh = D // H

        # ---- projections (MXU) ----
        val = jnp.dot(value_ref[0], wv_ref[...],
                      preferred_element_type=f32) + bv_ref[...]           # (V, D)
        proj = jnp.dot(q, wqp_ref[...],
                       preferred_element_type=f32) + bqp_ref[...]          # (Q, 3C)
        off_x = proj[:, 0:C]              # -0.5 grid_sample shift folded in bias
        off_y = proj[:, C:2 * C]
        logits = proj[:, 2 * C:3 * C]

        # ---- per-head softmax over (levels*points), all heads at once ----
        # segment sums via the precomputed same-head (C, C) fold matrix (MXU)
        z = logits - jnp.max(logits, axis=-1, keepdims=True)  # row max >= segment max
        e = jnp.exp(z)
        denom = jnp.dot(e, seg_ref[...], preferred_element_type=f32)
        attw = e / denom                                                    # (Q, C)

        # ---- sampling coordinates, vectorized across all C columns ----
        # grid_sample semantics: align_corners=False, padding=zeros
        wl = wlc_ref[...]                                    # (1, C) level widths
        hl = hlc_ref[...]                                    # (1, C) level heights
        ix = refx_ref[0] + off_x                             # refs pre-scaled by W_l
        iy = refy_ref[0] + off_y                             # refs pre-scaled by H_l
        x0 = jnp.floor(ix)
        y0 = jnp.floor(iy)
        fx = ix - x0
        fy = iy - y0
        x1 = x0 + 1.0
        y1 = y0 + 1.0
        in_x0 = (x0 >= 0.0) & (x0 < wl)
        in_x1 = (x1 >= 0.0) & (x1 < wl)
        in_y0 = (y0 >= 0.0) & (y0 < hl)
        in_y1 = (y1 >= 0.0) & (y1 < hl)
        c00 = attw * ((1.0 - fx) * (1.0 - fy)) * (in_x0 & in_y0).astype(f32)
        c10 = attw * (fx * (1.0 - fy)) * (in_x1 & in_y0).astype(f32)
        c01 = attw * ((1.0 - fx) * fy) * (in_x0 & in_y1).astype(f32)
        c11 = attw * (fx * fy) * (in_x1 & in_y1).astype(f32)
        i00 = y0 * wl + x0                                   # level-local flat indices
        i10 = i00 + 1.0
        i01 = i00 + wl
        i11 = i01 + 1.0
        corners = ((c00, i00), (c10, i10), (c01, i01), (c11, i11))

        # ---- per-level, per-head one-hot build + value contraction ----
        head_acc = [jnp.zeros((Q, Dh), f32) for _ in range(H)]
        for li in range(L):
            Hl, Wl = spatial_shapes[li]
            Vl = Hl * Wl
            start = level_start[li]
            viota = lax.broadcasted_iota(jnp.int32, (1, Vl), 1).astype(f32)
            val_l = val[start:start + Vl, :]                 # (Vl, D)
            for h in range(H):
                A = jnp.zeros((Q, Vl), f32)
                for p in range(P):
                    c = (li * H + h) * P + p                 # (l, h, p) column order
                    for coef, idx in corners:
                        A = A + jnp.where(idx[:, c:c + 1] == viota,
                                          coef[:, c:c + 1], 0.0)
                head_acc[h] = head_acc[h] + jnp.dot(
                    A, val_l[:, h * Dh:(h + 1) * Dh], preferred_element_type=f32)

        # ---- assemble heads in VMEM scratch, single dense output projection ----
        for h in range(H):
            acc_ref[:, h * Dh:(h + 1) * Dh] = head_acc[h]
        attn = acc_ref[...]                                   # (Q, D)
        x = query + bout_ref[...] + jnp.dot(attn, wout_ref[...],
                                            preferred_element_type=f32)

        # ---- norm1, FFN (no bias), residual, norm2 (dropout = identity) ----
        x = _layer_norm(x, g1_ref[...], b1_ref[...])
        h1 = jnp.maximum(jnp.dot(x, w1_ref[...], preferred_element_type=f32), 0.0)
        ff = jnp.dot(h1, w2_ref[...], preferred_element_type=f32)
        x = _layer_norm(ff + x, g2_ref[...], b2_ref[...])
        out_ref[0] = x.astype(out_ref.dtype)

    return kernel


def custon_da_transformer_layer(params, lidar_feat, feat_flatten, ref_2d,
                                spatial_shapes, level_start_index, q_pose,
                                num_heads=4, num_levels=2, num_points=2):
    """Pallas implementation of CustonDATransformerLayer.forward (eval mode).

    PyTorch-side layouts (batch_first=False):
        lidar_feat, q_pose : (num_query, bs, D)
        feat_flatten       : (num_value, bs, D)
        ref_2d             : (bs, num_query, num_levels, 2)
    Returns (num_query, bs, D).
    """
    Qn, bs, D = lidar_feat.shape
    Vn = feat_flatten.shape[0]
    shapes = [(int(h), int(w)) for h, w in np.asarray(spatial_shapes)]
    starts = [int(s) for s in np.asarray(level_start_index)]
    H, L, P = num_heads, num_levels, num_points
    C = H * L * P

    # kernel-layout glue
    query = jnp.transpose(lidar_feat, (1, 0, 2))     # (bs, Q, D)
    qpos = jnp.transpose(q_pose, (1, 0, 2))
    value = jnp.transpose(feat_flatten, (1, 0, 2))   # (bs, V, D)

    # per-column level width/height constants, (level, head, point) column order
    wl_np = np.repeat(np.array([float(w) for (_, w) in shapes], np.float32),
                      H * P)[None, :]                          # (1, C)
    hl_np = np.repeat(np.array([float(h) for (h, _) in shapes], np.float32),
                      H * P)[None, :]
    wl_cols = jnp.asarray(wl_np)
    hl_cols = jnp.asarray(hl_np)

    # reference points pre-scaled to pixel coordinates, one column per (l, h, p)
    refx = jnp.repeat(ref_2d[..., 0], H * P, axis=-1) * wl_cols    # (bs, Q, C)
    refy = jnp.repeat(ref_2d[..., 1], H * P, axis=-1) * hl_cols

    # per-head softmax segment-fold matrix: seg[i, j] = 1 iff head(i) == head(j)
    col_head = (np.arange(C) // P) % H
    seg_mat = jnp.asarray((col_head[:, None] == col_head[None, :]).astype(np.float32))

    wv = params['value_proj_w'].T
    bv = params['value_proj_b'][None, :]

    # reorder query-side projection columns from torch's (head, level, point)
    # to (level, head, point) and fuse [off_x | off_y | attn_logits] into one matmul
    woff = params['sampling_offsets_w'].reshape(H, L, P, 2, D)
    boff = params['sampling_offsets_b'].reshape(H, L, P, 2)
    wox = jnp.transpose(woff[:, :, :, 0, :], (1, 0, 2, 3)).reshape(C, D).T
    woy = jnp.transpose(woff[:, :, :, 1, :], (1, 0, 2, 3)).reshape(C, D).T
    box = jnp.transpose(boff[:, :, :, 0], (1, 0, 2)).reshape(C)
    boy = jnp.transpose(boff[:, :, :, 1], (1, 0, 2)).reshape(C)
    waw = jnp.transpose(params['attention_weights_w'].reshape(H, L, P, D),
                        (1, 0, 2, 3)).reshape(C, D).T
    baw = jnp.transpose(params['attention_weights_b'].reshape(H, L, P),
                        (1, 0, 2)).reshape(C)
    wqp = jnp.concatenate([wox, woy, waw], axis=1)             # (D, 3C)
    # grid_sample align_corners=False "-0.5" shift folded into the offset biases
    bqp = jnp.concatenate([box - 0.5, boy - 0.5, baw], axis=0)[None, :]   # (1, 3C)

    wout = params['output_proj_w'].T
    bout = params['output_proj_b'][None, :]
    g1, b1 = params['norm1_w'][None, :], params['norm1_b'][None, :]
    w1, w2 = params['ffn_w1'].T, params['ffn_w2'].T
    g2, b2 = params['norm2_w'][None, :], params['norm2_b'][None, :]

    kernel = _make_kernel(shapes, starts, H, L, P)

    def batched(shape):
        return pl.BlockSpec((1,) + shape, lambda b: (b, 0, 0))

    def full2d(shape):
        return pl.BlockSpec(shape, lambda b: (0, 0))

    out = pl.pallas_call(
        kernel,
        out_shape=jax.ShapeDtypeStruct((bs, Qn, D), jnp.float32),
        grid=(bs,),
        in_specs=[
            full2d((C, C)),
            batched((Qn, D)), batched((Qn, D)), batched((Vn, D)),
            batched((Qn, C)), batched((Qn, C)),
            full2d((D, D)), full2d((1, D)),
            full2d((D, 3 * C)), full2d((1, 3 * C)),
            full2d((1, C)), full2d((1, C)),
            full2d((D, D)), full2d((1, D)),
            full2d((1, D)), full2d((1, D)),
            full2d((D, D)), full2d((D, D)),
            full2d((1, D)), full2d((1, D)),
        ],
        out_specs=batched((Qn, D)),
        scratch_shapes=[pltpu.VMEM((Qn, D), jnp.float32)],
        compiler_params=pltpu.CompilerParams(dimension_semantics=("parallel",)),
    )(seg_mat, query, qpos, value, refx, refy,
      wv, bv, wqp, bqp, wl_cols, hl_cols,
      wout, bout, g1, b1, w1, w2, g2, b2)

    return jnp.transpose(out, (1, 0, 2))             # back to (num_query, bs, D)


def reference_forward(params, lidar_feat, feat_flatten, ref_2d,
                      spatial_shapes, level_start_index, q_pose, H, L, P):
    """Pure-JAX reference mirroring mmcv MSDA (pytorch fallback) + norms/ffn."""
    shapes = [(int(h), int(w)) for h, w in np.asarray(spatial_shapes)]
    starts = [int(s) for s in np.asarray(level_start_index)]
    query = jnp.transpose(lidar_feat, (1, 0, 2))
    qpos = jnp.transpose(q_pose, (1, 0, 2))
    value = jnp.transpose(feat_flatten, (1, 0, 2))
    bs, Q, D = query.shape
    V = value.shape[1]
    Dh = D // H
    identity = query
    q = query + qpos
    val = (value @ params['value_proj_w'].T + params['value_proj_b']).reshape(bs, V, H, Dh)
    off = (q @ params['sampling_offsets_w'].T + params['sampling_offsets_b']
           ).reshape(bs, Q, H, L, P, 2)
    aw = q @ params['attention_weights_w'].T + params['attention_weights_b']
    aw = jax.nn.softmax(aw.reshape(bs, Q, H, L * P), axis=-1).reshape(bs, Q, H, L, P)
    norm = jnp.array([[w, h] for (h, w) in shapes], jnp.float32)
    loc = ref_2d[:, :, None, :, None, :] + off / norm[None, None, None, :, None, :]
    out = jnp.zeros((bs, Q, H, Dh), jnp.float32)
    for li, (Hl, Wl) in enumerate(shapes):
        start = starts[li]
        vlev = jnp.transpose(val[:, start:start + Hl * Wl], (0, 2, 1, 3))   # (bs, H, Vl, Dh)
        lx = loc[:, :, :, li, :, 0]
        ly = loc[:, :, :, li, :, 1]
        ix = lx * Wl - 0.5
        iy = ly * Hl - 0.5
        x0 = jnp.floor(ix)
        y0 = jnp.floor(iy)
        fx = ix - x0
        fy = iy - y0
        sampled = jnp.zeros((bs, Q, H, P, Dh), jnp.float32)
        for dx, dy in ((0, 0), (1, 0), (0, 1), (1, 1)):
            xc = x0 + dx
            yc = y0 + dy
            w = (fx if dx else 1.0 - fx) * (fy if dy else 1.0 - fy)
            valid = ((xc >= 0) & (xc < Wl) & (yc >= 0) & (yc < Hl)).astype(jnp.float32)
            xi = jnp.clip(xc, 0, Wl - 1).astype(jnp.int32)
            yi = jnp.clip(yc, 0, Hl - 1).astype(jnp.int32)
            flat = yi * Wl + xi                                              # (bs, Q, H, P)
            idx = jnp.transpose(flat, (0, 2, 1, 3)).reshape(bs, H, Q * P)
            idx_b = jnp.broadcast_to(idx[..., None], (bs, H, Q * P, Dh))
            g = jnp.take_along_axis(vlev, idx_b, axis=2)
            g = jnp.transpose(g.reshape(bs, H, Q, P, Dh), (0, 2, 1, 3, 4))
            sampled = sampled + (w * valid)[..., None] * g
        out = out + jnp.sum(aw[:, :, :, li, :, None] * sampled, axis=3)
    attn = out.reshape(bs, Q, D) @ params['output_proj_w'].T + params['output_proj_b']
    x = attn + identity
    x = _layer_norm(x, params['norm1_w'], params['norm1_b'])
    ff = jnp.maximum(x @ params['ffn_w1'].T, 0.0) @ params['ffn_w2'].T
    x = _layer_norm(ff + x, params['norm2_w'], params['norm2_b'])
    return jnp.transpose(x, (1, 0, 2))


if __name__ == "__main__":
    D, H, L, P = 128, 4, 2, 2       # embed_dims (lane-dense), heads, levels, points
    bs, Q = 2, 16                   # batch, num_query
    spatial_shapes = np.array([[8, 8], [4, 4]], dtype=np.int32)
    level_start_index = np.array([0, 64], dtype=np.int32)
    V = int(np.sum(spatial_shapes[:, 0] * spatial_shapes[:, 1]))   # 80

    key = jax.random.PRNGKey(0)
    keys = jax.random.split(key, 20)

    def nrm(k, shape, scale=0.1):
        return (scale * jax.random.normal(k, shape)).astype(jnp.float32)

    C = H * L * P
    params = {
        'value_proj_w': nrm(keys[0], (D, D)),
        'value_proj_b': nrm(keys[1], (D,), 0.02),
        'sampling_offsets_w': nrm(keys[2], (2 * C, D), 0.05),
        'sampling_offsets_b': nrm(keys[3], (2 * C,), 0.5),
        'attention_weights_w': nrm(keys[4], (C, D), 0.1),
        'attention_weights_b': nrm(keys[5], (C,), 0.02),
        'output_proj_w': nrm(keys[6], (D, D)),
        'output_proj_b': nrm(keys[7], (D,), 0.02),
        'norm1_w': jnp.ones((D,), jnp.float32),
        'norm1_b': jnp.zeros((D,), jnp.float32),
        'ffn_w1': nrm(keys[8], (D, D)),
        'ffn_w2': nrm(keys[9], (D, D)),
        'norm2_w': jnp.ones((D,), jnp.float32),
        'norm2_b': jnp.zeros((D,), jnp.float32),
    }

    lidar_feat = nrm(keys[10], (Q, bs, D), 1.0)
    feat_flatten = nrm(keys[11], (V, bs, D), 1.0)
    q_pose = nrm(keys[12], (Q, bs, D), 0.5)
    ref_2d = jax.random.uniform(keys[13], (bs, Q, L, 2), jnp.float32, 0.05, 0.95)

    out = custon_da_transformer_layer(params, lidar_feat, feat_flatten, ref_2d,
                                      spatial_shapes, level_start_index, q_pose,
                                      num_heads=H, num_levels=L, num_points=P)
    out = jax.block_until_ready(out)
    assert out.shape == (Q, bs, D)

    ref = reference_forward(params, lidar_feat, feat_flatten, ref_2d,
                            spatial_shapes, level_start_index, q_pose, H, L, P)
    ref = jax.block_until_ready(ref)
    np.testing.assert_allclose(np.asarray(out), np.asarray(ref), rtol=1e-3, atol=1e-3)

    print("KERNEL_OK")
</pallas_src>

<mosaic_0001>
module attributes {stable_mosaic.version = 11 : i64} {
  func.func @kernel(%arg0: i32, %arg1: memref<16x16xf32, #tpu.memory_space<vmem>>, %arg2: memref<1x16x128xf32, #tpu.memory_space<vmem>>, %arg3: memref<1x16x128xf32, #tpu.memory_space<vmem>>, %arg4: memref<1x80x128xf32, #tpu.memory_space<vmem>>, %arg5: memref<1x16x16xf32, #tpu.memory_space<vmem>>, %arg6: memref<1x16x16xf32, #tpu.memory_space<vmem>>, %arg7: memref<128x128xf32, #tpu.memory_space<vmem>>, %arg8: memref<1x128xf32, #tpu.memory_space<vmem>>, %arg9: memref<128x48xf32, #tpu.memory_space<vmem>>, %arg10: memref<1x48xf32, #tpu.memory_space<vmem>>, %arg11: memref<1x16xf32, #tpu.memory_space<vmem>>, %arg12: memref<1x16xf32, #tpu.memory_space<vmem>>, %arg13: memref<128x128xf32, #tpu.memory_space<vmem>>, %arg14: memref<1x128xf32, #tpu.memory_space<vmem>>, %arg15: memref<1x128xf32, #tpu.memory_space<vmem>>, %arg16: memref<1x128xf32, #tpu.memory_space<vmem>>, %arg17: memref<128x128xf32, #tpu.memory_space<vmem>>, %arg18: memref<128x128xf32, #tpu.memory_space<vmem>>, %arg19: memref<1x128xf32, #tpu.memory_space<vmem>>, %arg20: memref<1x128xf32, #tpu.memory_space<vmem>>, %arg21: memref<1x16x128xf32, #tpu.memory_space<vmem>>, %arg22: memref<16x128xf32, #tpu.memory_space<vmem>>) attributes {dimension_semantics = [#tpu.dimension_semantics<parallel>], iteration_bounds = array<i64: 2>, scalar_prefetch = 0 : i64, scratch_operands = 1 : i64, tpu.core_type = #tpu.core_type<tc>, window_params = [{pipeline_mode = #tpu.pipeline_mode<synchronous>, transform_indices = @transform_0, window_bounds = array<i64: 16, 16>}, {transform_indices = @transform_1, window_bounds = array<i64: 1, 16, 128>}, {transform_indices = @transform_2, window_bounds = array<i64: 1, 16, 128>}, {transform_indices = @transform_3, window_bounds = array<i64: 1, 80, 128>}, {transform_indices = @transform_4, window_bounds = array<i64: 1, 16, 16>}, {transform_indices = @transform_5, window_bounds = array<i64: 1, 16, 16>}, {pipeline_mode = #tpu.pipeline_mode<synchronous>, transform_indices = @transform_6, window_bounds = array<i64: 128, 128>}, {pipeline_mode = #tpu.pipeline_mode<synchronous>, transform_indices = @transform_7, window_bounds = array<i64: 1, 128>}, {pipeline_mode = #tpu.pipeline_mode<synchronous>, transform_indices = @transform_8, window_bounds = array<i64: 128, 48>}, {pipeline_mode = #tpu.pipeline_mode<synchronous>, transform_indices = @transform_9, window_bounds = array<i64: 1, 48>}, {pipeline_mode = #tpu.pipeline_mode<synchronous>, transform_indices = @transform_10, window_bounds = array<i64: 1, 16>}, {pipeline_mode = #tpu.pipeline_mode<synchronous>, transform_indices = @transform_11, window_bounds = array<i64: 1, 16>}, {pipeline_mode = #tpu.pipeline_mode<synchronous>, transform_indices = @transform_12, window_bounds = array<i64: 128, 128>}, {pipeline_mode = #tpu.pipeline_mode<synchronous>, transform_indices = @transform_13, window_bounds = array<i64: 1, 128>}, {pipeline_mode = #tpu.pipeline_mode<synchronous>, transform_indices = @transform_14, window_bounds = array<i64: 1, 128>}, {pipeline_mode = #tpu.pipeline_mode<synchronous>, transform_indices = @transform_15, window_bounds = array<i64: 1, 128>}, {pipeline_mode = #tpu.pipeline_mode<synchronous>, transform_indices = @transform_16, window_bounds = array<i64: 128, 128>}, {pipeline_mode = #tpu.pipeline_mode<synchronous>, transform_indices = @transform_17, window_bounds = array<i64: 128, 128>}, {pipeline_mode = #tpu.pipeline_mode<synchronous>, transform_indices = @transform_18, window_bounds = array<i64: 1, 128>}, {pipeline_mode = #tpu.pipeline_mode<synchronous>, transform_indices = @transform_19, window_bounds = array<i64: 1, 128>}, {transform_indices = @transform_20, window_bounds = array<i64: 1, 16, 128>}]} {
    %c0 = arith.constant 0 : index
    %c0_0 = arith.constant 0 : index
    %c0_1 = arith.constant 0 : index
    %0 = vector.load %arg2[%c0, %c0_0, %c0_1] : memref<1x16x128xf32, #tpu.memory_space<vmem>>, vector<1x16x128xf32>
    %1 = vector.shape_cast %0 : vector<1x16x128xf32> to vector<16x128xf32>
    %c0_2 = arith.constant 0 : index
    %c0_3 = arith.constant 0 : index
    %c0_4 = arith.constant 0 : index
    %2 = vector.load %arg3[%c0_2, %c0_3, %c0_4] : memref<1x16x128xf32, #tpu.memory_space<vmem>>, vector<1x16x128xf32>
    %3 = vector.shape_cast %2 : vector<1x16x128xf32> to vector<16x128xf32>
    %4 = arith.addf %1, %3 : vector<16x128xf32>
    %c0_5 = arith.constant 0 : index
    %c0_6 = arith.constant 0 : index
    %c0_7 = arith.constant 0 : index
    %5 = vector.load %arg4[%c0_5, %c0_6, %c0_7] : memref<1x80x128xf32, #tpu.memory_space<vmem>>, vector<1x80x128xf32>
    %6 = vector.shape_cast %5 : vector<1x80x128xf32> to vector<80x128xf32>
    %c0_8 = arith.constant 0 : index
    %c0_9 = arith.constant 0 : index
    %7 = vector.load %arg7[%c0_8, %c0_9] : memref<128x128xf32, #tpu.memory_space<vmem>>, vector<128x128xf32>
    %cst = arith.constant dense<0.000000e+00> : vector<80x128xf32>
    %8 = tpu.matmul %6, %7, %cst {dimension_numbers = #tpu.dot_dimension_numbers<[1], [0], [0], [1], [0, 0, 1, 1], [], []>} : vector<80x128xf32>, vector<128x128xf32>, vector<80x128xf32> -> vector<80x128xf32>
    %c0_10 = arith.constant 0 : index
    %c0_11 = arith.constant 0 : index
    %9 = vector.load %arg8[%c0_10, %c0_11] : memref<1x128xf32, #tpu.memory_space<vmem>>, vector<1x128xf32>
    %10 = vector.broadcast %9 : vector<1x128xf32> to vector<80x128xf32>
    %11 = arith.addf %8, %10 : vector<80x128xf32>
    %c0_12 = arith.constant 0 : index
    %c0_13 = arith.constant 0 : index
    %12 = vector.load %arg9[%c0_12, %c0_13] : memref<128x48xf32, #tpu.memory_space<vmem>>, vector<128x48xf32>
    %cst_14 = arith.constant dense<0.000000e+00> : vector<16x48xf32>
    %13 = tpu.matmul %4, %12, %cst_14 {dimension_numbers = #tpu.dot_dimension_numbers<[1], [0], [0], [1], [0, 0, 1, 1], [], []>} : vector<16x128xf32>, vector<128x48xf32>, vector<16x48xf32> -> vector<16x48xf32>
    %c0_15 = arith.constant 0 : index
    %c0_16 = arith.constant 0 : index
    %14 = vector.load %arg10[%c0_15, %c0_16] : memref<1x48xf32, #tpu.memory_space<vmem>>, vector<1x48xf32>
    %15 = vector.broadcast %14 : vector<1x48xf32> to vector<16x48xf32>
    %16 = arith.addf %13, %15 : vector<16x48xf32>
    %17 = vector.extract_strided_slice %16 {offsets = [0, 0], sizes = [16, 16], strides = [1, 1]} : vector<16x48xf32> to vector<16x16xf32>
    %18 = vector.extract_strided_slice %16 {offsets = [0, 16], sizes = [16, 16], strides = [1, 1]} : vector<16x48xf32> to vector<16x16xf32>
    %19 = vector.extract_strided_slice %16 {offsets = [0, 32], sizes = [16, 16], strides = [1, 1]} : vector<16x48xf32> to vector<16x16xf32>
    %cst_17 = arith.constant dense<0xFF800000> : vector<16xf32>
    %20 = vector.multi_reduction <maximumf>, %19, %cst_17 [1] : vector<16x16xf32> to vector<16xf32>
    %21 = vector.shape_cast %20 : vector<16xf32> to vector<16x1xf32>
    %22 = vector.broadcast %21 : vector<16x1xf32> to vector<16x16xf32>
    %23 = arith.subf %19, %22 : vector<16x16xf32>
    %24 = math.exp %23 : vector<16x16xf32>
    %c0_18 = arith.constant 0 : index
    %c0_19 = arith.constant 0 : index
    %25 = vector.load %arg1[%c0_18, %c0_19] : memref<16x16xf32, #tpu.memory_space<vmem>>, vector<16x16xf32>
    %cst_20 = arith.constant dense<0.000000e+00> : vector<16x16xf32>
    %26 = tpu.matmul %24, %25, %cst_20 {dimension_numbers = #tpu.dot_dimension_numbers<[1], [0], [0], [1], [0, 0, 1, 1], [], []>} : vector<16x16xf32>, vector<16x16xf32>, vector<16x16xf32> -> vector<16x16xf32>
    %27 = arith.divf %24, %26 : vector<16x16xf32>
    %c0_21 = arith.constant 0 : index
    %c0_22 = arith.constant 0 : index
    %28 = vector.load %arg11[%c0_21, %c0_22] : memref<1x16xf32, #tpu.memory_space<vmem>>, vector<1x16xf32>
    %c0_23 = arith.constant 0 : index
    %c0_24 = arith.constant 0 : index
    %29 = vector.load %arg12[%c0_23, %c0_24] : memref<1x16xf32, #tpu.memory_space<vmem>>, vector<1x16xf32>
    %c0_25 = arith.constant 0 : index
    %c0_26 = arith.constant 0 : index
    %c0_27 = arith.constant 0 : index
    %30 = vector.load %arg5[%c0_25, %c0_26, %c0_27] : memref<1x16x16xf32, #tpu.memory_space<vmem>>, vector<1x16x16xf32>
    %31 = vector.shape_cast %30 : vector<1x16x16xf32> to vector<16x16xf32>
    %32 = arith.addf %31, %17 : vector<16x16xf32>
    %c0_28 = arith.constant 0 : index
    %c0_29 = arith.constant 0 : index
    %c0_30 = arith.constant 0 : index
    %33 = vector.load %arg6[%c0_28, %c0_29, %c0_30] : memref<1x16x16xf32, #tpu.memory_space<vmem>>, vector<1x16x16xf32>
    %34 = vector.shape_cast %33 : vector<1x16x16xf32> to vector<16x16xf32>
    %35 = arith.addf %34, %18 : vector<16x16xf32>
    %36 = math.floor %32 : vector<16x16xf32>
    %37 = math.floor %35 : vector<16x16xf32>
    %38 = arith.subf %32, %36 : vector<16x16xf32>
    %39 = arith.subf %35, %37 : vector<16x16xf32>
    %cst_31 = arith.constant 1.000000e+00 : f32
    %40 = vector.broadcast %cst_31 : f32 to vector<16x16xf32>
    %41 = arith.addf %36, %40 : vector<16x16xf32>
    %cst_32 = arith.constant 1.000000e+00 : f32
    %42 = vector.broadcast %cst_32 : f32 to vector<16x16xf32>
    %43 = arith.addf %37, %42 : vector<16x16xf32>
    %cst_33 = arith.constant 0.000000e+00 : f32
    %44 = vector.broadcast %cst_33 : f32 to vector<16x16xf32>
    %45 = arith.cmpf oge, %36, %44 : vector<16x16xf32>
    %46 = vector.broadcast %28 : vector<1x16xf32> to vector<16x16xf32>
    %47 = arith.cmpf olt, %36, %46 : vector<16x16xf32>
    %48 = arith.andi %45, %47 : vector<16x16xi1>
    %cst_34 = arith.constant 0.000000e+00 : f32
    %49 = vector.broadcast %cst_34 : f32 to vector<16x16xf32>
    %50 = arith.cmpf oge, %41, %49 : vector<16x16xf32>
    %51 = vector.broadcast %28 : vector<1x16xf32> to vector<16x16xf32>
    %52 = arith.cmpf olt, %41, %51 : vector<16x16xf32>
    %53 = arith.andi %50, %52 : vector<16x16xi1>
    %cst_35 = arith.constant 0.000000e+00 : f32
    %54 = vector.broadcast %cst_35 : f32 to vector<16x16xf32>
    %55 = arith.cmpf oge, %37, %54 : vector<16x16xf32>
    %56 = vector.broadcast %29 : vector<1x16xf32> to vector<16x16xf32>
    %57 = arith.cmpf olt, %37, %56 : vector<16x16xf32>
    %58 = arith.andi %55, %57 : vector<16x16xi1>
    %cst_36 = arith.constant 0.000000e+00 : f32
    %59 = vector.broadcast %cst_36 : f32 to vector<16x16xf32>
    %60 = arith.cmpf oge, %43, %59 : vector<16x16xf32>
    %61 = vector.broadcast %29 : vector<1x16xf32> to vector<16x16xf32>
    %62 = arith.cmpf olt, %43, %61 : vector<16x16xf32>
    %63 = arith.andi %60, %62 : vector<16x16xi1>
    %cst_37 = arith.constant 1.000000e+00 : f32
    %64 = vector.broadcast %cst_37 : f32 to vector<16x16xf32>
    %65 = arith.subf %64, %38 : vector<16x16xf32>
    %cst_38 = arith.constant 1.000000e+00 : f32
    %66 = vector.broadcast %cst_38 : f32 to vector<16x16xf32>
    %67 = arith.subf %66, %39 : vector<16x16xf32>
    %68 = arith.mulf %65, %67 : vector<16x16xf32>
    %69 = arith.mulf %27, %68 : vector<16x16xf32>
    %70 = arith.andi %48, %58 : vector<16x16xi1>
    %71 = arith.extui %70 : vector<16x16xi1> to vector<16x16xi32>
    %72 = arith.sitofp %71 : vector<16x16xi32> to vector<16x16xf32>
    %73 = arith.mulf %69, %72 : vector<16x16xf32>
    %cst_39 = arith.constant 1.000000e+00 : f32
    %74 = vector.broadcast %cst_39 : f32 to vector<16x16xf32>
    %75 = arith.subf %74, %39 : vector<16x16xf32>
    %76 = arith.mulf %38, %75 : vector<16x16xf32>
    %77 = arith.mulf %27, %76 : vector<16x16xf32>
    %78 = arith.andi %53, %58 : vector<16x16xi1>
    %79 = arith.extui %78 : vector<16x16xi1> to vector<16x16xi32>
    %80 = arith.sitofp %79 : vector<16x16xi32> to vector<16x16xf32>
    %81 = arith.mulf %77, %80 : vector<16x16xf32>
    %cst_40 = arith.constant 1.000000e+00 : f32
    %82 = vector.broadcast %cst_40 : f32 to vector<16x16xf32>
    %83 = arith.subf %82, %38 : vector<16x16xf32>
    %84 = arith.mulf %83, %39 : vector<16x16xf32>
    %85 = arith.mulf %27, %84 : vector<16x16xf32>
    %86 = arith.andi %48, %63 : vector<16x16xi1>
    %87 = arith.extui %86 : vector<16x16xi1> to vector<16x16xi32>
    %88 = arith.sitofp %87 : vector<16x16xi32> to vector<16x16xf32>
    %89 = arith.mulf %85, %88 : vector<16x16xf32>
    %90 = arith.mulf %38, %39 : vector<16x16xf32>
    %91 = arith.mulf %27, %90 : vector<16x16xf32>
    %92 = arith.andi %53, %63 : vector<16x16xi1>
    %93 = arith.extui %92 : vector<16x16xi1> to vector<16x16xi32>
    %94 = arith.sitofp %93 : vector<16x16xi32> to vector<16x16xf32>
    %95 = arith.mulf %91, %94 : vector<16x16xf32>
    %96 = vector.broadcast %28 : vector<1x16xf32> to vector<16x16xf32>
    %97 = arith.mulf %37, %96 : vector<16x16xf32>
    %98 = arith.addf %97, %36 : vector<16x16xf32>
    %cst_41 = arith.constant 1.000000e+00 : f32
    %99 = vector.broadcast %cst_41 : f32 to vector<16x16xf32>
    %100 = arith.addf %98, %99 : vector<16x16xf32>
    %101 = vector.broadcast %28 : vector<1x16xf32> to vector<16x16xf32>
    %102 = arith.addf %98, %101 : vector<16x16xf32>
    %cst_42 = arith.constant 1.000000e+00 : f32
    %103 = vector.broadcast %cst_42 : f32 to vector<16x16xf32>
    %104 = arith.addf %102, %103 : vector<16x16xf32>
    %cst_43 = arith.constant 0.000000e+00 : f32
    %105 = vector.broadcast %cst_43 : f32 to vector<16x32xf32>
    %cst_44 = arith.constant 0.000000e+00 : f32
    %106 = vector.broadcast %cst_44 : f32 to vector<16x32xf32>
    %cst_45 = arith.constant 0.000000e+00 : f32
    %107 = vector.broadcast %cst_45 : f32 to vector<16x32xf32>
    %cst_46 = arith.constant 0.000000e+00 : f32
    %108 = vector.broadcast %cst_46 : f32 to vector<16x32xf32>
    %109 = tpu.iota {dimensions = array<i32: 1>} : vector<1x64xi32>
    %110 = arith.sitofp %109 : vector<1x64xi32> to vector<1x64xf32>
    %111 = vector.extract_strided_slice %11 {offsets = [0, 0], sizes = [64, 128], strides = [1, 1]} : vector<80x128xf32> to vector<64x128xf32>
    %cst_47 = arith.constant 0.000000e+00 : f32
    %112 = vector.broadcast %cst_47 : f32 to vector<16x64xf32>
    %113 = vector.extract_strided_slice %98 {offsets = [0, 0], sizes = [16, 1], strides = [1, 1]} : vector<16x16xf32> to vector<16x1xf32>
    %114 = vector.broadcast %113 : vector<16x1xf32> to vector<16x64xf32>
    %115 = vector.broadcast %110 : vector<1x64xf32> to vector<16x64xf32>
    %116 = arith.cmpf oeq, %114, %115 : vector<16x64xf32>
    %117 = vector.extract_strided_slice %73 {offsets = [0, 0], sizes = [16, 1], strides = [1, 1]} : vector<16x16xf32> to vector<16x1xf32>
    %cst_48 = arith.constant 0.000000e+00 : f32
    %118 = vector.shape_cast %117 : vector<16x1xf32> to vector<16x1xf32>
    %119 = vector.broadcast %118 : vector<16x1xf32> to vector<16x64xf32>
    %120 = vector.broadcast %cst_48 : f32 to vector<16x64xf32>
    %121 = arith.select %116, %119, %120 : vector<16x64xi1>, vector<16x64xf32>
    %122 = arith.addf %112, %121 : vector<16x64xf32>
    %123 = vector.extract_strided_slice %100 {offsets = [0, 0], sizes = [16, 1], strides = [1, 1]} : vector<16x16xf32> to vector<16x1xf32>
    %124 = vector.broadcast %123 : vector<16x1xf32> to vector<16x64xf32>
    %125 = vector.broadcast %110 : vector<1x64xf32> to vector<16x64xf32>
    %126 = arith.cmpf oeq, %124, %125 : vector<16x64xf32>
    %127 = vector.extract_strided_slice %81 {offsets = [0, 0], sizes = [16, 1], strides = [1, 1]} : vector<16x16xf32> to vector<16x1xf32>
    %cst_49 = arith.constant 0.000000e+00 : f32
    %128 = vector.shape_cast %127 : vector<16x1xf32> to vector<16x1xf32>
    %129 = vector.broadcast %128 : vector<16x1xf32> to vector<16x64xf32>
    %130 = vector.broadcast %cst_49 : f32 to vector<16x64xf32>
    %131 = arith.select %126, %129, %130 : vector<16x64xi1>, vector<16x64xf32>
    %132 = arith.addf %122, %131 : vector<16x64xf32>
    %133 = vector.extract_strided_slice %102 {offsets = [0, 0], sizes = [16, 1], strides = [1, 1]} : vector<16x16xf32> to vector<16x1xf32>
    %134 = vector.broadcast %133 : vector<16x1xf32> to vector<16x64xf32>
    %135 = vector.broadcast %110 : vector<1x64xf32> to vector<16x64xf32>
    %136 = arith.cmpf oeq, %134, %135 : vector<16x64xf32>
    %137 = vector.extract_strided_slice %89 {offsets = [0, 0], sizes = [16, 1], strides = [1, 1]} : vector<16x16xf32> to vector<16x1xf32>
    %cst_50 = arith.constant 0.000000e+00 : f32
    %138 = vector.shape_cast %137 : vector<16x1xf32> to vector<16x1xf32>
    %139 = vector.broadcast %138 : vector<16x1xf32> to vector<16x64xf32>
    %140 = vector.broadcast %cst_50 : f32 to vector<16x64xf32>
    %141 = arith.select %136, %139, %140 : vector<16x64xi1>, vector<16x64xf32>
    %142 = arith.addf %132, %141 : vector<16x64xf32>
    %143 = vector.extract_strided_slice %104 {offsets = [0, 0], sizes = [16, 1], strides = [1, 1]} : vector<16x16xf32> to vector<16x1xf32>
    %144 = vector.broadcast %143 : vector<16x1xf32> to vector<16x64xf32>
    %145 = vector.broadcast %110 : vector<1x64xf32> to vector<16x64xf32>
    %146 = arith.cmpf oeq, %144, %145 : vector<16x64xf32>
    %147 = vector.extract_strided_slice %95 {offsets = [0, 0], sizes = [16, 1], strides = [1, 1]} : vector<16x16xf32> to vector<16x1xf32>
    %cst_51 = arith.constant 0.000000e+00 : f32
    %148 = vector.shape_cast %147 : vector<16x1xf32> to vector<16x1xf32>
    %149 = vector.broadcast %148 : vector<16x1xf32> to vector<16x64xf32>
    %150 = vector.broadcast %cst_51 : f32 to vector<16x64xf32>
    %151 = arith.select %146, %149, %150 : vector<16x64xi1>, vector<16x64xf32>
    %152 = arith.addf %142, %151 : vector<16x64xf32>
    %153 = vector.extract_strided_slice %98 {offsets = [0, 1], sizes = [16, 1], strides = [1, 1]} : vector<16x16xf32> to vector<16x1xf32>
    %154 = vector.broadcast %153 : vector<16x1xf32> to vector<16x64xf32>
    %155 = vector.broadcast %110 : vector<1x64xf32> to vector<16x64xf32>
    %156 = arith.cmpf oeq, %154, %155 : vector<16x64xf32>
    %157 = vector.extract_strided_slice %73 {offsets = [0, 1], sizes = [16, 1], strides = [1, 1]} : vector<16x16xf32> to vector<16x1xf32>
    %cst_52 = arith.constant 0.000000e+00 : f32
    %158 = vector.shape_cast %157 : vector<16x1xf32> to vector<16x1xf32>
    %159 = vector.broadcast %158 : vector<16x1xf32> to vector<16x64xf32>
    %160 = vector.broadcast %cst_52 : f32 to vector<16x64xf32>
    %161 = arith.select %156, %159, %160 : vector<16x64xi1>, vector<16x64xf32>
    %162 = arith.addf %152, %161 : vector<16x64xf32>
    %163 = vector.extract_strided_slice %100 {offsets = [0, 1], sizes = [16, 1], strides = [1, 1]} : vector<16x16xf32> to vector<16x1xf32>
    %164 = vector.broadcast %163 : vector<16x1xf32> to vector<16x64xf32>
    %165 = vector.broadcast %110 : vector<1x64xf32> to vector<16x64xf32>
    %166 = arith.cmpf oeq, %164, %165 : vector<16x64xf32>
    %167 = vector.extract_strided_slice %81 {offsets = [0, 1], sizes = [16, 1], strides = [1, 1]} : vector<16x16xf32> to vector<16x1xf32>
    %cst_53 = arith.constant 0.000000e+00 : f32
    %168 = vector.shape_cast %167 : vector<16x1xf32> to vector<16x1xf32>
    %169 = vector.broadcast %168 : vector<16x1xf32> to vector<16x64xf32>
    %170 = vector.broadcast %cst_53 : f32 to vector<16x64xf32>
    %171 = arith.select %166, %169, %170 : vector<16x64xi1>, vector<16x64xf32>
    %172 = arith.addf %162, %171 : vector<16x64xf32>
    %173 = vector.extract_strided_slice %102 {offsets = [0, 1], sizes = [16, 1], strides = [1, 1]} : vector<16x16xf32> to vector<16x1xf32>
    %174 = vector.broadcast %173 : vector<16x1xf32> to vector<16x64xf32>
    %175 = vector.broadcast %110 : vector<1x64xf32> to vector<16x64xf32>
    %176 = arith.cmpf oeq, %174, %175 : vector<16x64xf32>
    %177 = vector.extract_strided_slice %89 {offsets = [0, 1], sizes = [16, 1], strides = [1, 1]} : vector<16x16xf32> to vector<16x1xf32>
    %cst_54 = arith.constant 0.000000e+00 : f32
    %178 = vector.shape_cast %177 : vector<16x1xf32> to vector<16x1xf32>
    %179 = vector.broadcast %178 : vector<16x1xf32> to vector<16x64xf32>
    %180 = vector.broadcast %cst_54 : f32 to vector<16x64xf32>
    %181 = arith.select %176, %179, %180 : vector<16x64xi1>, vector<16x64xf32>
    %182 = arith.addf %172, %181 : vector<16x64xf32>
    %183 = vector.extract_strided_slice %104 {offsets = [0, 1], sizes = [16, 1], strides = [1, 1]} : vector<16x16xf32> to vector<16x1xf32>
    %184 = vector.broadcast %183 : vector<16x1xf32> to vector<16x64xf32>
    %185 = vector.broadcast %110 : vector<1x64xf32> to vector<16x64xf32>
    %186 = arith.cmpf oeq, %184, %185 : vector<16x64xf32>
    %187 = vector.extract_strided_slice %95 {offsets = [0, 1], sizes = [16, 1], strides = [1, 1]} : vector<16x16xf32> to vector<16x1xf32>
    %cst_55 = arith.constant 0.000000e+00 : f32
    %188 = vector.shape_cast %187 : vector<16x1xf32> to vector<16x1xf32>
    %189 = vector.broadcast %188 : vector<16x1xf32> to vector<16x64xf32>
    %190 = vector.broadcast %cst_55 : f32 to vector<16x64xf32>
    %191 = arith.select %186, %189, %190 : vector<16x64xi1>, vector<16x64xf32>
    %192 = arith.addf %182, %191 : vector<16x64xf32>
    %193 = vector.extract_strided_slice %111 {offsets = [0, 0], sizes = [64, 32], strides = [1, 1]} : vector<64x128xf32> to vector<64x32xf32>
    %cst_56 = arith.constant dense<0.000000e+00> : vector<16x32xf32>
    %194 = tpu.matmul %192, %193, %cst_56 {dimension_numbers = #tpu.dot_dimension_numbers<[1], [0], [0], [1], [0, 0, 1, 1], [], []>} : vector<16x64xf32>, vector<64x32xf32>, vector<16x32xf32> -> vector<16x32xf32>
    %195 = arith.addf %105, %194 : vector<16x32xf32>
    %cst_57 = arith.constant 0.000000e+00 : f32
    %196 = vector.broadcast %cst_57 : f32 to vector<16x64xf32>
    %197 = vector.extract_strided_slice %98 {offsets = [0, 2], sizes = [16, 1], strides = [1, 1]} : vector<16x16xf32> to vector<16x1xf32>
    %198 = vector.broadcast %197 : vector<16x1xf32> to vector<16x64xf32>
    %199 = vector.broadcast %110 : vector<1x64xf32> to vector<16x64xf32>
    %200 = arith.cmpf oeq, %198, %199 : vector<16x64xf32>
    %201 = vector.extract_strided_slice %73 {offsets = [0, 2], sizes = [16, 1], strides = [1, 1]} : vector<16x16xf32> to vector<16x1xf32>
    %cst_58 = arith.constant 0.000000e+00 : f32
    %202 = vector.shape_cast %201 : vector<16x1xf32> to vector<16x1xf32>
    %203 = vector.broadcast %202 : vector<16x1xf32> to vector<16x64xf32>
    %204 = vector.broadcast %cst_58 : f32 to vector<16x64xf32>
    %205 = arith.select %200, %203, %204 : vector<16x64xi1>, vector<16x64xf32>
    %206 = arith.addf %196, %205 : vector<16x64xf32>
    %207 = vector.extract_strided_slice %100 {offsets = [0, 2], sizes = [16, 1], strides = [1, 1]} : vector<16x16xf32> to vector<16x1xf32>
    %208 = vector.broadcast %207 : vector<16x1xf32> to vector<16x64xf32>
    %209 = vector.broadcast %110 : vector<1x64xf32> to vector<16x64xf32>
    %210 = arith.cmpf oeq, %208, %209 : vector<16x64xf32>
    %211 = vector.extract_strided_slice %81 {offsets = [0, 2], sizes = [16, 1], strides = [1, 1]} : vector<16x16xf32> to vector<16x1xf32>
    %cst_59 = arith.constant 0.000000e+00 : f32
    %212 = vector.shape_cast %211 : vector<16x1xf32> to vector<16x1xf32>
    %213 = vector.broadcast %212 : vector<16x1xf32> to vector<16x64xf32>
    %214 = vector.broadcast %cst_59 : f32 to vector<16x64xf32>
    %215 = arith.select %210, %213, %214 : vector<16x64xi1>, vector<16x64xf32>
    %216 = arith.addf %206, %215 : vector<16x64xf32>
    %217 = vector.extract_strided_slice %102 {offsets = [0, 2], sizes = [16, 1], strides = [1, 1]} : vector<16x16xf32> to vector<16x1xf32>
    %218 = vector.broadcast %217 : vector<16x1xf32> to vector<16x64xf32>
    %219 = vector.broadcast %110 : vector<1x64xf32> to vector<16x64xf32>
    %220 = arith.cmpf oeq, %218, %219 : vector<16x64xf32>
    %221 = vector.extract_strided_slice %89 {offsets = [0, 2], sizes = [16, 1], strides = [1, 1]} : vector<16x16xf32> to vector<16x1xf32>
    %cst_60 = arith.constant 0.000000e+00 : f32
    %222 = vector.shape_cast %221 : vector<16x1xf32> to vector<16x1xf32>
    %223 = vector.broadcast %222 : vector<16x1xf32> to vector<16x64xf32>
    %224 = vector.broadcast %cst_60 : f32 to vector<16x64xf32>
    %225 = arith.select %220, %223, %224 : vector<16x64xi1>, vector<16x64xf32>
    %226 = arith.addf %216, %225 : vector<16x64xf32>
    %227 = vector.extract_strided_slice %104 {offsets = [0, 2], sizes = [16, 1], strides = [1, 1]} : vector<16x16xf32> to vector<16x1xf32>
    %228 = vector.broadcast %227 : vector<16x1xf32> to vector<16x64xf32>
    %229 = vector.broadcast %110 : vector<1x64xf32> to vector<16x64xf32>
    %230 = arith.cmpf oeq, %228, %229 : vector<16x64xf32>
    %231 = vector.extract_strided_slice %95 {offsets = [0, 2], sizes = [16, 1], strides = [1, 1]} : vector<16x16xf32> to vector<16x1xf32>
    %cst_61 = arith.constant 0.000000e+00 : f32
    %232 = vector.shape_cast %231 : vector<16x1xf32> to vector<16x1xf32>
    %233 = vector.broadcast %232 : vector<16x1xf32> to vector<16x64xf32>
    %234 = vector.broadcast %cst_61 : f32 to vector<16x64xf32>
    %235 = arith.select %230, %233, %234 : vector<16x64xi1>, vector<16x64xf32>
    %236 = arith.addf %226, %235 : vector<16x64xf32>
    %237 = vector.extract_strided_slice %98 {offsets = [0, 3], sizes = [16, 1], strides = [1, 1]} : vector<16x16xf32> to vector<16x1xf32>
    %238 = vector.broadcast %237 : vector<16x1xf32> to vector<16x64xf32>
    %239 = vector.broadcast %110 : vector<1x64xf32> to vector<16x64xf32>
    %240 = arith.cmpf oeq, %238, %239 : vector<16x64xf32>
    %241 = vector.extract_strided_slice %73 {offsets = [0, 3], sizes = [16, 1], strides = [1, 1]} : vector<16x16xf32> to vector<16x1xf32>
    %cst_62 = arith.constant 0.000000e+00 : f32
    %242 = vector.shape_cast %241 : vector<16x1xf32> to vector<16x1xf32>
    %243 = vector.broadcast %242 : vector<16x1xf32> to vector<16x64xf32>
    %244 = vector.broadcast %cst_62 : f32 to vector<16x64xf32>
    %245 = arith.select %240, %243, %244 : vector<16x64xi1>, vector<16x64xf32>
    %246 = arith.addf %236, %245 : vector<16x64xf32>
    %247 = vector.extract_strided_slice %100 {offsets = [0, 3], sizes = [16, 1], strides = [1, 1]} : vector<16x16xf32> to vector<16x1xf32>
    %248 = vector.broadcast %247 : vector<16x1xf32> to vector<16x64xf32>
    %249 = vector.broadcast %110 : vector<1x64xf32> to vector<16x64xf32>
    %250 = arith.cmpf oeq, %248, %249 : vector<16x64xf32>
    %251 = vector.extract_strided_slice %81 {offsets = [0, 3], sizes = [16, 1], strides = [1, 1]} : vector<16x16xf32> to vector<16x1xf32>
    %cst_63 = arith.constant 0.000000e+00 : f32
    %252 = vector.shape_cast %251 : vector<16x1xf32> to vector<16x1xf32>
    %253 = vector.broadcast %252 : vector<16x1xf32> to vector<16x64xf32>
    %254 = vector.broadcast %cst_63 : f32 to vector<16x64xf32>
    %255 = arith.select %250, %253, %254 : vector<16x64xi1>, vector<16x64xf32>
    %256 = arith.addf %246, %255 : vector<16x64xf32>
    %257 = vector.extract_strided_slice %102 {offsets = [0, 3], sizes = [16, 1], strides = [1, 1]} : vector<16x16xf32> to vector<16x1xf32>
    %258 = vector.broadcast %257 : vector<16x1xf32> to vector<16x64xf32>
    %259 = vector.broadcast %110 : vector<1x64xf32> to vector<16x64xf32>
    %260 = arith.cmpf oeq, %258, %259 : vector<16x64xf32>
    %261 = vector.extract_strided_slice %89 {offsets = [0, 3], sizes = [16, 1], strides = [1, 1]} : vector<16x16xf32> to vector<16x1xf32>
    %cst_64 = arith.constant 0.000000e+00 : f32
    %262 = vector.shape_cast %261 : vector<16x1xf32> to vector<16x1xf32>
    %263 = vector.broadcast %262 : vector<16x1xf32> to vector<16x64xf32>
    %264 = vector.broadcast %cst_64 : f32 to vector<16x64xf32>
    %265 = arith.select %260, %263, %264 : vector<16x64xi1>, vector<16x64xf32>
    %266 = arith.addf %256, %265 : vector<16x64xf32>
    %267 = vector.extract_strided_slice %104 {offsets = [0, 3], sizes = [16, 1], strides = [1, 1]} : vector<16x16xf32> to vector<16x1xf32>
    %268 = vector.broadcast %267 : vector<16x1xf32> to vector<16x64xf32>
    %269 = vector.broadcast %110 : vector<1x64xf32> to vector<16x64xf32>
    %270 = arith.cmpf oeq, %268, %269 : vector<16x64xf32>
    %271 = vector.extract_strided_slice %95 {offsets = [0, 3], sizes = [16, 1], strides = [1, 1]} : vector<16x16xf32> to vector<16x1xf32>
    %cst_65 = arith.constant 0.000000e+00 : f32
    %272 = vector.shape_cast %271 : vector<16x1xf32> to vector<16x1xf32>
    %273 = vector.broadcast %272 : vector<16x1xf32> to vector<16x64xf32>
    %274 = vector.broadcast %cst_65 : f32 to vector<16x64xf32>
    %275 = arith.select %270, %273, %274 : vector<16x64xi1>, vector<16x64xf32>
    %276 = arith.addf %266, %275 : vector<16x64xf32>
    %277 = vector.extract_strided_slice %111 {offsets = [0, 32], sizes = [64, 32], strides = [1, 1]} : vector<64x128xf32> to vector<64x32xf32>
    %cst_66 = arith.constant dense<0.000000e+00> : vector<16x32xf32>
    %278 = tpu.matmul %276, %277, %cst_66 {dimension_numbers = #tpu.dot_dimension_numbers<[1], [0], [0], [1], [0, 0, 1, 1], [], []>} : vector<16x64xf32>, vector<64x32xf32>, vector<16x32xf32> -> vector<16x32xf32>
    %279 = arith.addf %106, %278 : vector<16x32xf32>
    %cst_67 = arith.constant 0.000000e+00 : f32
    %280 = vector.broadcast %cst_67 : f32 to vector<16x64xf32>
    %281 = vector.extract_strided_slice %98 {offsets = [0, 4], sizes = [16, 1], strides = [1, 1]} : vector<16x16xf32> to vector<16x1xf32>
    %282 = vector.broadcast %281 : vector<16x1xf32> to vector<16x64xf32>
    %283 = vector.broadcast %110 : vector<1x64xf32> to vector<16x64xf32>
    %284 = arith.cmpf oeq, %282, %283 : vector<16x64xf32>
    %285 = vector.extract_strided_slice %73 {offsets = [0, 4], sizes = [16, 1], strides = [1, 1]} : vector<16x16xf32> to vector<16x1xf32>
    %cst_68 = arith.constant 0.000000e+00 : f32
    %286 = vector.shape_cast %285 : vector<16x1xf32> to vector<16x1xf32>
    %287 = vector.broadcast %286 : vector<16x1xf32> to vector<16x64xf32>
    %288 = vector.broadcast %cst_68 : f32 to vector<16x64xf32>
    %289 = arith.select %284, %287, %288 : vector<16x64xi1>, vector<16x64xf32>
    %290 = arith.addf %280, %289 : vector<16x64xf32>
    %291 = vector.extract_strided_slice %100 {offsets = [0, 4], sizes = [16, 1], strides = [1, 1]} : vector<16x16xf32> to vector<16x1xf32>
    %292 = vector.broadcast %291 : vector<16x1xf32> to vector<16x64xf32>
    %293 = vector.broadcast %110 : vector<1x64xf32> to vector<16x64xf32>
    %294 = arith.cmpf oeq, %292, %293 : vector<16x64xf32>
    %295 = vector.extract_strided_slice %81 {offsets = [0, 4], sizes = [16, 1], strides = [1, 1]} : vector<16x16xf32> to vector<16x1xf32>
    %cst_69 = arith.constant 0.000000e+00 : f32
    %296 = vector.shape_cast %295 : vector<16x1xf32> to vector<16x1xf32>
    %297 = vector.broadcast %296 : vector<16x1xf32> to vector<16x64xf32>
    %298 = vector.broadcast %cst_69 : f32 to vector<16x64xf32>
    %299 = arith.select %294, %297, %298 : vector<16x64xi1>, vector<16x64xf32>
    %300 = arith.addf %290, %299 : vector<16x64xf32>
    %301 = vector.extract_strided_slice %102 {offsets = [0, 4], sizes = [16, 1], strides = [1, 1]} : vector<16x16xf32> to vector<16x1xf32>
    %302 = vector.broadcast %301 : vector<16x1xf32> to vector<16x64xf32>
    %303 = vector.broadcast %110 : vector<1x64xf32> to vector<16x64xf32>
    %304 = arith.cmpf oeq, %302, %303 : vector<16x64xf32>
    %305 = vector.extract_strided_slice %89 {offsets = [0, 4], sizes = [16, 1], strides = [1, 1]} : vector<16x16xf32> to vector<16x1xf32>
    %cst_70 = arith.constant 0.000000e+00 : f32
    %306 = vector.shape_cast %305 : vector<16x1xf32> to vector<16x1xf32>
    %307 = vector.broadcast %306 : vector<16x1xf32> to vector<16x64xf32>
    %308 = vector.broadcast %cst_70 : f32 to vector<16x64xf32>
    %309 = arith.select %304, %307, %308 : vector<16x64xi1>, vector<16x64xf32>
    %310 = arith.addf %300, %309 : vector<16x64xf32>
    %311 = vector.extract_strided_slice %104 {offsets = [0, 4], sizes = [16, 1], strides = [1, 1]} : vector<16x16xf32> to vector<16x1xf32>
    %312 = vector.broadcast %311 : vector<16x1xf32> to vector<16x64xf32>
    %313 = vector.broadcast %110 : vector<1x64xf32> to vector<16x64xf32>
    %314 = arith.cmpf oeq, %312, %313 : vector<16x64xf32>
    %315 = vector.extract_strided_slice %95 {offsets = [0, 4], sizes = [16, 1], strides = [1, 1]} : vector<16x16xf32> to vector<16x1xf32>
    %cst_71 = arith.constant 0.000000e+00 : f32
    %316 = vector.shape_cast %315 : vector<16x1xf32> to vector<16x1xf32>
    %317 = vector.broadcast %316 : vector<16x1xf32> to vector<16x64xf32>
    %318 = vector.broadcast %cst_71 : f32 to vector<16x64xf32>
    %319 = arith.select %314, %317, %318 : vector<16x64xi1>, vector<16x64xf32>
    %320 = arith.addf %310, %319 : vector<16x64xf32>
    %321 = vector.extract_strided_slice %98 {offsets = [0, 5], sizes = [16, 1], strides = [1, 1]} : vector<16x16xf32> to vector<16x1xf32>
    %322 = vector.broadcast %321 : vector<16x1xf32> to vector<16x64xf32>
    %323 = vector.broadcast %110 : vector<1x64xf32> to vector<16x64xf32>
    %324 = arith.cmpf oeq, %322, %323 : vector<16x64xf32>
    %325 = vector.extract_strided_slice %73 {offsets = [0, 5], sizes = [16, 1], strides = [1, 1]} : vector<16x16xf32> to vector<16x1xf32>
    %cst_72 = arith.constant 0.000000e+00 : f32
    %326 = vector.shape_cast %325 : vector<16x1xf32> to vector<16x1xf32>
    %327 = vector.broadcast %326 : vector<16x1xf32> to vector<16x64xf32>
    %328 = vector.broadcast %cst_72 : f32 to vector<16x64xf32>
    %329 = arith.select %324, %327, %328 : vector<16x64xi1>, vector<16x64xf32>
    %330 = arith.addf %320, %329 : vector<16x64xf32>
    %331 = vector.extract_strided_slice %100 {offsets = [0, 5], sizes = [16, 1], strides = [1, 1]} : vector<16x16xf32> to vector<16x1xf32>
    %332 = vector.broadcast %331 : vector<16x1xf32> to vector<16x64xf32>
    %333 = vector.broadcast %110 : vector<1x64xf32> to vector<16x64xf32>
    %334 = arith.cmpf oeq, %332, %333 : vector<16x64xf32>
    %335 = vector.extract_strided_slice %81 {offsets = [0, 5], sizes = [16, 1], strides = [1, 1]} : vector<16x16xf32> to vector<16x1xf32>
    %cst_73 = arith.constant 0.000000e+00 : f32
    %336 = vector.shape_cast %335 : vector<16x1xf32> to vector<16x1xf32>
    %337 = vector.broadcast %336 : vector<16x1xf32> to vector<16x64xf32>
    %338 = vector.broadcast %cst_73 : f32 to vector<16x64xf32>
    %339 = arith.select %334, %337, %338 : vector<16x64xi1>, vector<16x64xf32>
    %340 = arith.addf %330, %339 : vector<16x64xf32>
    %341 = vector.extract_strided_slice %102 {offsets = [0, 5], sizes = [16, 1], strides = [1, 1]} : vector<16x16xf32> to vector<16x1xf32>
    %342 = vector.broadcast %341 : vector<16x1xf32> to vector<16x64xf32>
    %343 = vector.broadcast %110 : vector<1x64xf32> to vector<16x64xf32>
    %344 = arith.cmpf oeq, %342, %343 : vector<16x64xf32>
    %345 = vector.extract_strided_slice %89 {offsets = [0, 5], sizes = [16, 1], strides = [1, 1]} : vector<16x16xf32> to vector<16x1xf32>
    %cst_74 = arith.constant 0.000000e+00 : f32
    %346 = vector.shape_cast %345 : vector<16x1xf32> to vector<16x1xf32>
    %347 = vector.broadcast %346 : vector<16x1xf32> to vector<16x64xf32>
    %348 = vector.broadcast %cst_74 : f32 to vector<16x64xf32>
    %349 = arith.select %344, %347, %348 : vector<16x64xi1>, vector<16x64xf32>
    %350 = arith.addf %340, %349 : vector<16x64xf32>
    %351 = vector.extract_strided_slice %104 {offsets = [0, 5], sizes = [16, 1], strides = [1, 1]} : vector<16x16xf32> to vector<16x1xf32>
    %352 = vector.broadcast %351 : vector<16x1xf32> to vector<16x64xf32>
    %353 = vector.broadcast %110 : vector<1x64xf32> to vector<16x64xf32>
    %354 = arith.cmpf oeq, %352, %353 : vector<16x64xf32>
    %355 = vector.extract_strided_slice %95 {offsets = [0, 5], sizes = [16, 1], strides = [1, 1]} : vector<16x16xf32> to vector<16x1xf32>
    %cst_75 = arith.constant 0.000000e+00 : f32
    %356 = vector.shape_cast %355 : vector<16x1xf32> to vector<16x1xf32>
    %357 = vector.broadcast %356 : vector<16x1xf32> to vector<16x64xf32>
    %358 = vector.broadcast %cst_75 : f32 to vector<16x64xf32>
    %359 = arith.select %354, %357, %358 : vector<16x64xi1>, vector<16x64xf32>
    %360 = arith.addf %350, %359 : vector<16x64xf32>
    %361 = vector.extract_strided_slice %111 {offsets = [0, 64], sizes = [64, 32], strides = [1, 1]} : vector<64x128xf32> to vector<64x32xf32>
    %cst_76 = arith.constant dense<0.000000e+00> : vector<16x32xf32>
    %362 = tpu.matmul %360, %361, %cst_76 {dimension_numbers = #tpu.dot_dimension_numbers<[1], [0], [0], [1], [0, 0, 1, 1], [], []>} : vector<16x64xf32>, vector<64x32xf32>, vector<16x32xf32> -> vector<16x32xf32>
    %363 = arith.addf %107, %362 : vector<16x32xf32>
    %cst_77 = arith.constant 0.000000e+00 : f32
    %364 = vector.broadcast %cst_77 : f32 to vector<16x64xf32>
    %365 = vector.extract_strided_slice %98 {offsets = [0, 6], sizes = [16, 1], strides = [1, 1]} : vector<16x16xf32> to vector<16x1xf32>
    %366 = vector.broadcast %365 : vector<16x1xf32> to vector<16x64xf32>
    %367 = vector.broadcast %110 : vector<1x64xf32> to vector<16x64xf32>
    %368 = arith.cmpf oeq, %366, %367 : vector<16x64xf32>
    %369 = vector.extract_strided_slice %73 {offsets = [0, 6], sizes = [16, 1], strides = [1, 1]} : vector<16x16xf32> to vector<16x1xf32>
    %cst_78 = arith.constant 0.000000e+00 : f32
    %370 = vector.shape_cast %369 : vector<16x1xf32> to vector<16x1xf32>
    %371 = vector.broadcast %370 : vector<16x1xf32> to vector<16x64xf32>
    %372 = vector.broadcast %cst_78 : f32 to vector<16x64xf32>
    %373 = arith.select %368, %371, %372 : vector<16x64xi1>, vector<16x64xf32>
    %374 = arith.addf %364, %373 : vector<16x64xf32>
    %375 = vector.extract_strided_slice %100 {offsets = [0, 6], sizes = [16, 1], strides = [1, 1]} : vector<16x16xf32> to vector<16x1xf32>
    %376 = vector.broadcast %375 : vector<16x1xf32> to vector<16x64xf32>
    %377 = vector.broadcast %110 : vector<1x64xf32> to vector<16x64xf32>
    %378 = arith.cmpf oeq, %376, %377 : vector<16x64xf32>
    %379 = vector.extract_strided_slice %81 {offsets = [0, 6], sizes = [16, 1], strides = [1, 1]} : vector<16x16xf32> to vector<16x1xf32>
    %cst_79 = arith.constant 0.000000e+00 : f32
    %380 = vector.shape_cast %379 : vector<16x1xf32> to vector<16x1xf32>
    %381 = vector.broadcast %380 : vector<16x1xf32> to vector<16x64xf32>
    %382 = vector.broadcast %cst_79 : f32 to vector<16x64xf32>
    %383 = arith.select %378, %381, %382 : vector<16x64xi1>, vector<16x64xf32>
    %384 = arith.addf %374, %383 : vector<16x64xf32>
    %385 = vector.extract_strided_slice %102 {offsets = [0, 6], sizes = [16, 1], strides = [1, 1]} : vector<16x16xf32> to vector<16x1xf32>
    %386 = vector.broadcast %385 : vector<16x1xf32> to vector<16x64xf32>
    %387 = vector.broadcast %110 : vector<1x64xf32> to vector<16x64xf32>
    %388 = arith.cmpf oeq, %386, %387 : vector<16x64xf32>
    %389 = vector.extract_strided_slice %89 {offsets = [0, 6], sizes = [16, 1], strides = [1, 1]} : vector<16x16xf32> to vector<16x1xf32>
    %cst_80 = arith.constant 0.000000e+00 : f32
    %390 = vector.shape_cast %389 : vector<16x1xf32> to vector<16x1xf32>
    %391 = vector.broadcast %390 : vector<16x1xf32> to vector<16x64xf32>
    %392 = vector.broadcast %cst_80 : f32 to vector<16x64xf32>
    %393 = arith.select %388, %391, %392 : vector<16x64xi1>, vector<16x64xf32>
    %394 = arith.addf %384, %393 : vector<16x64xf32>
    %395 = vector.extract_strided_slice %104 {offsets = [0, 6], sizes = [16, 1], strides = [1, 1]} : vector<16x16xf32> to vector<16x1xf32>
    %396 = vector.broadcast %395 : vector<16x1xf32> to vector<16x64xf32>
    %397 = vector.broadcast %110 : vector<1x64xf32> to vector<16x64xf32>
    %398 = arith.cmpf oeq, %396, %397 : vector<16x64xf32>
    %399 = vector.extract_strided_slice %95 {offsets = [0, 6], sizes = [16, 1], strides = [1, 1]} : vector<16x16xf32> to vector<16x1xf32>
    %cst_81 = arith.constant 0.000000e+00 : f32
    %400 = vector.shape_cast %399 : vector<16x1xf32> to vector<16x1xf32>
    %401 = vector.broadcast %400 : vector<16x1xf32> to vector<16x64xf32>
    %402 = vector.broadcast %cst_81 : f32 to vector<16x64xf32>
    %403 = arith.select %398, %401, %402 : vector<16x64xi1>, vector<16x64xf32>
    %404 = arith.addf %394, %403 : vector<16x64xf32>
    %405 = vector.extract_strided_slice %98 {offsets = [0, 7], sizes = [16, 1], strides = [1, 1]} : vector<16x16xf32> to vector<16x1xf32>
    %406 = vector.broadcast %405 : vector<16x1xf32> to vector<16x64xf32>
    %407 = vector.broadcast %110 : vector<1x64xf32> to vector<16x64xf32>
    %408 = arith.cmpf oeq, %406, %407 : vector<16x64xf32>
    %409 = vector.extract_strided_slice %73 {offsets = [0, 7], sizes = [16, 1], strides = [1, 1]} : vector<16x16xf32> to vector<16x1xf32>
    %cst_82 = arith.constant 0.000000e+00 : f32
    %410 = vector.shape_cast %409 : vector<16x1xf32> to vector<16x1xf32>
    %411 = vector.broadcast %410 : vector<16x1xf32> to vector<16x64xf32>
    %412 = vector.broadcast %cst_82 : f32 to vector<16x64xf32>
    %413 = arith.select %408, %411, %412 : vector<16x64xi1>, vector<16x64xf32>
    %414 = arith.addf %404, %413 : vector<16x64xf32>
    %415 = vector.extract_strided_slice %100 {offsets = [0, 7], sizes = [16, 1], strides = [1, 1]} : vector<16x16xf32> to vector<16x1xf32>
    %416 = vector.broadcast %415 : vector<16x1xf32> to vector<16x64xf32>
    %417 = vector.broadcast %110 : vector<1x64xf32> to vector<16x64xf32>
    %418 = arith.cmpf oeq, %416, %417 : vector<16x64xf32>
    %419 = vector.extract_strided_slice %81 {offsets = [0, 7], sizes = [16, 1], strides = [1, 1]} : vector<16x16xf32> to vector<16x1xf32>
    %cst_83 = arith.constant 0.000000e+00 : f32
    %420 = vector.shape_cast %419 : vector<16x1xf32> to vector<16x1xf32>
    %421 = vector.broadcast %420 : vector<16x1xf32> to vector<16x64xf32>
    %422 = vector.broadcast %cst_83 : f32 to vector<16x64xf32>
    %423 = arith.select %418, %421, %422 : vector<16x64xi1>, vector<16x64xf32>
    %424 = arith.addf %414, %423 : vector<16x64xf32>
    %425 = vector.extract_strided_slice %102 {offsets = [0, 7], sizes = [16, 1], strides = [1, 1]} : vector<16x16xf32> to vector<16x1xf32>
    %426 = vector.broadcast %425 : vector<16x1xf32> to vector<16x64xf32>
    %427 = vector.broadcast %110 : vector<1x64xf32> to vector<16x64xf32>
    %428 = arith.cmpf oeq, %426, %427 : vector<16x64xf32>
    %429 = vector.extract_strided_slice %89 {offsets = [0, 7], sizes = [16, 1], strides = [1, 1]} : vector<16x16xf32> to vector<16x1xf32>
    %cst_84 = arith.constant 0.000000e+00 : f32
    %430 = vector.shape_cast %429 : vector<16x1xf32> to vector<16x1xf32>
    %431 = vector.broadcast %430 : vector<16x1xf32> to vector<16x64xf32>
    %432 = vector.broadcast %cst_84 : f32 to vector<16x64xf32>
    %433 = arith.select %428, %431, %432 : vector<16x64xi1>, vector<16x64xf32>
    %434 = arith.addf %424, %433 : vector<16x64xf32>
    %435 = vector.extract_strided_slice %104 {offsets = [0, 7], sizes = [16, 1], strides = [1, 1]} : vector<16x16xf32> to vector<16x1xf32>
    %436 = vector.broadcast %435 : vector<16x1xf32> to vector<16x64xf32>
    %437 = vector.broadcast %110 : vector<1x64xf32> to vector<16x64xf32>
    %438 = arith.cmpf oeq, %436, %437 : vector<16x64xf32>
    %439 = vector.extract_strided_slice %95 {offsets = [0, 7], sizes = [16, 1], strides = [1, 1]} : vector<16x16xf32> to vector<16x1xf32>
    %cst_85 = arith.constant 0.000000e+00 : f32
    %440 = vector.shape_cast %439 : vector<16x1xf32> to vector<16x1xf32>
    %441 = vector.broadcast %440 : vector<16x1xf32> to vector<16x64xf32>
    %442 = vector.broadcast %cst_85 : f32 to vector<16x64xf32>
    %443 = arith.select %438, %441, %442 : vector<16x64xi1>, vector<16x64xf32>
    %444 = arith.addf %434, %443 : vector<16x64xf32>
    %445 = vector.extract_strided_slice %111 {offsets = [0, 96], sizes = [64, 32], strides = [1, 1]} : vector<64x128xf32> to vector<64x32xf32>
    %cst_86 = arith.constant dense<0.000000e+00> : vector<16x32xf32>
    %446 = tpu.matmul %444, %445, %cst_86 {dimension_numbers = #tpu.dot_dimension_numbers<[1], [0], [0], [1], [0, 0, 1, 1], [], []>} : vector<16x64xf32>, vector<64x32xf32>, vector<16x32xf32> -> vector<16x32xf32>
    %447 = arith.addf %108, %446 : vector<16x32xf32>
    %448 = tpu.iota {dimensions = array<i32: 1>} : vector<1x16xi32>
    %449 = arith.sitofp %448 : vector<1x16xi32> to vector<1x16xf32>
    %450 = vector.extract_strided_slice %11 {offsets = [64, 0], sizes = [16, 128], strides = [1, 1]} : vector<80x128xf32> to vector<16x128xf32>
    %cst_87 = arith.constant 0.000000e+00 : f32
    %451 = vector.broadcast %cst_87 : f32 to vector<16x16xf32>
    %452 = vector.extract_strided_slice %98 {offsets = [0, 8], sizes = [16, 1], strides = [1, 1]} : vector<16x16xf32> to vector<16x1xf32>
    %453 = vector.broadcast %452 : vector<16x1xf32> to vector<16x16xf32>
    %454 = vector.broadcast %449 : vector<1x16xf32> to vector<16x16xf32>
    %455 = arith.cmpf oeq, %453, %454 : vector<16x16xf32>
    %456 = vector.extract_strided_slice %73 {offsets = [0, 8], sizes = [16, 1], strides = [1, 1]} : vector<16x16xf32> to vector<16x1xf32>
    %cst_88 = arith.constant 0.000000e+00 : f32
    %457 = vector.shape_cast %456 : vector<16x1xf32> to vector<16x1xf32>
    %458 = vector.broadcast %457 : vector<16x1xf32> to vector<16x16xf32>
    %459 = vector.broadcast %cst_88 : f32 to vector<16x16xf32>
    %460 = arith.select %455, %458, %459 : vector<16x16xi1>, vector<16x16xf32>
    %461 = arith.addf %451, %460 : vector<16x16xf32>
    %462 = vector.extract_strided_slice %100 {offsets = [0, 8], sizes = [16, 1], strides = [1, 1]} : vector<16x16xf32> to vector<16x1xf32>
    %463 = vector.broadcast %462 : vector<16x1xf32> to vector<16x16xf32>
    %464 = vector.broadcast %449 : vector<1x16xf32> to vector<16x16xf32>
    %465 = arith.cmpf oeq, %463, %464 : vector<16x16xf32>
    %466 = vector.extract_strided_slice %81 {offsets = [0, 8], sizes = [16, 1], strides = [1, 1]} : vector<16x16xf32> to vector<16x1xf32>
    %cst_89 = arith.constant 0.000000e+00 : f32
    %467 = vector.shape_cast %466 : vector<16x1xf32> to vector<16x1xf32>
    %468 = vector.broadcast %467 : vector<16x1xf32> to vector<16x16xf32>
    %469 = vector.broadcast %cst_89 : f32 to vector<16x16xf32>
    %470 = arith.select %465, %468, %469 : vector<16x16xi1>, vector<16x16xf32>
    %471 = arith.addf %461, %470 : vector<16x16xf32>
    %472 = vector.extract_strided_slice %102 {offsets = [0, 8], sizes = [16, 1], strides = [1, 1]} : vector<16x16xf32> to vector<16x1xf32>
    %473 = vector.broadcast %472 : vector<16x1xf32> to vector<16x16xf32>
    %474 = vector.broadcast %449 : vector<1x16xf32> to vector<16x16xf32>
    %475 = arith.cmpf oeq, %473, %474 : vector<16x16xf32>
    %476 = vector.extract_strided_slice %89 {offsets = [0, 8], sizes = [16, 1], strides = [1, 1]} : vector<16x16xf32> to vector<16x1xf32>
    %cst_90 = arith.constant 0.000000e+00 : f32
    %477 = vector.shape_cast %476 : vector<16x1xf32> to vector<16x1xf32>
    %478 = vector.broadcast %477 : vector<16x1xf32> to vector<16x16xf32>
    %479 = vector.broadcast %cst_90 : f32 to vector<16x16xf32>
    %480 = arith.select %475, %478, %479 : vector<16x16xi1>, vector<16x16xf32>
    %481 = arith.addf %471, %480 : vector<16x16xf32>
    %482 = vector.extract_strided_slice %104 {offsets = [0, 8], sizes = [16, 1], strides = [1, 1]} : vector<16x16xf32> to vector<16x1xf32>
    %483 = vector.broadcast %482 : vector<16x1xf32> to vector<16x16xf32>
    %484 = vector.broadcast %449 : vector<1x16xf32> to vector<16x16xf32>
    %485 = arith.cmpf oeq, %483, %484 : vector<16x16xf32>
    %486 = vector.extract_strided_slice %95 {offsets = [0, 8], sizes = [16, 1], strides = [1, 1]} : vector<16x16xf32> to vector<16x1xf32>
    %cst_91 = arith.constant 0.000000e+00 : f32
    %487 = vector.shape_cast %486 : vector<16x1xf32> to vector<16x1xf32>
    %488 = vector.broadcast %487 : vector<16x1xf32> to vector<16x16xf32>
    %489 = vector.broadcast %cst_91 : f32 to vector<16x16xf32>
    %490 = arith.select %485, %488, %489 : vector<16x16xi1>, vector<16x16xf32>
    %491 = arith.addf %481, %490 : vector<16x16xf32>
    %492 = vector.extract_strided_slice %98 {offsets = [0, 9], sizes = [16, 1], strides = [1, 1]} : vector<16x16xf32> to vector<16x1xf32>
    %493 = vector.broadcast %492 : vector<16x1xf32> to vector<16x16xf32>
    %494 = vector.broadcast %449 : vector<1x16xf32> to vector<16x16xf32>
    %495 = arith.cmpf oeq, %493, %494 : vector<16x16xf32>
    %496 = vector.extract_strided_slice %73 {offsets = [0, 9], sizes = [16, 1], strides = [1, 1]} : vector<16x16xf32> to vector<16x1xf32>
    %cst_92 = arith.constant 0.000000e+00 : f32
    %497 = vector.shape_cast %496 : vector<16x1xf32> to vector<16x1xf32>
    %498 = vector.broadcast %497 : vector<16x1xf32> to vector<16x16xf32>
    %499 = vector.broadcast %cst_92 : f32 to vector<16x16xf32>
    %500 = arith.select %495, %498, %499 : vector<16x16xi1>, vector<16x16xf32>
    %501 = arith.addf %491, %500 : vector<16x16xf32>
    %502 = vector.extract_strided_slice %100 {offsets = [0, 9], sizes = [16, 1], strides = [1, 1]} : vector<16x16xf32> to vector<16x1xf32>
    %503 = vector.broadcast %502 : vector<16x1xf32> to vector<16x16xf32>
    %504 = vector.broadcast %449 : vector<1x16xf32> to vector<16x16xf32>
    %505 = arith.cmpf oeq, %503, %504 : vector<16x16xf32>
    %506 = vector.extract_strided_slice %81 {offsets = [0, 9], sizes = [16, 1], strides = [1, 1]} : vector<16x16xf32> to vector<16x1xf32>
    %cst_93 = arith.constant 0.000000e+00 : f32
    %507 = vector.shape_cast %506 : vector<16x1xf32> to vector<16x1xf32>
    %508 = vector.broadcast %507 : vector<16x1xf32> to vector<16x16xf32>
    %509 = vector.broadcast %cst_93 : f32 to vector<16x16xf32>
    %510 = arith.select %505, %508, %509 : vector<16x16xi1>, vector<16x16xf32>
    %511 = arith.addf %501, %510 : vector<16x16xf32>
    %512 = vector.extract_strided_slice %102 {offsets = [0, 9], sizes = [16, 1], strides = [1, 1]} : vector<16x16xf32> to vector<16x1xf32>
    %513 = vector.broadcast %512 : vector<16x1xf32> to vector<16x16xf32>
    %514 = vector.broadcast %449 : vector<1x16xf32> to vector<16x16xf32>
    %515 = arith.cmpf oeq, %513, %514 : vector<16x16xf32>
    %516 = vector.extract_strided_slice %89 {offsets = [0, 9], sizes = [16, 1], strides = [1, 1]} : vector<16x16xf32> to vector<16x1xf32>
    %cst_94 = arith.constant 0.000000e+00 : f32
    %517 = vector.shape_cast %516 : vector<16x1xf32> to vector<16x1xf32>
    %518 = vector.broadcast %517 : vector<16x1xf32> to vector<16x16xf32>
    %519 = vector.broadcast %cst_94 : f32 to vector<16x16xf32>
    %520 = arith.select %515, %518, %519 : vector<16x16xi1>, vector<16x16xf32>
    %521 = arith.addf %511, %520 : vector<16x16xf32>
    %522 = vector.extract_strided_slice %104 {offsets = [0, 9], sizes = [16, 1], strides = [1, 1]} : vector<16x16xf32> to vector<16x1xf32>
    %523 = vector.broadcast %522 : vector<16x1xf32> to vector<16x16xf32>
    %524 = vector.broadcast %449 : vector<1x16xf32> to vector<16x16xf32>
    %525 = arith.cmpf oeq, %523, %524 : vector<16x16xf32>
    %526 = vector.extract_strided_slice %95 {offsets = [0, 9], sizes = [16, 1], strides = [1, 1]} : vector<16x16xf32> to vector<16x1xf32>
    %cst_95 = arith.constant 0.000000e+00 : f32
    %527 = vector.shape_cast %526 : vector<16x1xf32> to vector<16x1xf32>
    %528 = vector.broadcast %527 : vector<16x1xf32> to vector<16x16xf32>
    %529 = vector.broadcast %cst_95 : f32 to vector<16x16xf32>
    %530 = arith.select %525, %528, %529 : vector<16x16xi1>, vector<16x16xf32>
    %531 = arith.addf %521, %530 : vector<16x16xf32>
    %532 = vector.extract_strided_slice %450 {offsets = [0, 0], sizes = [16, 32], strides = [1, 1]} : vector<16x128xf32> to vector<16x32xf32>
    %cst_96 = arith.constant dense<0.000000e+00> : vector<16x32xf32>
    %533 = tpu.matmul %531, %532, %cst_96 {dimension_numbers = #tpu.dot_dimension_numbers<[1], [0], [0], [1], [0, 0, 1, 1], [], []>} : vector<16x16xf32>, vector<16x32xf32>, vector<16x32xf32> -> vector<16x32xf32>
    %534 = arith.addf %195, %533 : vector<16x32xf32>
    %cst_97 = arith.constant 0.000000e+00 : f32
    %535 = vector.broadcast %cst_97 : f32 to vector<16x16xf32>
    %536 = vector.extract_strided_slice %98 {offsets = [0, 10], sizes = [16, 1], strides = [1, 1]} : vector<16x16xf32> to vector<16x1xf32>
    %537 = vector.broadcast %536 : vector<16x1xf32> to vector<16x16xf32>
    %538 = vector.broadcast %449 : vector<1x16xf32> to vector<16x16xf32>
    %539 = arith.cmpf oeq, %537, %538 : vector<16x16xf32>
    %540 = vector.extract_strided_slice %73 {offsets = [0, 10], sizes = [16, 1], strides = [1, 1]} : vector<16x16xf32> to vector<16x1xf32>
    %cst_98 = arith.constant 0.000000e+00 : f32
    %541 = vector.shape_cast %540 : vector<16x1xf32> to vector<16x1xf32>
    %542 = vector.broadcast %541 : vector<16x1xf32> to vector<16x16xf32>
    %543 = vector.broadcast %cst_98 : f32 to vector<16x16xf32>
    %544 = arith.select %539, %542, %543 : vector<16x16xi1>, vector<16x16xf32>
    %545 = arith.addf %535, %544 : vector<16x16xf32>
    %546 = vector.extract_strided_slice %100 {offsets = [0, 10], sizes = [16, 1], strides = [1, 1]} : vector<16x16xf32> to vector<16x1xf32>
    %547 = vector.broadcast %546 : vector<16x1xf32> to vector<16x16xf32>
    %548 = vector.broadcast %449 : vector<1x16xf32> to vector<16x16xf32>
    %549 = arith.cmpf oeq, %547, %548 : vector<16x16xf32>
    %550 = vector.extract_strided_slice %81 {offsets = [0, 10], sizes = [16, 1], strides = [1, 1]} : vector<16x16xf32> to vector<16x1xf32>
    %cst_99 = arith.constant 0.000000e+00 : f32
    %551 = vector.shape_cast %550 : vector<16x1xf32> to vector<16x1xf32>
    %552 = vector.broadcast %551 : vector<16x1xf32> to vector<16x16xf32>
    %553 = vector.broadcast %cst_99 : f32 to vector<16x16xf32>
    %554 = arith.select %549, %552, %553 : vector<16x16xi1>, vector<16x16xf32>
    %555 = arith.addf %545, %554 : vector<16x16xf32>
    %556 = vector.extract_strided_slice %102 {offsets = [0, 10], sizes = [16, 1], strides = [1, 1]} : vector<16x16xf32> to vector<16x1xf32>
    %557 = vector.broadcast %556 : vector<16x1xf32> to vector<16x16xf32>
    %558 = vector.broadcast %449 : vector<1x16xf32> to vector<16x16xf32>
    %559 = arith.cmpf oeq, %557, %558 : vector<16x16xf32>
    %560 = vector.extract_strided_slice %89 {offsets = [0, 10], sizes = [16, 1], strides = [1, 1]} : vector<16x16xf32> to vector<16x1xf32>
    %cst_100 = arith.constant 0.000000e+00 : f32
    %561 = vector.shape_cast %560 : vector<16x1xf32> to vector<16x1xf32>
    %562 = vector.broadcast %561 : vector<16x1xf32> to vector<16x16xf32>
    %563 = vector.broadcast %cst_100 : f32 to vector<16x16xf32>
    %564 = arith.select %559, %562, %563 : vector<16x16xi1>, vector<16x16xf32>
    %565 = arith.addf %555, %564 : vector<16x16xf32>
    %566 = vector.extract_strided_slice %104 {offsets = [0, 10], sizes = [16, 1], strides = [1, 1]} : vector<16x16xf32> to vector<16x1xf32>
    %567 = vector.broadcast %566 : vector<16x1xf32> to vector<16x16xf32>
    %568 = vector.broadcast %449 : vector<1x16xf32> to vector<16x16xf32>
    %569 = arith.cmpf oeq, %567, %568 : vector<16x16xf32>
    %570 = vector.extract_strided_slice %95 {offsets = [0, 10], sizes = [16, 1], strides = [1, 1]} : vector<16x16xf32> to vector<16x1xf32>
    %cst_101 = arith.constant 0.000000e+00 : f32
    %571 = vector.shape_cast %570 : vector<16x1xf32> to vector<16x1xf32>
    %572 = vector.broadcast %571 : vector<16x1xf32> to vector<16x16xf32>
    %573 = vector.broadcast %cst_101 : f32 to vector<16x16xf32>
    %574 = arith.select %569, %572, %573 : vector<16x16xi1>, vector<16x16xf32>
    %575 = arith.addf %565, %574 : vector<16x16xf32>
    %576 = vector.extract_strided_slice %98 {offsets = [0, 11], sizes = [16, 1], strides = [1, 1]} : vector<16x16xf32> to vector<16x1xf32>
    %577 = vector.broadcast %576 : vector<16x1xf32> to vector<16x16xf32>
    %578 = vector.broadcast %449 : vector<1x16xf32> to vector<16x16xf32>
    %579 = arith.cmpf oeq, %577, %578 : vector<16x16xf32>
    %580 = vector.extract_strided_slice %73 {offsets = [0, 11], sizes = [16, 1], strides = [1, 1]} : vector<16x16xf32> to vector<16x1xf32>
    %cst_102 = arith.constant 0.000000e+00 : f32
    %581 = vector.shape_cast %580 : vector<16x1xf32> to vector<16x1xf32>
    %582 = vector.broadcast %581 : vector<16x1xf32> to vector<16x16xf32>
    %583 = vector.broadcast %cst_102 : f32 to vector<16x16xf32>
    %584 = arith.select %579, %582, %583 : vector<16x16xi1>, vector<16x16xf32>
    %585 = arith.addf %575, %584 : vector<16x16xf32>
    %586 = vector.extract_strided_slice %100 {offsets = [0, 11], sizes = [16, 1], strides = [1, 1]} : vector<16x16xf32> to vector<16x1xf32>
    %587 = vector.broadcast %586 : vector<16x1xf32> to vector<16x16xf32>
    %588 = vector.broadcast %449 : vector<1x16xf32> to vector<16x16xf32>
    %589 = arith.cmpf oeq, %587, %588 : vector<16x16xf32>
    %590 = vector.extract_strided_slice %81 {offsets = [0, 11], sizes = [16, 1], strides = [1, 1]} : vector<16x16xf32> to vector<16x1xf32>
    %cst_103 = arith.constant 0.000000e+00 : f32
    %591 = vector.shape_cast %590 : vector<16x1xf32> to vector<16x1xf32>
    %592 = vector.broadcast %591 : vector<16x1xf32> to vector<16x16xf32>
    %593 = vector.broadcast %cst_103 : f32 to vector<16x16xf32>
    %594 = arith.select %589, %592, %593 : vector<16x16xi1>, vector<16x16xf32>
    %595 = arith.addf %585, %594 : vector<16x16xf32>
    %596 = vector.extract_strided_slice %102 {offsets = [0, 11], sizes = [16, 1], strides = [1, 1]} : vector<16x16xf32> to vector<16x1xf32>
    %597 = vector.broadcast %596 : vector<16x1xf32> to vector<16x16xf32>
    %598 = vector.broadcast %449 : vector<1x16xf32> to vector<16x16xf32>
    %599 = arith.cmpf oeq, %597, %598 : vector<16x16xf32>
    %600 = vector.extract_strided_slice %89 {offsets = [0, 11], sizes = [16, 1], strides = [1, 1]} : vector<16x16xf32> to vector<16x1xf32>
    %cst_104 = arith.constant 0.000000e+00 : f32
    %601 = vector.shape_cast %600 : vector<16x1xf32> to vector<16x1xf32>
    %602 = vector.broadcast %601 : vector<16x1xf32> to vector<16x16xf32>
    %603 = vector.broadcast %cst_104 : f32 to vector<16x16xf32>
    %604 = arith.select %599, %602, %603 : vector<16x16xi1>, vector<16x16xf32>
    %605 = arith.addf %595, %604 : vector<16x16xf32>
    %606 = vector.extract_strided_slice %104 {offsets = [0, 11], sizes = [16, 1], strides = [1, 1]} : vector<16x16xf32> to vector<16x1xf32>
    %607 = vector.broadcast %606 : vector<16x1xf32> to vector<16x16xf32>
    %608 = vector.broadcast %449 : vector<1x16xf32> to vector<16x16xf32>
    %609 = arith.cmpf oeq, %607, %608 : vector<16x16xf32>
    %610 = vector.extract_strided_slice %95 {offsets = [0, 11], sizes = [16, 1], strides = [1, 1]} : vector<16x16xf32> to vector<16x1xf32>
    %cst_105 = arith.constant 0.000000e+00 : f32
    %611 = vector.shape_cast %610 : vector<16x1xf32> to vector<16x1xf32>
    %612 = vector.broadcast %611 : vector<16x1xf32> to vector<16x16xf32>
    %613 = vector.broadcast %cst_105 : f32 to vector<16x16xf32>
    %614 = arith.select %609, %612, %613 : vector<16x16xi1>, vector<16x16xf32>
    %615 = arith.addf %605, %614 : vector<16x16xf32>
    %616 = vector.extract_strided_slice %450 {offsets = [0, 32], sizes = [16, 32], strides = [1, 1]} : vector<16x128xf32> to vector<16x32xf32>
    %cst_106 = arith.constant dense<0.000000e+00> : vector<16x32xf32>
    %617 = tpu.matmul %615, %616, %cst_106 {dimension_numbers = #tpu.dot_dimension_numbers<[1], [0], [0], [1], [0, 0, 1, 1], [], []>} : vector<16x16xf32>, vector<16x32xf32>, vector<16x32xf32> -> vector<16x32xf32>
    %618 = arith.addf %279, %617 : vector<16x32xf32>
    %cst_107 = arith.constant 0.000000e+00 : f32
    %619 = vector.broadcast %cst_107 : f32 to vector<16x16xf32>
    %620 = vector.extract_strided_slice %98 {offsets = [0, 12], sizes = [16, 1], strides = [1, 1]} : vector<16x16xf32> to vector<16x1xf32>
    %621 = vector.broadcast %620 : vector<16x1xf32> to vector<16x16xf32>
    %622 = vector.broadcast %449 : vector<1x16xf32> to vector<16x16xf32>
    %623 = arith.cmpf oeq, %621, %622 : vector<16x16xf32>
    %624 = vector.extract_strided_slice %73 {offsets = [0, 12], sizes = [16, 1], strides = [1, 1]} : vector<16x16xf32> to vector<16x1xf32>
    %cst_108 = arith.constant 0.000000e+00 : f32
    %625 = vector.shape_cast %624 : vector<16x1xf32> to vector<16x1xf32>
    %626 = vector.broadcast %625 : vector<16x1xf32> to vector<16x16xf32>
    %627 = vector.broadcast %cst_108 : f32 to vector<16x16xf32>
    %628 = arith.select %623, %626, %627 : vector<16x16xi1>, vector<16x16xf32>
    %629 = arith.addf %619, %628 : vector<16x16xf32>
    %630 = vector.extract_strided_slice %100 {offsets = [0, 12], sizes = [16, 1], strides = [1, 1]} : vector<16x16xf32> to vector<16x1xf32>
    %631 = vector.broadcast %630 : vector<16x1xf32> to vector<16x16xf32>
    %632 = vector.broadcast %449 : vector<1x16xf32> to vector<16x16xf32>
    %633 = arith.cmpf oeq, %631, %632 : vector<16x16xf32>
    %634 = vector.extract_strided_slice %81 {offsets = [0, 12], sizes = [16, 1], strides = [1, 1]} : vector<16x16xf32> to vector<16x1xf32>
    %cst_109 = arith.constant 0.000000e+00 : f32
    %635 = vector.shape_cast %634 : vector<16x1xf32> to vector<16x1xf32>
    %636 = vector.broadcast %635 : vector<16x1xf32> to vector<16x16xf32>
    %637 = vector.broadcast %cst_109 : f32 to vector<16x16xf32>
    %638 = arith.select %633, %636, %637 : vector<16x16xi1>, vector<16x16xf32>
    %639 = arith.addf %629, %638 : vector<16x16xf32>
    %640 = vector.extract_strided_slice %102 {offsets = [0, 12], sizes = [16, 1], strides = [1, 1]} : vector<16x16xf32> to vector<16x1xf32>
    %641 = vector.broadcast %640 : vector<16x1xf32> to vector<16x16xf32>
    %642 = vector.broadcast %449 : vector<1x16xf32> to vector<16x16xf32>
    %643 = arith.cmpf oeq, %641, %642 : vector<16x16xf32>
    %644 = vector.extract_strided_slice %89 {offsets = [0, 12], sizes = [16, 1], strides = [1, 1]} : vector<16x16xf32> to vector<16x1xf32>
    %cst_110 = arith.constant 0.000000e+00 : f32
    %645 = vector.shape_cast %644 : vector<16x1xf32> to vector<16x1xf32>
    %646 = vector.broadcast %645 : vector<16x1xf32> to vector<16x16xf32>
    %647 = vector.broadcast %cst_110 : f32 to vector<16x16xf32>
    %648 = arith.select %643, %646, %647 : vector<16x16xi1>, vector<16x16xf32>
    %649 = arith.addf %639, %648 : vector<16x16xf32>
    %650 = vector.extract_strided_slice %104 {offsets = [0, 12], sizes = [16, 1], strides = [1, 1]} : vector<16x16xf32> to vector<16x1xf32>
    %651 = vector.broadcast %650 : vector<16x1xf32> to vector<16x16xf32>
    %652 = vector.broadcast %449 : vector<1x16xf32> to vector<16x16xf32>
    %653 = arith.cmpf oeq, %651, %652 : vector<16x16xf32>
    %654 = vector.extract_strided_slice %95 {offsets = [0, 12], sizes = [16, 1], strides = [1, 1]} : vector<16x16xf32> to vector<16x1xf32>
    %cst_111 = arith.constant 0.000000e+00 : f32
    %655 = vector.shape_cast %654 : vector<16x1xf32> to vector<16x1xf32>
    %656 = vector.broadcast %655 : vector<16x1xf32> to vector<16x16xf32>
    %657 = vector.broadcast %cst_111 : f32 to vector<16x16xf32>
    %658 = arith.select %653, %656, %657 : vector<16x16xi1>, vector<16x16xf32>
    %659 = arith.addf %649, %658 : vector<16x16xf32>
    %660 = vector.extract_strided_slice %98 {offsets = [0, 13], sizes = [16, 1], strides = [1, 1]} : vector<16x16xf32> to vector<16x1xf32>
    %661 = vector.broadcast %660 : vector<16x1xf32> to vector<16x16xf32>
    %662 = vector.broadcast %449 : vector<1x16xf32> to vector<16x16xf32>
    %663 = arith.cmpf oeq, %661, %662 : vector<16x16xf32>
    %664 = vector.extract_strided_slice %73 {offsets = [0, 13], sizes = [16, 1], strides = [1, 1]} : vector<16x16xf32> to vector<16x1xf32>
    %cst_112 = arith.constant 0.000000e+00 : f32
    %665 = vector.shape_cast %664 : vector<16x1xf32> to vector<16x1xf32>
    %666 = vector.broadcast %665 : vector<16x1xf32> to vector<16x16xf32>
    %667 = vector.broadcast %cst_112 : f32 to vector<16x16xf32>
    %668 = arith.select %663, %666, %667 : vector<16x16xi1>, vector<16x16xf32>
    %669 = arith.addf %659, %668 : vector<16x16xf32>
    %670 = vector.extract_strided_slice %100 {offsets = [0, 13], sizes = [16, 1], strides = [1, 1]} : vector<16x16xf32> to vector<16x1xf32>
    %671 = vector.broadcast %670 : vector<16x1xf32> to vector<16x16xf32>
    %672 = vector.broadcast %449 : vector<1x16xf32> to vector<16x16xf32>
    %673 = arith.cmpf oeq, %671, %672 : vector<16x16xf32>
    %674 = vector.extract_strided_slice %81 {offsets = [0, 13], sizes = [16, 1], strides = [1, 1]} : vector<16x16xf32> to vector<16x1xf32>
    %cst_113 = arith.constant 0.000000e+00 : f32
    %675 = vector.shape_cast %674 : vector<16x1xf32> to vector<16x1xf32>
    %676 = vector.broadcast %675 : vector<16x1xf32> to vector<16x16xf32>
    %677 = vector.broadcast %cst_113 : f32 to vector<16x16xf32>
    %678 = arith.select %673, %676, %677 : vector<16x16xi1>, vector<16x16xf32>
    %679 = arith.addf %669, %678 : vector<16x16xf32>
    %680 = vector.extract_strided_slice %102 {offsets = [0, 13], sizes = [16, 1], strides = [1, 1]} : vector<16x16xf32> to vector<16x1xf32>
    %681 = vector.broadcast %680 : vector<16x1xf32> to vector<16x16xf32>
    %682 = vector.broadcast %449 : vector<1x16xf32> to vector<16x16xf32>
    %683 = arith.cmpf oeq, %681, %682 : vector<16x16xf32>
    %684 = vector.extract_strided_slice %89 {offsets = [0, 13], sizes = [16, 1], strides = [1, 1]} : vector<16x16xf32> to vector<16x1xf32>
    %cst_114 = arith.constant 0.000000e+00 : f32
    %685 = vector.shape_cast %684 : vector<16x1xf32> to vector<16x1xf32>
    %686 = vector.broadcast %685 : vector<16x1xf32> to vector<16x16xf32>
    %687 = vector.broadcast %cst_114 : f32 to vector<16x16xf32>
    %688 = arith.select %683, %686, %687 : vector<16x16xi1>, vector<16x16xf32>
    %689 = arith.addf %679, %688 : vector<16x16xf32>
    %690 = vector.extract_strided_slice %104 {offsets = [0, 13], sizes = [16, 1], strides = [1, 1]} : vector<16x16xf32> to vector<16x1xf32>
    %691 = vector.broadcast %690 : vector<16x1xf32> to vector<16x16xf32>
    %692 = vector.broadcast %449 : vector<1x16xf32> to vector<16x16xf32>
    %693 = arith.cmpf oeq, %691, %692 : vector<16x16xf32>
    %694 = vector.extract_strided_slice %95 {offsets = [0, 13], sizes = [16, 1], strides = [1, 1]} : vector<16x16xf32> to vector<16x1xf32>
    %cst_115 = arith.constant 0.000000e+00 : f32
    %695 = vector.shape_cast %694 : vector<16x1xf32> to vector<16x1xf32>
    %696 = vector.broadcast %695 : vector<16x1xf32> to vector<16x16xf32>
    %697 = vector.broadcast %cst_115 : f32 to vector<16x16xf32>
    %698 = arith.select %693, %696, %697 : vector<16x16xi1>, vector<16x16xf32>
    %699 = arith.addf %689, %698 : vector<16x16xf32>
    %700 = vector.extract_strided_slice %450 {offsets = [0, 64], sizes = [16, 32], strides = [1, 1]} : vector<16x128xf32> to vector<16x32xf32>
    %cst_116 = arith.constant dense<0.000000e+00> : vector<16x32xf32>
    %701 = tpu.matmul %699, %700, %cst_116 {dimension_numbers = #tpu.dot_dimension_numbers<[1], [0], [0], [1], [0, 0, 1, 1], [], []>} : vector<16x16xf32>, vector<16x32xf32>, vector<16x32xf32> -> vector<16x32xf32>
    %702 = arith.addf %363, %701 : vector<16x32xf32>
    %cst_117 = arith.constant 0.000000e+00 : f32
    %703 = vector.broadcast %cst_117 : f32 to vector<16x16xf32>
    %704 = vector.extract_strided_slice %98 {offsets = [0, 14], sizes = [16, 1], strides = [1, 1]} : vector<16x16xf32> to vector<16x1xf32>
    %705 = vector.broadcast %704 : vector<16x1xf32> to vector<16x16xf32>
    %706 = vector.broadcast %449 : vector<1x16xf32> to vector<16x16xf32>
    %707 = arith.cmpf oeq, %705, %706 : vector<16x16xf32>
    %708 = vector.extract_strided_slice %73 {offsets = [0, 14], sizes = [16, 1], strides = [1, 1]} : vector<16x16xf32> to vector<16x1xf32>
    %cst_118 = arith.constant 0.000000e+00 : f32
    %709 = vector.shape_cast %708 : vector<16x1xf32> to vector<16x1xf32>
    %710 = vector.broadcast %709 : vector<16x1xf32> to vector<16x16xf32>
    %711 = vector.broadcast %cst_118 : f32 to vector<16x16xf32>
    %712 = arith.select %707, %710, %711 : vector<16x16xi1>, vector<16x16xf32>
    %713 = arith.addf %703, %712 : vector<16x16xf32>
    %714 = vector.extract_strided_slice %100 {offsets = [0, 14], sizes = [16, 1], strides = [1, 1]} : vector<16x16xf32> to vector<16x1xf32>
    %715 = vector.broadcast %714 : vector<16x1xf32> to vector<16x16xf32>
    %716 = vector.broadcast %449 : vector<1x16xf32> to vector<16x16xf32>
    %717 = arith.cmpf oeq, %715, %716 : vector<16x16xf32>
    %718 = vector.extract_strided_slice %81 {offsets = [0, 14], sizes = [16, 1], strides = [1, 1]} : vector<16x16xf32> to vector<16x1xf32>
    %cst_119 = arith.constant 0.000000e+00 : f32
    %719 = vector.shape_cast %718 : vector<16x1xf32> to vector<16x1xf32>
    %720 = vector.broadcast %719 : vector<16x1xf32> to vector<16x16xf32>
    %721 = vector.broadcast %cst_119 : f32 to vector<16x16xf32>
    %722 = arith.select %717, %720, %721 : vector<16x16xi1>, vector<16x16xf32>
    %723 = arith.addf %713, %722 : vector<16x16xf32>
    %724 = vector.extract_strided_slice %102 {offsets = [0, 14], sizes = [16, 1], strides = [1, 1]} : vector<16x16xf32> to vector<16x1xf32>
    %725 = vector.broadcast %724 : vector<16x1xf32> to vector<16x16xf32>
    %726 = vector.broadcast %449 : vector<1x16xf32> to vector<16x16xf32>
    %727 = arith.cmpf oeq, %725, %726 : vector<16x16xf32>
    %728 = vector.extract_strided_slice %89 {offsets = [0, 14], sizes = [16, 1], strides = [1, 1]} : vector<16x16xf32> to vector<16x1xf32>
    %cst_120 = arith.constant 0.000000e+00 : f32
    %729 = vector.shape_cast %728 : vector<16x1xf32> to vector<16x1xf32>
    %730 = vector.broadcast %729 : vector<16x1xf32> to vector<16x16xf32>
    %731 = vector.broadcast %cst_120 : f32 to vector<16x16xf32>
    %732 = arith.select %727, %730, %731 : vector<16x16xi1>, vector<16x16xf32>
    %733 = arith.addf %723, %732 : vector<16x16xf32>
    %734 = vector.extract_strided_slice %104 {offsets = [0, 14], sizes = [16, 1], strides = [1, 1]} : vector<16x16xf32> to vector<16x1xf32>
    %735 = vector.broadcast %734 : vector<16x1xf32> to vector<16x16xf32>
    %736 = vector.broadcast %449 : vector<1x16xf32> to vector<16x16xf32>
    %737 = arith.cmpf oeq, %735, %736 : vector<16x16xf32>
    %738 = vector.extract_strided_slice %95 {offsets = [0, 14], sizes = [16, 1], strides = [1, 1]} : vector<16x16xf32> to vector<16x1xf32>
    %cst_121 = arith.constant 0.000000e+00 : f32
    %739 = vector.shape_cast %738 : vector<16x1xf32> to vector<16x1xf32>
    %740 = vector.broadcast %739 : vector<16x1xf32> to vector<16x16xf32>
    %741 = vector.broadcast %cst_121 : f32 to vector<16x16xf32>
    %742 = arith.select %737, %740, %741 : vector<16x16xi1>, vector<16x16xf32>
    %743 = arith.addf %733, %742 : vector<16x16xf32>
    %744 = vector.extract_strided_slice %98 {offsets = [0, 15], sizes = [16, 1], strides = [1, 1]} : vector<16x16xf32> to vector<16x1xf32>
    %745 = vector.broadcast %744 : vector<16x1xf32> to vector<16x16xf32>
    %746 = vector.broadcast %449 : vector<1x16xf32> to vector<16x16xf32>
    %747 = arith.cmpf oeq, %745, %746 : vector<16x16xf32>
    %748 = vector.extract_strided_slice %73 {offsets = [0, 15], sizes = [16, 1], strides = [1, 1]} : vector<16x16xf32> to vector<16x1xf32>
    %cst_122 = arith.constant 0.000000e+00 : f32
    %749 = vector.shape_cast %748 : vector<16x1xf32> to vector<16x1xf32>
    %750 = vector.broadcast %749 : vector<16x1xf32> to vector<16x16xf32>
    %751 = vector.broadcast %cst_122 : f32 to vector<16x16xf32>
    %752 = arith.select %747, %750, %751 : vector<16x16xi1>, vector<16x16xf32>
    %753 = arith.addf %743, %752 : vector<16x16xf32>
    %754 = vector.extract_strided_slice %100 {offsets = [0, 15], sizes = [16, 1], strides = [1, 1]} : vector<16x16xf32> to vector<16x1xf32>
    %755 = vector.broadcast %754 : vector<16x1xf32> to vector<16x16xf32>
    %756 = vector.broadcast %449 : vector<1x16xf32> to vector<16x16xf32>
    %757 = arith.cmpf oeq, %755, %756 : vector<16x16xf32>
    %758 = vector.extract_strided_slice %81 {offsets = [0, 15], sizes = [16, 1], strides = [1, 1]} : vector<16x16xf32> to vector<16x1xf32>
    %cst_123 = arith.constant 0.000000e+00 : f32
    %759 = vector.shape_cast %758 : vector<16x1xf32> to vector<16x1xf32>
    %760 = vector.broadcast %759 : vector<16x1xf32> to vector<16x16xf32>
    %761 = vector.broadcast %cst_123 : f32 to vector<16x16xf32>
    %762 = arith.select %757, %760, %761 : vector<16x16xi1>, vector<16x16xf32>
    %763 = arith.addf %753, %762 : vector<16x16xf32>
    %764 = vector.extract_strided_slice %102 {offsets = [0, 15], sizes = [16, 1], strides = [1, 1]} : vector<16x16xf32> to vector<16x1xf32>
    %765 = vector.broadcast %764 : vector<16x1xf32> to vector<16x16xf32>
    %766 = vector.broadcast %449 : vector<1x16xf32> to vector<16x16xf32>
    %767 = arith.cmpf oeq, %765, %766 : vector<16x16xf32>
    %768 = vector.extract_strided_slice %89 {offsets = [0, 15], sizes = [16, 1], strides = [1, 1]} : vector<16x16xf32> to vector<16x1xf32>
    %cst_124 = arith.constant 0.000000e+00 : f32
    %769 = vector.shape_cast %768 : vector<16x1xf32> to vector<16x1xf32>
    %770 = vector.broadcast %769 : vector<16x1xf32> to vector<16x16xf32>
    %771 = vector.broadcast %cst_124 : f32 to vector<16x16xf32>
    %772 = arith.select %767, %770, %771 : vector<16x16xi1>, vector<16x16xf32>
    %773 = arith.addf %763, %772 : vector<16x16xf32>
    %774 = vector.extract_strided_slice %104 {offsets = [0, 15], sizes = [16, 1], strides = [1, 1]} : vector<16x16xf32> to vector<16x1xf32>
    %775 = vector.broadcast %774 : vector<16x1xf32> to vector<16x16xf32>
    %776 = vector.broadcast %449 : vector<1x16xf32> to vector<16x16xf32>
    %777 = arith.cmpf oeq, %775, %776 : vector<16x16xf32>
    %778 = vector.extract_strided_slice %95 {offsets = [0, 15], sizes = [16, 1], strides = [1, 1]} : vector<16x16xf32> to vector<16x1xf32>
    %cst_125 = arith.constant 0.000000e+00 : f32
    %779 = vector.shape_cast %778 : vector<16x1xf32> to vector<16x1xf32>
    %780 = vector.broadcast %779 : vector<16x1xf32> to vector<16x16xf32>
    %781 = vector.broadcast %cst_125 : f32 to vector<16x16xf32>
    %782 = arith.select %777, %780, %781 : vector<16x16xi1>, vector<16x16xf32>
    %783 = arith.addf %773, %782 : vector<16x16xf32>
    %784 = vector.extract_strided_slice %450 {offsets = [0, 96], sizes = [16, 32], strides = [1, 1]} : vector<16x128xf32> to vector<16x32xf32>
    %cst_126 = arith.constant dense<0.000000e+00> : vector<16x32xf32>
    %785 = tpu.matmul %783, %784, %cst_126 {dimension_numbers = #tpu.dot_dimension_numbers<[1], [0], [0], [1], [0, 0, 1, 1], [], []>} : vector<16x16xf32>, vector<16x32xf32>, vector<16x32xf32> -> vector<16x32xf32>
    %786 = arith.addf %447, %785 : vector<16x32xf32>
    %c0_127 = arith.constant 0 : index
    %c0_128 = arith.constant 0 : index
    %787 = vector.load %arg22[%c0_127, %c0_128] : memref<16x128xf32, #tpu.memory_space<vmem>>, vector<16x32xf32>
    tpu.vector_store %arg22[%c0_127, %c0_128], %534 {strides = array<i32>} : memref<16x128xf32, #tpu.memory_space<vmem>>, vector<16x32xf32>,
    %c0_129 = arith.constant 0 : index
    %c32 = arith.constant 32 : index
    %788 = vector.load %arg22[%c0_129, %c32] : memref<16x128xf32, #tpu.memory_space<vmem>>, vector<16x32xf32>
    tpu.vector_store %arg22[%c0_129, %c32], %618 {strides = array<i32>} : memref<16x128xf32, #tpu.memory_space<vmem>>, vector<16x32xf32>,
    %c0_130 = arith.constant 0 : index
    %c64 = arith.constant 64 : index
    %789 = vector.load %arg22[%c0_130, %c64] : memref<16x128xf32, #tpu.memory_space<vmem>>, vector<16x32xf32>
    tpu.vector_store %arg22[%c0_130, %c64], %702 {strides = array<i32>} : memref<16x128xf32, #tpu.memory_space<vmem>>, vector<16x32xf32>,
    %c0_131 = arith.constant 0 : index
    %c96 = arith.constant 96 : index
    %790 = vector.load %arg22[%c0_131, %c96] : memref<16x128xf32, #tpu.memory_space<vmem>>, vector<16x32xf32>
    tpu.vector_store %arg22[%c0_131, %c96], %786 {strides = array<i32>} : memref<16x128xf32, #tpu.memory_space<vmem>>, vector<16x32xf32>,
    %c0_132 = arith.constant 0 : index
    %c0_133 = arith.constant 0 : index
    %791 = vector.load %arg22[%c0_132, %c0_133] : memref<16x128xf32, #tpu.memory_space<vmem>>, vector<16x128xf32>
    %c0_134 = arith.constant 0 : index
    %c0_135 = arith.constant 0 : index
    %792 = vector.load %arg14[%c0_134, %c0_135] : memref<1x128xf32, #tpu.memory_space<vmem>>, vector<1x128xf32>
    %793 = vector.broadcast %792 : vector<1x128xf32> to vector<16x128xf32>
    %794 = arith.addf %1, %793 : vector<16x128xf32>
    %c0_136 = arith.constant 0 : index
    %c0_137 = arith.constant 0 : index
    %795 = vector.load %arg13[%c0_136, %c0_137] : memref<128x128xf32, #tpu.memory_space<vmem>>, vector<128x128xf32>
    %cst_138 = arith.constant dense<0.000000e+00> : vector<16x128xf32>
    %796 = tpu.matmul %791, %795, %cst_138 {dimension_numbers = #tpu.dot_dimension_numbers<[1], [0], [0], [1], [0, 0, 1, 1], [], []>} : vector<16x128xf32>, vector<128x128xf32>, vector<16x128xf32> -> vector<16x128xf32>
    %797 = arith.addf %794, %796 : vector<16x128xf32>
    %c0_139 = arith.constant 0 : index
    %c0_140 = arith.constant 0 : index
    %798 = vector.load %arg15[%c0_139, %c0_140] : memref<1x128xf32, #tpu.memory_space<vmem>>, vector<1x128xf32>
    %c0_141 = arith.constant 0 : index
    %c0_142 = arith.constant 0 : index
    %799 = vector.load %arg16[%c0_141, %c0_142] : memref<1x128xf32, #tpu.memory_space<vmem>>, vector<1x128xf32>
    %cst_143 = arith.constant dense<0.000000e+00> : vector<16xf32>
    %800 = vector.multi_reduction <add>, %797, %cst_143 [1] : vector<16x128xf32> to vector<16xf32>
    %801 = vector.shape_cast %800 : vector<16xf32> to vector<16x1xf32>
    %cst_144 = arith.constant 1.280000e+02 : f32
    %802 = vector.broadcast %cst_144 : f32 to vector<16x1xf32>
    %803 = arith.divf %801, %802 : vector<16x1xf32>
    %804 = vector.broadcast %803 : vector<16x1xf32> to vector<16x128xf32>
    %805 = arith.subf %797, %804 : vector<16x128xf32>
    %806 = arith.mulf %805, %805 : vector<16x128xf32>
    %cst_145 = arith.constant dense<0.000000e+00> : vector<16xf32>
    %807 = vector.multi_reduction <add>, %806, %cst_145 [1] : vector<16x128xf32> to vector<16xf32>
    %808 = vector.shape_cast %807 : vector<16xf32> to vector<16x1xf32>
    %cst_146 = arith.constant 1.280000e+02 : f32
    %809 = vector.broadcast %cst_146 : f32 to vector<16x1xf32>
    %810 = arith.divf %808, %809 : vector<16x1xf32>
    %cst_147 = arith.constant 9.99999974E-6 : f32
    %811 = vector.broadcast %cst_147 : f32 to vector<16x1xf32>
    %812 = arith.addf %810, %811 : vector<16x1xf32>
    %813 = math.sqrt %812 : vector<16x1xf32>
    %814 = vector.broadcast %813 : vector<16x1xf32> to vector<16x128xf32>
    %815 = arith.divf %805, %814 : vector<16x128xf32>
    %816 = vector.broadcast %798 : vector<1x128xf32> to vector<16x128xf32>
    %817 = arith.mulf %815, %816 : vector<16x128xf32>
    %818 = vector.broadcast %799 : vector<1x128xf32> to vector<16x128xf32>
    %819 = arith.addf %817, %818 : vector<16x128xf32>
    %c0_148 = arith.constant 0 : index
    %c0_149 = arith.constant 0 : index
    %820 = vector.load %arg17[%c0_148, %c0_149] : memref<128x128xf32, #tpu.memory_space<vmem>>, vector<128x128xf32>
    %cst_150 = arith.constant dense<0.000000e+00> : vector<16x128xf32>
    %821 = tpu.matmul %819, %820, %cst_150 {dimension_numbers = #tpu.dot_dimension_numbers<[1], [0], [0], [1], [0, 0, 1, 1], [], []>} : vector<16x128xf32>, vector<128x128xf32>, vector<16x128xf32> -> vector<16x128xf32>
    %cst_151 = arith.constant 0.000000e+00 : f32
    %822 = vector.broadcast %cst_151 : f32 to vector<16x128xf32>
    %823 = arith.maximumf %821, %822 : vector<16x128xf32>
    %c0_152 = arith.constant 0 : index
    %c0_153 = arith.constant 0 : index
    %824 = vector.load %arg18[%c0_152, %c0_153] : memref<128x128xf32, #tpu.memory_space<vmem>>, vector<128x128xf32>
    %cst_154 = arith.constant dense<0.000000e+00> : vector<16x128xf32>
    %825 = tpu.matmul %823, %824, %cst_154 {dimension_numbers = #tpu.dot_dimension_numbers<[1], [0], [0], [1], [0, 0, 1, 1], [], []>} : vector<16x128xf32>, vector<128x128xf32>, vector<16x128xf32> -> vector<16x128xf32>
    %826 = arith.addf %825, %819 : vector<16x128xf32>
    %c0_155 = arith.constant 0 : index
    %c0_156 = arith.constant 0 : index
    %827 = vector.load %arg19[%c0_155, %c0_156] : memref<1x128xf32, #tpu.memory_space<vmem>>, vector<1x128xf32>
    %c0_157 = arith.constant 0 : index
    %c0_158 = arith.constant 0 : index
    %828 = vector.load %arg20[%c0_157, %c0_158] : memref<1x128xf32, #tpu.memory_space<vmem>>, vector<1x128xf32>
    %cst_159 = arith.constant dense<0.000000e+00> : vector<16xf32>
    %829 = vector.multi_reduction <add>, %826, %cst_159 [1] : vector<16x128xf32> to vector<16xf32>
    %830 = vector.shape_cast %829 : vector<16xf32> to vector<16x1xf32>
    %cst_160 = arith.constant 1.280000e+02 : f32
    %831 = vector.broadcast %cst_160 : f32 to vector<16x1xf32>
    %832 = arith.divf %830, %831 : vector<16x1xf32>
    %833 = vector.broadcast %832 : vector<16x1xf32> to vector<16x128xf32>
    %834 = arith.subf %826, %833 : vector<16x128xf32>
    %835 = arith.mulf %834, %834 : vector<16x128xf32>
    %cst_161 = arith.constant dense<0.000000e+00> : vector<16xf32>
    %836 = vector.multi_reduction <add>, %835, %cst_161 [1] : vector<16x128xf32> to vector<16xf32>
    %837 = vector.shape_cast %836 : vector<16xf32> to vector<16x1xf32>
    %cst_162 = arith.constant 1.280000e+02 : f32
    %838 = vector.broadcast %cst_162 : f32 to vector<16x1xf32>
    %839 = arith.divf %837, %838 : vector<16x1xf32>
    %cst_163 = arith.constant 9.99999974E-6 : f32
    %840 = vector.broadcast %cst_163 : f32 to vector<16x1xf32>
    %841 = arith.addf %839, %840 : vector<16x1xf32>
    %842 = math.sqrt %841 : vector<16x1xf32>
    %843 = vector.broadcast %842 : vector<16x1xf32> to vector<16x128xf32>
    %844 = arith.divf %834, %843 : vector<16x128xf32>
    %845 = vector.broadcast %827 : vector<1x128xf32> to vector<16x128xf32>
    %846 = arith.mulf %844, %845 : vector<16x128xf32>
    %847 = vector.broadcast %828 : vector<1x128xf32> to vector<16x128xf32>
    %848 = arith.addf %846, %847 : vector<16x128xf32>
    %c0_164 = arith.constant 0 : index
    %c0_165 = arith.constant 0 : index
    %c0_166 = arith.constant 0 : index
    %849 = vector.load %arg21[%c0_164, %c0_165, %c0_166] : memref<1x16x128xf32, #tpu.memory_space<vmem>>, vector<1x16x128xf32>
    %850 = vector.shape_cast %849 : vector<1x16x128xf32> to vector<16x128xf32>
    %851 = vector.shape_cast %848 : vector<16x128xf32> to vector<1x16x128xf32>
    tpu.vector_store %arg21[%c0_164, %c0_165, %c0_166], %851 {strides = array<i32>} : memref<1x16x128xf32, #tpu.memory_space<vmem>>, vector<1x16x128xf32>,
    return
  }
  func.func @transform_0(%arg0: i32) -> (i32, i32) {
    %c0_i32 = arith.constant 0 : i32
    %c0_i32_0 = arith.constant 0 : i32
    %c0_i32_1 = arith.constant 0 : i32
    return %c0_i32, %c0_i32_0 : i32, i32
  }
  func.func @transform_1(%arg0: i32) -> (i32, i32, i32) {
    %c0_i32 = arith.constant 0 : i32
    %c0_i32_0 = arith.constant 0 : i32
    %c0_i32_1 = arith.constant 0 : i32
    return %arg0, %c0_i32, %c0_i32_0 : i32, i32, i32
  }
  func.func @transform_2(%arg0: i32) -> (i32, i32, i32) {
    %c0_i32 = arith.constant 0 : i32
    %c0_i32_0 = arith.constant 0 : i32
    %c0_i32_1 = arith.constant 0 : i32
    return %arg0, %c0_i32, %c0_i32_0 : i32, i32, i32
  }
  func.func @transform_3(%arg0: i32) -> (i32, i32, i32) {
    %c0_i32 = arith.constant 0 : i32
    %c0_i32_0 = arith.constant 0 : i32
    %c0_i32_1 = arith.constant 0 : i32
    return %arg0, %c0_i32, %c0_i32_0 : i32, i32, i32
  }
  func.func @transform_4(%arg0: i32) -> (i32, i32, i32) {
    %c0_i32 = arith.constant 0 : i32
    %c0_i32_0 = arith.constant 0 : i32
    %c0_i32_1 = arith.constant 0 : i32
    return %arg0, %c0_i32, %c0_i32_0 : i32, i32, i32
  }
  func.func @transform_5(%arg0: i32) -> (i32, i32, i32) {
    %c0_i32 = arith.constant 0 : i32
    %c0_i32_0 = arith.constant 0 : i32
    %c0_i32_1 = arith.constant 0 : i32
    return %arg0, %c0_i32, %c0_i32_0 : i32, i32, i32
  }
  func.func @transform_6(%arg0: i32) -> (i32, i32) {
    %c0_i32 = arith.constant 0 : i32
    %c0_i32_0 = arith.constant 0 : i32
    %c0_i32_1 = arith.constant 0 : i32
    return %c0_i32, %c0_i32_0 : i32, i32
  }
  func.func @transform_7(%arg0: i32) -> (i32, i32) {
    %c0_i32 = arith.constant 0 : i32
    %c0_i32_0 = arith.constant 0 : i32
    %c0_i32_1 = arith.constant 0 : i32
    return %c0_i32, %c0_i32_0 : i32, i32
  }
  func.func @transform_8(%arg0: i32) -> (i32, i32) {
    %c0_i32 = arith.constant 0 : i32
    %c0_i32_0 = arith.constant 0 : i32
    %c0_i32_1 = arith.constant 0 : i32
    return %c0_i32, %c0_i32_0 : i32, i32
  }
  func.func @transform_9(%arg0: i32) -> (i32, i32) {
    %c0_i32 = arith.constant 0 : i32
    %c0_i32_0 = arith.constant 0 : i32
    %c0_i32_1 = arith.constant 0 : i32
    return %c0_i32, %c0_i32_0 : i32, i32
  }
  func.func @transform_10(%arg0: i32) -> (i32, i32) {
    %c0_i32 = arith.constant 0 : i32
    %c0_i32_0 = arith.constant 0 : i32
    %c0_i32_1 = arith.constant 0 : i32
    return %c0_i32, %c0_i32_0 : i32, i32
  }
  func.func @transform_11(%arg0: i32) -> (i32, i32) {
    %c0_i32 = arith.constant 0 : i32
    %c0_i32_0 = arith.constant 0 : i32
    %c0_i32_1 = arith.constant 0 : i32
    return %c0_i32, %c0_i32_0 : i32, i32
  }
  func.func @transform_12(%arg0: i32) -> (i32, i32) {
    %c0_i32 = arith.constant 0 : i32
    %c0_i32_0 = arith.constant 0 : i32
    %c0_i32_1 = arith.constant 0 : i32
    return %c0_i32, %c0_i32_0 : i32, i32
  }
  func.func @transform_13(%arg0: i32) -> (i32, i32) {
    %c0_i32 = arith.constant 0 : i32
    %c0_i32_0 = arith.constant 0 : i32
    %c0_i32_1 = arith.constant 0 : i32
    return %c0_i32, %c0_i32_0 : i32, i32
  }
  func.func @transform_14(%arg0: i32) -> (i32, i32) {
    %c0_i32 = arith.constant 0 : i32
    %c0_i32_0 = arith.constant 0 : i32
    %c0_i32_1 = arith.constant 0 : i32
    return %c0_i32, %c0_i32_0 : i32, i32
  }
  func.func @transform_15(%arg0: i32) -> (i32, i32) {
    %c0_i32 = arith.constant 0 : i32
    %c0_i32_0 = arith.constant 0 : i32
    %c0_i32_1 = arith.constant 0 : i32
    return %c0_i32, %c0_i32_0 : i32, i32
  }
  func.func @transform_16(%arg0: i32) -> (i32, i32) {
    %c0_i32 = arith.constant 0 : i32
    %c0_i32_0 = arith.constant 0 : i32
    %c0_i32_1 = arith.constant 0 : i32
    return %c0_i32, %c0_i32_0 : i32, i32
  }
  func.func @transform_17(%arg0: i32) -> (i32, i32) {
    %c0_i32 = arith.constant 0 : i32
    %c0_i32_0 = arith.constant 0 : i32
    %c0_i32_1 = arith.constant 0 : i32
    return %c0_i32, %c0_i32_0 : i32, i32
  }
  func.func @transform_18(%arg0: i32) -> (i32, i32) {
    %c0_i32 = arith.constant 0 : i32
    %c0_i32_0 = arith.constant 0 : i32
    %c0_i32_1 = arith.constant 0 : i32
    return %c0_i32, %c0_i32_0 : i32, i32
  }
  func.func @transform_19(%arg0: i32) -> (i32, i32) {
    %c0_i32 = arith.constant 0 : i32
    %c0_i32_0 = arith.constant 0 : i32
    %c0_i32_1 = arith.constant 0 : i32
    return %c0_i32, %c0_i32_0 : i32, i32
  }
  func.func @transform_20(%arg0: i32) -> (i32, i32, i32) {
    %c0_i32 = arith.constant 0 : i32
    %c0_i32_0 = arith.constant 0 : i32
    %c0_i32_1 = arith.constant 0 : i32
    return %arg0, %c0_i32, %c0_i32_0 : i32, i32, i32
  }
}

</mosaic_0001>

<bundles_post_ra>
// kernel: tpu_custom_call.1
= control target key start
LH: loop header
LB: loop body
LE: loop exit
PB: predicated region body
PF: predicated region fallthrough
CT: control target
= control target key end

     0   :  { %s7687_s0 = inlined_call_operand.vmem [shape: f32[16,16], index: 0, kind: input, shape index: {}]   ;;  %s7688_s1 = inlined_call_operand.hbm [shape: f32[2,16,128], index: 1, kind: input, shape index: {}]   ;;  %s7689_s2 = inlined_call_operand.hbm [shape: f32[2,16,128], index: 2, kind: input, shape index: {}]   ;;  %s7690_s3 = inlined_call_operand.vmem [shape: f32[2,80,128], index: 3, kind: input, shape index: {}]   ;;  %s7691_s4 = inlined_call_operand.hbm [shape: f32[2,16,16], index: 4, kind: input, shape index: {}]   ;;  %s7692_s5 = inlined_call_operand.hbm [shape: f32[2,16,16], index: 5, kind: input, shape index: {}]   ;;  %s7693_s6 = inlined_call_operand.hbm [shape: f32[128,128], index: 6, kind: input, shape index: {}]   ;;  %s7694_s7 = inlined_call_operand.vmem [shape: f32[1,128], index: 7, kind: input, shape index: {}]   ;;  %s7695_s8 = inlined_call_operand.vmem [shape: f32[128,48], index: 8, kind: input, shape index: {}]   ;;  %s7696_s9 = inlined_call_operand.vmem [shape: f32[1,48], index: 9, kind: input, shape index: {}]   ;;  %s7697_s10 = inlined_call_operand.vmem [shape: f32[1,16], index: 10, kind: input, shape index: {}]   ;;  %s7698_s11 = inlined_call_operand.vmem [shape: f32[1,16], index: 11, kind: input, shape index: {}]   ;;  %s7699_s12 = inlined_call_operand.hbm [shape: f32[128,128], index: 12, kind: input, shape index: {}]   ;;  %s7700_s13 = inlined_call_operand.vmem [shape: f32[1,128], index: 13, kind: input, shape index: {}]   ;;  %s7701_s14 = inlined_call_operand.vmem [shape: f32[1,128], index: 14, kind: input, shape index: {}]   ;;  %s7702_s15 = inlined_call_operand.vmem [shape: f32[1,128], index: 15, kind: input, shape index: {}]   ;;  %s7703_s16 = inlined_call_operand.hbm [shape: f32[128,128], index: 16, kind: input, shape index: {}]   ;;  %s7704_s17 = inlined_call_operand.hbm [shape: f32[128,128], index: 17, kind: input, shape index: {}]   ;;  %s7705_s18 = inlined_call_operand.vmem [shape: f32[1,128], index: 18, kind: input, shape index: {}]   ;;  %s7706_s19 = inlined_call_operand.vmem [shape: f32[1,128], index: 19, kind: input, shape index: {}]   ;;  %s7707_s20 = inlined_call_operand.hbm [shape: f32[2,16,128], index: 20, kind: output, shape index: {}]  }
   0x1   :  { %7821 = sst [smem:[#allocation174_spill]] %s7687_s0 }
   0x2   :  { %7822 = sst [smem:[#allocation175_spill]] %s7688_s1 }
   0x3   :  { %7823 = sst [smem:[#allocation176_spill]] %s7689_s2 }
   0x4   :  { %7824 = sst [smem:[#allocation177_spill]] %s7690_s3 }
   0x5   :  { %7825 = sst [smem:[#allocation178_spill]] %s7691_s4 }
   0x6   :  { %7826 = sst [smem:[#allocation179_spill]] %s7693_s6 }
   0x7   :  { %7827 = sst [smem:[#allocation180_spill]] %s7694_s7 }
   0x8   :  { %7828 = sst [smem:[#allocation181_spill]] %s7696_s9 }
   0x9   :  { %7829 = sst [smem:[#allocation182_spill]] %s7697_s10 }
   0xa   :  { %7830 = sst [smem:[#allocation183_spill]] %s7698_s11 }
   0xb   :  { %7831 = sst [smem:[#allocation184_spill]] %s7699_s12 }
   0xc   :  { %7832 = sst [smem:[#allocation185_spill]] %s7700_s13 }
   0xd   :  { %7833 = sst [smem:[#allocation186_spill]] %s7701_s14 }
   0xe   :  { %7834 = sst [smem:[#allocation187_spill]] %s7702_s15 }
   0xf   :  { %7835 = sst [smem:[#allocation188_spill]] %s7703_s16 }
  0x10   :  { %7836 = sst [smem:[#allocation189_spill]] %s7704_s17 }
  0x11   :  { %7837 = sst [smem:[#allocation190_spill]] %s7705_s18 }
  0x12   :  { %7838 = sst [smem:[#allocation191_spill]] %s7706_s19 }
  0x13   :  { %7839 = sst [smem:[#allocation192_spill]] %s7707_s20 }
  0x14   :  { %25 = vsyncpa [#allocation4], 0 }
  0x15   :  { %27 = vsyncpa [#allocation4 + $0x1], 0 }
  0x16   :  { %28 = vsyncpa [#allocation7], 0 }
  0x17   :  { %30 = vsyncpa [#allocation7 + $0x1], 0 }
  0x18   :  { %31 = vsyncpa [#allocation10], 0 }
  0x19   :  { %33 = vsyncpa [#allocation10 + $0x1], 0 }
  0x1a   :  { %34 = vsyncpa [#allocation13], 0 }
  0x1b   :  { %35 = vsyncpa [#allocation16], 0 }
  0x1c   :  { %36 = vsyncpa [#allocation5], 0 }
  0x1d   :  { %38 = vsyncpa [#allocation5 + $0x1], 0  ;;  %s5595_s1 = smov 0   ;;  %s5597_s22 = smov 0  }
  0x1e   :  { %s5599_s23 = smov 0   ;;  %s5601_s24 = smov 0  }
  0x1f LB: > { %7840 = sst [smem:[#allocation25_spill]] %s5426_s1  ;;  %s5616_s2 = sadd.s32 4294967295, %s5438_s24   ;;  %s5438_s24 = sphi %s5601_s24, %s8224_s24   ;;  %s5434_s23 = sphi %s5599_s23, %s8228_s23   ;;  %s5430_s22 = sphi %s5597_s22, %s8227_s22   ;;  %s5426_s1 = sphi %s5595_s1, %s8226_s1  }
  0x20   : > { %s4214_s25 = sadd.s32 4294967294, %s5438_s24   ;;  %p85_p0 = scmp.ne.s32.totalorder %s5430_s22, %s5426_s1 }
  0x21   : > { %p7724_p1 = scmp.eq.s32.totalorder %s5616_s2, 0  ;;  %p507_p2 = scmp.eq.s32.totalorder %s5616_s2, 1 }
  0x22   : > { %p513_p3 = scmp.eq.s32.totalorder %s4214_s25, 1  ;;  %p4215_p5 = scmp.ge.s32.totalorder %s5438_s24, 1 }
  0x23   : > { %p5625_p4 = por %p7724_p1, %p85_p0  ;;  %p520_p7 = scmp.lt.s32.totalorder %s5438_s24, 3 }
  0x24   : > { %p5630_p6 = por %p513_p3, %p85_p0  ;;  %s5440_s28 = smov [#allocation11]  }
  0x25   : > { %s7841_s3 = scalar_select %p5625_p4, 1, 0 }
  0x26   : > { %s7842_s26 = scalar_select %p5630_p6, 1, 0 }
  0x27   : > { %p5635_p8 = pnand %p4215_p5, %p520_p7  ;;  %s535_s4 = sshll.u32 %s5440_s28, 4  ;;  %s536_s4 = int_to_ptr.vmem [resolvable:$true] %s535_s4 }
  0x28   : > { %7843 = sst [smem:[#allocation26_spill]] %s7842_s26  ;;  %s5441_s30 = smov [#allocation12]  }
  0x29   : > { %s7844_s27 = scalar_select %p5635_p8, 1, 0 }
  0x2a   : > { %p4772_p9 = pneg %p5635_p8  ;;  %s563_s0 = sshll.u32 %s5441_s30, 4  ;;  %s564_s0 = int_to_ptr.vmem [resolvable:$true] %s563_s0 }
  0x2b   : > { %s5149_s21 = scalar_lea.vmem %s536_s4, 2048  ;;  %p5157_p5 = scmp.lt.s32.totalorder %s536_s4, %s536_s4 }
  0x2c   : > { %p5644_p11 = pnand %p4772_p9, %p7724_p1  ;;  %p5150_p13 = scmp.ne.s32.totalorder %s536_s4, %s5149_s21 }
  0x2d   : > { %p5158_p7 = scmp.lt.s32.totalorder %s5149_s21, %s5149_s21 }
  0x2e   : > { %s7845_s29 = scalar_select %p5644_p11, 1, 0 }
  0x2f   : > { %p7725_p12 = pneg %p5644_p11  ;;  %p5159_p10 = por %p5158_p7, %p5157_p5 }
  0x31   : > { %p5152_p0 = pnand %p5150_p13, %p7725_p12 }
  0x33   : > { %p5153_p3 = pneg %p5152_p0 }
  0x35   : > { %p5160_p9 = pnand %p5159_p10, %p5153_p3 }
  0x37   : > { %5163 = shalt.err (!%p5160_p9)
}
  0x38   : > { %s7715_s25 = smov 128   ;;  %s7717_s28 = smov 8  }
  0x39   : > { %s7846_s6 = sld [smem:[#allocation179_spill]]  ;;  %s5175_s1 = scalar_lea.vmem %s564_s0, 2048 }
  0x3a   : > { %p5176_p13 = scmp.ne.s32.totalorder %s564_s0, %s5175_s1  ;;  %p5183_p10 = scmp.lt.s32.totalorder %s564_s0, %s564_s0 }
  0x3b   : > { %p5184_p3 = scmp.lt.s32.totalorder %s5175_s1, %s5175_s1 }
  0x3c   : > { %p5178_p0 = pnand %p5176_p13, %p7725_p12 }
  0x3d   : > { %p5185_p7 = por %p5184_p3, %p5183_p10 }
  0x3e   : > { %p5179_p5 = pneg %p5178_p0 }
  0x3f   : > { %4775 = dma.hbm_to_vmem [thread:$0]  (!%p5644_p11), %s7846_s6, 2048, %s536_s4, [#allocation10], %s7715_s25, %s7715_s25, %s7717_s28  }
  0x40   : > { %p5186_p9 = pnand %p5185_p7, %p5179_p5 }
  0x42   : > { %5189 = shalt.err (!%p5186_p9)
}
  0x43   : > { %s7847_s12 = sld [smem:[#allocation184_spill]]  ;;  %s5673_s1 = sadd.s32 1, %s5438_s24  }
  0x44   : > { %7848 = sst [smem:[#allocation27_spill]] %s5673_s1  ;;  %s72_s26 = sadd.s32 1, %s5434_s23 }
  0x45   : > { %s69_s4 = ssub.s32 %s5438_s24, %s5673_s1  ;;  %p79_p13 = scmp.ne.s32.totalorder %s5434_s23, %s5430_s22 }
  0x46   : > { %p70_p0 = scmp.eq.s32.totalorder %s69_s4, 0  ;;  %p80_p5 = scmp.eq.s32.totalorder %s5438_s24, 0 }
  0x47   : > { %p5683_p10 = por %p507_p2, %p79_p13  ;;  %p4806_p3 = scmp.lt.s32.totalorder %s5438_s24, 2 }
  0x48   : > { %s5689_s30 = scalar_select %p70_p0, %s5434_s23, %s72_s26  }
  0x49   : > { %4778 = dma.hbm_to_vmem [thread:$0]  (!%p5644_p11), %s7847_s12, 2048, %s564_s0, [#allocation13], %s7715_s25, %s7715_s25, %s7717_s28  }
  0x4a   : > { %s7849_s20 = scalar_select %p5683_p10, 1, 0 }
  0x4b   : > { %7851 = sst [smem:[#allocation29_spill]] %s5689_s30  ;;  %p81_p7 = por %p80_p5, %p79_p13 }
  0x4c   : > { %7850 = sst [smem:[#allocation28_spill]] %s7849_s20  ;;  %s7723_s21 = sand.u32 1, %s5434_s23  }
  0x4d   : > { %s5694_s0 = sshll.u32 %s7723_s21, 4  ;;  %s5697_s25 = sshll.u32 %s5438_s24, 8 }
  0x4e   : > { %p5699_p9 = pnand %p4806_p3, %p81_p7  ;;  %s7726_s28 = sand.u32 1, %s5438_s24  }
  0x4f   : > { %s7853_s1 = sld [smem:[#allocation176_spill]]  ;;  %s643_s21 = scalar_lea.vmem [#allocation6], %s5694_s0 }
  0x50   : > { %s650_s30 = sshll.u32 %s643_s21, 4  ;;  %s5715_s19 = scalar_lea.sflag [#allocation7], %s7726_s28  ;;  %s5711_s30 = int_to_ptr.vmem [resolvable:$true] %s650_s30 }
  0x51   : > { %p5721_p13 = pneg %p5699_p9 }
  0x55   : > { %s7854_s20 = smov %s7853_s1  ;;  %s5708_s26 = scalar_lea.hbm %s7853_s1, %s5697_s25 }
  0x56   : > { %s5190_s18 = scalar_lea.hbm %s5708_s26, 256  ;;  %s5195_s1 = scalar_lea.hbm %s7854_s20, 512 }
  0x57   : > { %p5191_p2 = scmp.ne.s32.totalorder %s5708_s26, %s5190_s18  ;;  %p5196_p3 = scmp.lt.s32.totalorder %s5708_s26, %s7854_s20 }
  0x58   : > { %p5197_p7 = scmp.lt.s32.totalorder %s5195_s1, %s5190_s18 }
  0x59   : > { %p5193_p0 = pnand %p5721_p13, %p5191_p2 }
  0x5a   : > { %p5198_p1 = por %p5197_p7, %p5196_p3 }
  0x5b   : > { %p5194_p5 = pneg %p5193_p0 }
  0x5d   : > { %p5199_p12 = pnand %p5198_p1, %p5194_p5 }
  0x5f   : > { %5202 = shalt.err (!%p5199_p12)
}
  0x60   : > { %s5203_s28 = scalar_lea.vmem %s5711_s30, 256  ;;  %s5444_s13 = smov [#allocation6]  }
  0x61   : > { %p5204_p6 = scmp.ne.s32.totalorder %s5711_s30, %s5203_s28  ;;  %s5208_s6 = sshll.u32 %s5444_s13, 4  ;;  %s5209_s6 = int_to_ptr.vmem [resolvable:$false] %s5208_s6 }
  0x62   : > { %s5210_s12 = scalar_lea.vmem %s5209_s6, 512  ;;  %p5211_p10 = scmp.lt.s32.totalorder %s5711_s30, %s5209_s6 }
  0x63   : > { %p5206_p2 = pnand %p5204_p6, %p5721_p13  ;;  %p5212_p4 = scmp.lt.s32.totalorder %s5210_s12, %s5203_s28 }
  0x65   : > { %p5207_p0 = pneg %p5206_p2  ;;  %p5213_p8 = por %p5212_p4, %p5211_p10 }
  0x67   : > { %p5214_p11 = pnand %p5213_p8, %p5207_p0 }
  0x69   : > { %5217 = shalt.err (!%p5214_p11)
}
  0x6a   : > { %s7856_s14 = smov 8   ;;  %s7857_s18 = smov 128  }
  0x6b   : > { %4791 = dma.hbm_to_vmem [thread:$0]  (!%p5699_p9), %s5708_s26, 256, %s5711_s30, %s5715_s19, %s7857_s18, %s7857_s18, %s7856_s14  }
  0x6c   : > { %s5445_s1 = smov [#allocation14]   ;;  %s5446_s13 = smov [#allocation15]  }
  0x6d   : > { %s585_s21 = sshll.u32 %s5445_s1, 4  ;;  %s598_s20 = sshll.u32 %s5446_s13, 4  ;;  %s586_s21 = int_to_ptr.vmem [resolvable:$true] %s585_s21  ;;  %s599_s20 = int_to_ptr.vmem [resolvable:$true] %s598_s20 }
  0x6e   : > { %s5229_s6 = scalar_lea.vmem %s586_s21, 2048  ;;  %p7858_p4 = scmp.ne.s32.totalorder %s7845_s29, 0 }
  0x6f   : > { %p5230_p1 = scmp.ne.s32.totalorder %s586_s21, %s5229_s6  ;;  %p5237_p12 = scmp.lt.s32.totalorder %s586_s21, %s586_s21 }
  0x70   : > { %p7859_p6 = pneg %p7858_p4  ;;  %p5238_p10 = scmp.lt.s32.totalorder %s5229_s6, %s5229_s6 }
  0x72   : > { %p5232_p8 = pnand %p5230_p1, %p7859_p6  ;;  %p5239_p5 = por %p5238_p10, %p5237_p12 }
  0x74   : > { %p5233_p11 = pneg %p5232_p8 }
  0x76   : > { %p5240_p3 = pnand %p5239_p5, %p5233_p11 }
  0x78   : > { %5243 = shalt.err (!%p5240_p3)
}
  0x79   : > { %s7860_s16 = sld [smem:[#allocation188_spill]]  ;;  %s5255_s26 = scalar_lea.vmem %s599_s20, 2048 }
  0x7a   : > { %p5256_p7 = scmp.ne.s32.totalorder %s599_s20, %s5255_s26  ;;  %p7861_p2 = pmov %p7859_p6 }
  0x7b   : > { %p5263_p6 = scmp.lt.s32.totalorder %s599_s20, %s599_s20  ;;  %p5264_p8 = scmp.lt.s32.totalorder %s5255_s26, %s5255_s26 }
  0x7c   : > { %p5258_p0 = pnand %p5256_p7, %p7861_p2 }
  0x7d   : > { %p5265_p11 = por %p5264_p8, %p5263_p6 }
  0x7e   : > { %p5259_p1 = pneg %p5258_p0 }
  0x7f   : > { %4781 = dma.hbm_to_vmem [thread:$0]  (!%p7858_p4), %s7860_s16, 2048, %s586_s21, [#allocation13], %s7857_s18, %s7857_s18, %s7856_s14  }
  0x80   : > { %p5266_p12 = pnand %p5265_p11, %p5259_p1 }
  0x82   : > { %5269 = shalt.err (!%p5266_p12)
}
  0x83   : > { %s7862_s17 = sld [smem:[#allocation189_spill]]  ;;  %s622_s29 = scalar_lea.vmem [#allocation3], %s5694_s0 }
  0x84   : > { %s7863_s6 = sld [smem:[#allocation175_spill]]  ;;  %s629_s30 = sshll.u32 %s622_s29, 4  ;;  %s5776_s30 = int_to_ptr.vmem [resolvable:$true] %s629_s30 }
  0x85   : > { %s7864_s1 = sld [smem:[#allocation178_spill]]  ;;  %s7866_s10 = sand.u32 1, %s5434_s23  }
  0x86   : > { %s619_s9 = scalar_lea.sflag [#allocation4], %s7866_s10 }
  0x89   : > { %4784 = dma.hbm_to_vmem [thread:$0]  (!%p7858_p4), %s7862_s17, 2048, %s599_s20, [#allocation16], %s7857_s18, %s7857_s18, %s7856_s14  }
  0x8a   : > { %s5773_s28 = scalar_lea.hbm %s7863_s6, %s5697_s25  ;;  %s5275_s17 = scalar_lea.hbm %s7863_s6, 512 }
  0x8b   : > { %s7865_s16 = smov %s7864_s1  ;;  %s5782_s11 = scalar_lea.hbm %s7864_s1, %s5697_s25 }
  0x8c   : > { %s5270_s20 = scalar_lea.hbm %s5773_s28, 256  ;;  %p5276_p3 = scmp.lt.s32.totalorder %s5773_s28, %s7863_s6 }
  0x8d   : > { %p5271_p4 = scmp.ne.s32.totalorder %s5773_s28, %s5270_s20  ;;  %p5277_p7 = scmp.lt.s32.totalorder %s5275_s17, %s5270_s20 }
  0x8f   : > { %p5273_p10 = pnand %p5271_p4, %p5721_p13  ;;  %p5278_p2 = por %p5277_p7, %p5276_p3 }
  0x91   : > { %p5274_p5 = pneg %p5273_p10 }
  0x93   : > { %p5279_p0 = pnand %p5278_p2, %p5274_p5 }
  0x95   : > { %5282 = shalt.err (!%p5279_p0)
}
  0x96   : > { %s5283_s10 = scalar_lea.vmem %s5776_s30, 256  ;;  %s5447_s26 = smov [#allocation3]  }
  0x97   : > { %p5284_p1 = scmp.ne.s32.totalorder %s5776_s30, %s5283_s10  ;;  %s5288_s12 = sshll.u32 %s5447_s26, 4  ;;  %s5289_s12 = int_to_ptr.vmem [resolvable:$false] %s5288_s12 }
  0x98   : > { %s5290_s1 = scalar_lea.vmem %s5289_s12, 512  ;;  %p5291_p11 = scmp.lt.s32.totalorder %s5776_s30, %s5289_s12 }
  0x99   : > { %p5286_p6 = pnand %p5284_p1, %p5721_p13  ;;  %p5292_p12 = scmp.lt.s32.totalorder %s5290_s1, %s5283_s10 }
  0x9b   : > { %p5287_p8 = pneg %p5286_p6  ;;  %p5293_p4 = por %p5292_p12, %p5291_p11 }
  0x9d   : > { %p5294_p10 = pnand %p5293_p4, %p5287_p8 }
  0x9f   : > { %5297 = shalt.err (!%p5294_p10)
}
  0xa0   : > { %4788 = dma.hbm_to_vmem [thread:$0]  (!%p5699_p9), %s5773_s28, 256, %s5776_s30, %s619_s9, %s7857_s18, %s7857_s18, %s7856_s14  }
  0xa1   : > { %s672_s7 = scalar_lea.vmem [#allocation8], %s5694_s0  ;;  %s5816_s13 = scalar_lea.hbm %s7692_s5, %s5697_s25 }
  0xa2   : > { %s679_s17 = sshll.u32 %s672_s7, 4  ;;  %s5298_s29 = scalar_lea.hbm %s5782_s11, 256  ;;  %s5810_s17 = int_to_ptr.vmem [resolvable:$true] %s679_s17 }
  0xa3   : > { %p5299_p5 = scmp.ne.s32.totalorder %s5782_s11, %s5298_s29  ;;  %s5303_s12 = scalar_lea.hbm %s7865_s16, 512 }
  0xa4   : > { %p5304_p2 = scmp.lt.s32.totalorder %s5782_s11, %s7865_s16  ;;  %p5305_p0 = scmp.lt.s32.totalorder %s5303_s12, %s5298_s29 }
  0xa5   : > { %p5301_p3 = pnand %p5299_p5, %p5721_p13 }
  0xa6   : > { %p5306_p1 = por %p5305_p0, %p5304_p2 }
  0xa7   : > { %p5302_p7 = pneg %p5301_p3 }
  0xa9   : > { %p5307_p6 = pnand %p5306_p1, %p5302_p7 }
  0xab   : > { %5310 = shalt.err (!%p5307_p6)
}
  0xac   : > { %s5311_s25 = scalar_lea.vmem %s5810_s17, 256  ;;  %s5448_s28 = smov [#allocation8]  }
  0xad   : > { %p5312_p8 = scmp.ne.s32.totalorder %s5810_s17, %s5311_s25  ;;  %s5316_s30 = sshll.u32 %s5448_s28, 4  ;;  %s5317_s30 = int_to_ptr.vmem [resolvable:$false] %s5316_s30 }
  0xae   : > { %s5318_s7 = scalar_lea.vmem %s5317_s30, 512  ;;  %p5319_p4 = scmp.lt.s32.totalorder %s5810_s17, %s5317_s30 }
  0xaf   : > { %p5314_p11 = pnand %p5312_p8, %p5721_p13  ;;  %p5320_p10 = scmp.lt.s32.totalorder %s5318_s7, %s5311_s25 }
  0xb1   : > { %p5315_p12 = pneg %p5314_p11  ;;  %p5321_p5 = por %p5320_p10, %p5319_p4 }
  0xb3   : > { %p5322_p3 = pnand %p5321_p5, %p5315_p12 }
  0xb5   : > { %5325 = shalt.err (!%p5322_p3)
}
  0xb6   : > { %4794 = dma.hbm_to_vmem [thread:$0]  (!%p5699_p9), %s5782_s11, 256, %s5810_s17, %s5715_s19, %s7857_s18, %s7857_s18, %s7856_s14  }
  0xb7   : > { %s693_s20 = scalar_lea.vmem [#allocation9], %s5694_s0  ;;  %s7867_s29 = sand.u32 1, %s5438_s24  }
  0xb8   : > { %s700_s21 = sshll.u32 %s693_s20, 4  ;;  %s690_s10 = scalar_lea.sflag [#allocation10], %s7867_s29  ;;  %s5843_s21 = int_to_ptr.vmem [resolvable:$true] %s700_s21 }
  0xb9   : > { %s5326_s26 = scalar_lea.hbm %s5816_s13, 256  ;;  %s5331_s9 = scalar_lea.hbm %s7692_s5, 512 }
  0xba   : > { %p5327_p7 = scmp.ne.s32.totalorder %s5816_s13, %s5326_s26  ;;  %p5332_p1 = scmp.lt.s32.totalorder %s5816_s13, %s7692_s5 }
  0xbb   : > { %p5333_p6 = scmp.lt.s32.totalorder %s5331_s9, %s5326_s26 }
  0xbc   : > { %p5329_p2 = pnand %p5327_p7, %p5721_p13 }
  0xbd   : > { %p5334_p8 = por %p5333_p6, %p5332_p1 }
  0xbe   : > { %p5330_p0 = pneg %p5329_p2 }
  0xc0   : > { %p5335_p11 = pnand %p5334_p8, %p5330_p0 }
  0xc2   : > { %5338 = shalt.err (!%p5335_p11)
}
  0xc3   : > { %s5339_s11 = scalar_lea.vmem %s5843_s21, 256  ;;  %s5449_s19 = smov [#allocation9]  }
  0xc4   : > { %p5340_p12 = scmp.ne.s32.totalorder %s5843_s21, %s5339_s11  ;;  %s5344_s0 = sshll.u32 %s5449_s19, 4  ;;  %s5345_s0 = int_to_ptr.vmem [resolvable:$false] %s5344_s0 }
  0xc5   : > { %s5346_s17 = scalar_lea.vmem %s5345_s0, 512  ;;  %p5347_p5 = scmp.lt.s32.totalorder %s5843_s21, %s5345_s0 }
  0xc6   : > { %p5342_p4 = pnand %p5340_p12, %p5721_p13  ;;  %p5348_p3 = scmp.lt.s32.totalorder %s5346_s17, %s5339_s11 }
  0xc8   : > { %p5343_p10 = pneg %p5342_p4  ;;  %p5349_p7 = por %p5348_p3, %p5347_p5 }
  0xca   : > { %p5350_p2 = pnand %p5349_p7, %p5343_p10 }
  0xcc   : > { %5353 = shalt.err (!%p5350_p2)
}
  0xcd   : > { %4797 = dma.hbm_to_vmem [thread:$0]  (!%p5699_p9), %s5816_s13, 256, %s5843_s21, %s690_s10, %s7857_s18, %s7857_s18, %s7856_s14  }
  0xce   : > { %p7868_p13 = scmp.ne.s32.totalorder %s7844_s27, 0 }
  0xd0   : > { %712 = sbr.rel (%p7868_p13) target bundleno = 3525 (0xdc5), region = 100 }
  0xd5   : > { %s5873_s15 = sand.u32 1, %s5430_s22   ;;  %p7869_p0 = scmp.ne.s32.totalorder %s7841_s3, 0 }
  0xd6   : > { %s5876_s30 = sshll.u32 %s5873_s15, 4  ;;  %s715_s7 = scalar_lea.sflag [#allocation4], %s5873_s15 }
  0xd7   : > { %s5880_s4 = scalar_lea.vmem [#allocation3], %s5876_s30 }
  0xd8   : > { %5397 = dma.done.wait (%p7869_p0), %s715_s7, 256  }
  0xd9   : > { %5399 = vsyncadd (%p7869_p0), %s715_s7, 4294967040  ;;  %s723_s27 = sand.u32 1, %s5616_s2   ;;  %s727_s18 = scalar_lea.vmem [#allocation6], %s5876_s30 }
  0xda   : > { %s724_s14 = scalar_lea.sflag [#allocation7], %s723_s27 }
  0xdb   : > { %5401 = dma.done.wait (%p7869_p0), %s724_s14, 512  }
  0xdc   : > { %5403 = vsyncadd (%p7869_p0), %s724_s14, 4294966784  ;;  %s736_s13 = scalar_lea.vmem [#allocation8], %s5876_s30  ;;  %s742_s20 = scalar_lea.sflag [#allocation10], %s723_s27 }
  0xdd   : > { %s745_s21 = scalar_lea.vmem [#allocation9], %s5876_s30 }
  0xde   : > { %5405 = dma.done.wait (%p7869_p0), %s742_s20, 256  }
  0xdf   : > { %5407 = vsyncadd (%p7869_p0), %s742_s20, 4294967040  ;;  %p7870_p9 = scmp.eq.s32.totalorder %s5616_s2, 0 }
  0xe1   : > { %5409 = dma.done.wait (%p7870_p9), [#allocation10], 2048   ;;  %p7871_p1 = pmov %p7870_p9 }
  0xe3   : > { %5411 = vsyncadd (%p7871_p1), [#allocation10], 4294965248  ;;  %p7872_p6 = pmov %p7871_p1 }
  0xe4   : > { %p7873_p8 = pmov %p7871_p1 }
  0xe5   : > { %5413 = dma.done.wait (%p7872_p6), [#allocation13], 4096  }
  0xe6   : > { %5415 = vsyncadd (%p7873_p8), [#allocation13], 4294963200  ;;  %p7874_p11 = pmov %p7871_p1 }
  0xe7   : > { %p7875_p12 = pmov %p7871_p1 }
  0xe8   : > { %5417 = dma.done.wait (%p7874_p11), [#allocation16], 2048  }
  0xe9   : > { %5419 = vsyncadd (%p7875_p12), [#allocation16], 4294965248  ;;  %v874_v0 = vld [vmem:[#allocation11 + $0x78] sm:$0xff]  ;;  %v1012_v1 = vld [vmem:[%s7695_s8 + $0x78] sm:$0xff]  ;;  %p838_p4 = scmp.lt.s32.totalorder %s5616_s2, 1  ;;  %s7876_s3 = sld [smem:[#allocation177_spill]] }
  0xea   : > { %v873_v2 = vld [vmem:[#allocation11 + $0x70] sm:$0xff]  ;;  %4447 = vmatprep.subr.mxu0 %v874_v0  ;;  %4494 = vmatprep.subr.mxu1 %v1012_v1  ;;  %v1011_v3 = vld [vmem:[%s7695_s8 + $0x70] sm:$0xff]  ;;  %v872_v4 = vld [vmem:[#allocation11 + $0x68] sm:$0xff]  ;;  %s7879_s0 = sld [smem:[#allocation180_spill]]  ;;  %v5450_v57 = vmov 9   ;;  %s5451_s14 = smov 96  }
  0xeb   : > { %4448 = vmatpush3.msra.mxu0 %v874_v0  ;;  %4495 = vmatpush3.msra.mxu1 %v1012_v1  ;;  %v1010_v5 = vld [vmem:[%s7695_s8 + $0x68] sm:$0xff]  ;;  %v871_v6 = vld [vmem:[#allocation11 + $0x60] sm:$0xff]  ;;  %v1009_v7 = vld [vmem:[%s7695_s8 + $0x60] sm:$0xff]  ;;  %s839_s1 = scalar_select %p838_p4, %s5616_s2, 1  ;;  %v5454_v61 = vmov 8   ;;  %vm1095_vm0 = vcmask 392448  }
  0xec   : > { %4449 = vmatprep.subr.mxu0 %v873_v2  ;;  %4496 = vmatprep.subr.mxu1 %v1011_v3  ;;  %v870_v8 = vld [vmem:[#allocation11 + $0x58] sm:$0xff]  ;;  %v1008_v9 = vld [vmem:[%s7695_s8 + $0x58] sm:$0xff]  ;;  %v869_v10 = vld [vmem:[#allocation11 + $0x50] sm:$0xff]  ;;  %s7880_s27 = sld [smem:[#allocation181_spill]]  ;;  %s5452_s20 = smov 112  }
  0xed   : > { %4450 = vmatpush3.msra.mxu0 %v873_v2  ;;  %4497 = vmatpush3.msra.mxu1 %v1011_v3  ;;  %v1007_v11 = vld [vmem:[%s7695_s8 + $0x50] sm:$0xff]  ;;  %v868_v12 = vld [vmem:[#allocation11 + $0x48] sm:$0xff]  ;;  %v1006_v13 = vld [vmem:[%s7695_s8 + $0x48] sm:$0xff]  ;;  %s4745_s19 = smul.u32 80, %s839_s1  ;;  %s7877_s1 = sld [smem:[#allocation174_spill]] }
  0xee   : > { %4451 = vmatprep.subr.mxu0 %v872_v4  ;;  %4498 = vmatprep.subr.mxu1 %v1010_v5  ;;  %v867_v14 = vld [vmem:[#allocation11 + $0x40] sm:$0xff]  ;;  %v1005_v15 = vld [vmem:[%s7695_s8 + $0x40] sm:$0xff]  ;;  %v866_v16 = vld [vmem:[#allocation11 + $0x38] sm:$0xff]  ;;  %s7884_s25 = sld [smem:[#allocation183_spill]]  ;;  %s837_s12 = scalar_lea.vmem [#allocation17], %s5876_s30 }
  0xef   : > { %4452 = vmatpush3.msra.mxu0 %v872_v4  ;;  %4499 = vmatpush3.msra.mxu1 %v1010_v5  ;;  %v1004_v17 = vld [vmem:[%s7695_s8 + $0x38] sm:$0xff]  ;;  %v865_v18 = vld [vmem:[#allocation11 + $0x30] sm:$0xff]  ;;  %v1003_v19 = vld [vmem:[%s7695_s8 + $0x30] sm:$0xff]  ;;  %s5960_s29 = scalar_lea.vmem %s7876_s3, %s4745_s19  ;;  %s5453_s3 = smov 64  }
  0xf0   : > { %4453 = vmatprep.subr.mxu0 %v871_v6  ;;  %4500 = vmatprep.subr.mxu1 %v1009_v7  ;;  %v864_v20 = vld [vmem:[#allocation11 + $0x28] sm:$0xff]  ;;  %v1002_v21 = vld [vmem:[%s7695_s8 + $0x28] sm:$0xff]  ;;  %v863_v22 = vld [vmem:[#allocation11 + $0x20] sm:$0xff]  ;;  %s8212_s28 = sld [smem:[#allocation185_spill]] }
  0xf1   : > { %4454 = vmatpush3.msra.mxu0 %v871_v6  ;;  %4501 = vmatpush3.msra.mxu1 %v1009_v7  ;;  %v1001_v23 = vld [vmem:[%s7695_s8 + $0x20] sm:$0xff]  ;;  %v862_v24 = vld [vmem:[#allocation11 + $0x18] sm:$0xff]  ;;  %v1000_v25 = vld [vmem:[%s7695_s8 + $0x18] sm:$0xff]  ;;  %s8213_s19 = sld [smem:[#allocation186_spill]] }
  0xf2   : > { %4455 = vmatprep.subr.mxu0 %v870_v8  ;;  %4502 = vmatprep.subr.mxu1 %v1008_v9  ;;  %v861_v26 = vld [vmem:[#allocation11 + $0x10] sm:$0xff]  ;;  %v999_v27 = vld [vmem:[%s7695_s8 + $0x10] sm:$0xff]  ;;  %v860_v28 = vld [vmem:[#allocation11 + $0x8] sm:$0xff]  ;;  %s8214_s7 = sld [smem:[#allocation187_spill]] }
  0xf3   : > { %4456 = vmatpush3.msra.mxu0 %v870_v8  ;;  %4503 = vmatpush3.msra.mxu1 %v1008_v9  ;;  %v998_v29 = vld [vmem:[%s7695_s8 + $0x8] sm:$0xff]  ;;  %v843_v30 = vld [vmem:[%s5880_s4] sm:$0xff]  ;;  %v852_v41 = vld [vmem:[%s5960_s29 + $0x18] sm:$0xff]  ;;  %s7878_s9 = smov %s7877_s1  ;;  %s8216_s10 = sld [smem:[#allocation191_spill]] }
  0xf4   : > { %4457 = vmatprep.subr.mxu0 %v869_v10  ;;  %4504 = vmatprep.subr.mxu1 %v1007_v11  ;;  %v845_v31 = vld [vmem:[%s727_s18] sm:$0xff]  ;;  %v844_v32 = vld [vmem:[%s5880_s4 + $0x8] sm:$0xff]  ;;  %s8217_s26 = sld [smem:[#allocation28_spill]] }
  0xf5   : > { %4458 = vmatpush3.msra.mxu0 %v869_v10  ;;  %4505 = vmatpush3.msra.mxu1 %v1007_v11  ;;  %v846_v33 = vld [vmem:[%s727_s18 + $0x8] sm:$0xff]  ;;  %v859_v34 = vld [vmem:[#allocation11] sm:$0xff]  ;;  %v997_v35 = vld [vmem:[%s7695_s8] sm:$0xff]  ;;  %v847_v37 = vadd.f32 %v845_v31, %v843_v30  ;;  %s7883_s18 = sld [smem:[#allocation182_spill]]  ;;  %v5456_v31 = vmov 0.0  }
  0xf6   : > { %4459 = vmatprep.subr.mxu0 %v868_v12  ;;  %4506 = vmatprep.subr.mxu1 %v1006_v13  ;;  %v849_v36 = vld [vmem:[%s5960_s29] sm:$0xff]  ;;  %v848_v38 = vadd.f32 %v846_v33, %v844_v32  ;;  %v850_v39 = vld [vmem:[%s5960_s29 + $0x8] sm:$0xff]  ;;  %v851_v40 = vld [vmem:[%s5960_s29 + $0x10] sm:$0xff] }
  0xf7   : > { %4460 = vmatpush3.msra.mxu0 %v868_v12  ;;  %4507 = vmatpush3.msra.mxu1 %v1006_v13  ;;  %v853_v42 = vld [vmem:[%s5960_s29 + $0x20] sm:$0xff]  ;;  %v854_v43 = vld [vmem:[%s5960_s29 + $0x28] sm:$0xff]  ;;  %v855_v44 = vld [vmem:[%s5960_s29 + $0x30] sm:$0xff] }
  0xf8   : > { %4461 = vmatprep.subr.mxu0 %v867_v14  ;;  %4508 = vmatprep.subr.mxu1 %v1005_v15  ;;  %v856_v45 = vld [vmem:[%s5960_s29 + $0x38] sm:$0xff]  ;;  %v857_v46 = vld [vmem:[%s5960_s29 + $0x40] sm:$0xff]  ;;  %v858_v47 = vld [vmem:[%s5960_s29 + $0x48] sm:$0xff]  ;;  %s5455_s29 = smov 32  }
  0xf9   : > { %4462 = vmatpush3.msra.mxu0 %v867_v14  ;;  %4509 = vmatpush3.msra.mxu1 %v1005_v15  ;;  %v1109_v48 = vld [vmem:[%s7877_s1 + $0x8] sm:$0xff]  ;;  %v1108_v49 = vld [vmem:[%s7878_s9] sm:$0xff]  ;;  %s4025_s1 = sshll.u32 %s837_s12, 4  ;;  %s7644_s1 = int_to_ptr.vmem [resolvable:$true] %s4025_s1 }
  0xfa   : > { %4463 = vmatprep.subr.mxu0 %v866_v16  ;;  %4510 = vmatprep.subr.mxu1 %v1004_v17  ;;  %v5990_v50 = vld [vmem:[%s7879_s0] ss:$0 sm:$0xff]  ;;  %v1211_v14 = vld [vmem:[%s736_s13 + $0x8] sm:$0xff]  ;;  %s5354_s11 = scalar_lea.vmem %s7644_s1, 256  ;;  %p8219_p5 = scmp.ne.s32.totalorder %s8217_s26, 0 }
  0xfb   : > { %4464 = vmatpush3.msra.mxu0 %v866_v16  ;;  %4511 = vmatpush3.msra.mxu1 %v1004_v17  ;;  %v5995_v51 = vld [vmem:[%s7880_s27] ss:$0 sm:$0xff]  ;;  %p5355_p10 = scmp.ne.s32.totalorder %s7644_s1, %s5354_s11 }
  0xfc   : > { %4465 = vmatprep.subr.mxu0 %v865_v18  ;;  %4512 = vmatprep.subr.mxu1 %v1003_v19  ;;  %v6091_v17 = vld [vmem:[%s7883_s18] ss:$0 sm:$0xff]  ;;  %s4288_s18 = sshll.u32 %s5616_s2, 8  ;;  %s5487_s2 = smov [#allocation17]  }
  0xfd   : > { %4466 = vmatpush3.msra.mxu0 %v865_v18  ;;  %4513 = vmatpush3.msra.mxu1 %v1003_v19  ;;  %v1215_v18 = vld [vmem:[%s745_s21 + $0x8] sm:$0xff]  ;;  %p5356_p3 = pnand %p5355_p10, %p8219_p5  ;;  %s5358_s30 = sshll.u32 %s5487_s2, 4  ;;  %s5359_s30 = int_to_ptr.vmem [resolvable:$false] %s5358_s30 }
  0xfe   : > { %4467 = vmatprep.subr.mxu0 %v864_v20  ;;  %4514 = vmatprep.subr.mxu1 %v1002_v21  ;;  %p5361_p2 = scmp.lt.s32.totalorder %s7644_s1, %s5359_s30 }
  0xff   : > { %4468 = vmatpush3.msra.mxu0 %v864_v20  ;;  %4515 = vmatpush3.msra.mxu1 %v1002_v21  ;;  %p5357_p7 = pneg %p5356_p3 }
 0x100   : > { %4469 = vmatprep.subr.mxu0 %v863_v22  ;;  %4516 = vmatprep.subr.mxu1 %v1001_v23 }
 0x101   : > { %4470 = vmatpush3.msra.mxu0 %v863_v22  ;;  %4517 = vmatpush3.msra.mxu1 %v1001_v23  ;;  %v6101_v23 = vld [vmem:[%s7884_s25] ss:$0 sm:$0xff] }
 0x102   : > { %4471 = vmatprep.subr.mxu0 %v862_v24  ;;  %4518 = vmatprep.subr.mxu1 %v1000_v25 }
 0x103   : > { %4472 = vmatpush3.msra.mxu0 %v862_v24  ;;  %4519 = vmatpush3.msra.mxu1 %v1000_v25 }
 0x104   : > { %4473 = vmatprep.subr.mxu0 %v861_v26  ;;  %4520 = vmatprep.subr.mxu1 %v999_v27 }
 0x105   : > { %4474 = vmatpush3.msra.mxu0 %v861_v26  ;;  %4521 = vmatpush3.msra.mxu1 %v999_v27 }
 0x106   : > { %4475 = vmatprep.subr.mxu0 %v860_v28  ;;  %4522 = vmatprep.subr.mxu1 %v998_v29 }
 0x107   : > { %4476 = vmatpush3.msra.mxu0 %v860_v28  ;;  %4523 = vmatpush3.msra.mxu1 %v998_v29 }
 0x108   : > { %4477 = vmatprep.subr.mxu0 %v859_v34  ;;  %4524 = vmatprep.subr.mxu1 %v997_v35 }
 0x109   : > { %4478 = vmatpush3.msra.mxu0 %v859_v34  ;;  %4479 = vmatprep.mubr.f32.mxu0 %v849_v36 }
 0x10a   : > { %4525 = vmatpush3.msra.mxu1 %v997_v35  ;;  %4526 = vmatprep.mubr.f32.mxu1 %v847_v37 }
 0x10b   : > { %4480 = vmatmul.mubr.f32.vlgmr.msra.gmra.mxu0 %v850_v39  ;;  %4527 = vmatmul.mubr.f32.vlgmr.msra.gmra.mxu1 %v848_v38 }
 0x10c   : > { %4482 = vmatprep.mubr.f32.mxu0 %v851_v40  ;;  %4529 = vmatprep.subr.mxu1 %v1109_v48 }
 0x10d   : > { %4530 = vmatpush3.msra.mxu1 %v1109_v48  ;;  %4895 = vset.pattern.permute.xlu0 %v5450_v57 }
 0x10e   : > { %4531 = vmatprep.subr.mxu1 %v1108_v49  ;;  %4894 = vset.pattern.permute.xlu1 %v5454_v61 }
 0x10f   : > { %4483 = vmatmul.mubr.f32.gmra.mxu0 %v852_v41  ;;  %4532 = vmatpush3.msra.mxu1 %v1108_v49  ;;  %v7737_v49 = vmov 4  }
 0x110   : > { %4485 = vmatprep.mubr.f32.mxu0 %v853_v42  ;;  %v7733_v42 = vmov 15  }
 0x113   : > { %4486 = vmatmul.mubr.f32.gmra.mxu0 %v854_v43  ;;  %v5458_v43 = vmov 2  }
 0x114   : > { %4488 = vmatprep.mubr.f32.mxu0 %v855_v44  ;;  %v7753_v44 = vmov 1  }
 0x117   : > { %4489 = vmatmul.mubr.f32.gmra.mxu0 %v856_v45  ;;  %v7745_v45 = vmov 3  }
 0x118   : > { %4491 = vmatprep.mubr.f32.mxu0 %v857_v46 }
 0x11b   : > { %4492 = vmatmul.mubr.f32.gmra.mxu0 %v858_v47  ;;  %v7743_v47 = vmov 11  }
 0x1cb   : > { %v4481_v52 = vpop.f32.mrf.mxu0  ;;  %v4528_v53 = vpop.f32.mrf.mxu1 }
 0x1cc   : > { %v5998_v54 = vadd.f32 %v4481_v52, %v5990_v50  ;;  %v6001_v55 = vadd.f32 %v4528_v53, %v5995_v51  ;;  %v1210_v52 = vld [vmem:[%s736_s13] sm:$0xff] }
 0x1cd   : > { %v948_v56 = vpop.f32.mrf.mxu0  ;;  %v1086_v11 = vpop.f32.mrf.mxu1 }
 0x1ce   : > { %7881 = vst [vmem:[#allocation30_spill] sm:$0xff] %v5998_v54  ;;  %2737 = vrot.lane.b32.xlu0 %v5998_v54, %s5451_s14  ;;  %1220 = vrot.lane.b32.xlu1 %v6001_v55, %s5452_s20  ;;  %v6012_v62 = vadd.f32 %v5990_v50, %v948_v56  ;;  %v1099_v10 = vsel %vm1095_vm0, %v6001_v55, -inf  ;;  %v6076_v12 = vadd.f32 %v5995_v51, %v1086_v11  ;;  %v7735_v51 = vmov 5  }
 0x1cf   : > { %v4484_v58 = vpop.f32.mrf.mxu0  ;;  %v1213_v15 = vadd.f32 %v1211_v14, %v6001_v55  ;;  %v7741_v56 = vmov 0  }
 0x1d0   : > { %7882 = vst [vmem:[#allocation31_spill] sm:$0xff] %v6012_v62  ;;  %v6017_v1 = vadd.f32 %v4484_v58, %v5990_v50  ;;  %v1096_v13 = vsel %vm1095_vm0, %v6076_v12, -inf  ;;  %v1212_v53 = vadd.f32 %v1210_v52, %v6076_v12 }
 0x1d1   : > { %v958_v59 = vpop.f32.mrf.mxu0  ;;  %v1227_v16 = vfloor.f32 %v1213_v15 }
 0x1d2   : > { %3105 = vrot.lane.b32.xlu1 %v5998_v54, %s5453_s3  ;;  %v6046_v9 = vadd.f32 %v5990_v50, %v958_v59  ;;  %v1226_v59 = vfloor.f32 %v1212_v53 }
 0x1d3   : > { %v4487_v60 = vpop.f32.mrf.mxu0  ;;  %v1235_v19 = vadd.f32 1.0, %v1227_v16  ;;  %vm1239_vm1 = vcmp.ge.f32.partialorder %v1227_v16, 0.0  ;;  %vm1247_vm2 = vcmp.lt.f32.partialorder %v1227_v16, %v6091_v17  ;;  %v6113_v27 = vsub.f32 %v1213_v15, %v1227_v16 }
 0x1d4   : > { %v6023_v4 = vadd.f32 %v4487_v60, %v5990_v50  ;;  %vm6109_vm5 = vmand %vm1239_vm1, %vm1247_vm2  ;;  %v7749_v60 = vmov 10   ;;  %vm1238_vm1 = vcmp.ge.f32.partialorder %v1226_v59, 0.0  ;;  %vm1246_vm2 = vcmp.lt.f32.partialorder %v1226_v59, %v6091_v17 }
 0x1d5   : > { %v968_v63 = vpop.f32.mrf.mxu0  ;;  %vm1251_vm3 = vcmp.ge.f32.partialorder %v1235_v19, 0.0  ;;  %vm1253_vm4 = vcmp.lt.f32.partialorder %v1235_v19, %v6091_v17  ;;  %v1275_v33 = vsub.f32 1.0, %v6113_v27 }
 0x1d6   : > { %2735 = vrot.lane.b32.xlu1 %v6012_v62, %s5451_s14  ;;  %v6033_v7 = vadd.f32 %v5990_v50, %v968_v63  ;;  %vm6115_vm6 = vmand %vm1251_vm3, %vm1253_vm4 }
 0x1d7   : > { %v4490_v0 = vpop.f32.mrf.mxu0 }
 0x1d8   : > { %v6020_v2 = vadd.f32 %v4490_v0, %v5990_v50  ;;  %v1214_v0 = vld [vmem:[%s745_s21] sm:$0xff]  ;;  %s8218_s21 = sld [smem:[#allocation192_spill]] }
 0x1d9   : > { %v978_v3 = vpop.f32.mrf.mxu0 }
 0x1da   : > { %v6026_v5 = vadd.f32 %v5990_v50, %v978_v3  ;;  %4543 = vmatprep.subr.mxu0 %v6020_v2  ;;  %2741 = vrot.lane.b32.xlu1 %v6017_v1, %s5451_s14  ;;  %v1234_v3 = vadd.f32 1.0, %v1226_v59 }
 0x1db   : > { %4544 = vmatpush3.msra.mxu0 %v6020_v2  ;;  %v4493_v6 = vpop.f32.mrf.mxu0 }
 0x1dc   : > { %4545 = vmatprep.subr.mxu0 %v6026_v5  ;;  %v6037_v8 = vadd.f32 %v4493_v6, %v5990_v50  ;;  %vm1250_vm3 = vcmp.ge.f32.partialorder %v1234_v3, 0.0  ;;  %vm1252_vm4 = vcmp.lt.f32.partialorder %v1234_v3, %v6091_v17 }
 0x1dd   : > { %4546 = vmatpush3.msra.mxu0 %v6026_v5  ;;  %v988_v22 = vpop.f32.mrf.mxu0 }
 0x1de   : > { %4547 = vmatprep.subr.mxu0 %v6023_v4  ;;  %3109 = vrot.lane.b32.xlu1 %v6017_v1, %s5453_s3  ;;  %v6105_v25 = vadd.f32 %v5990_v50, %v988_v22  ;;  %v7739_v50 = vmov 14  }
 0x1df   : > { %4548 = vmatpush3.msra.mxu0 %v6023_v4  ;;  %4536 = vmatprep.subr.mxu1 %v6037_v8 }
 0x1e0   : > { %4549 = vmatprep.subr.mxu0 %v6033_v7 }
 0x1e1   : > { %4550 = vmatpush3.msra.mxu0 %v6033_v7 }
 0x1e2   : > { %4551 = vmatprep.subr.mxu0 %v6017_v1  ;;  %3107 = vrot.lane.b32.xlu1 %v6046_v9, %s5453_s3 }
 0x1e3   : > { %4552 = vmatpush3.msra.mxu0 %v6017_v1 }
 0x1e4   : > { %4553 = vmatprep.subr.mxu0 %v6046_v9 }
 0x1e5   : > { %4554 = vmatpush3.msra.mxu0 %v6046_v9 }
 0x1e6   : > { %4555 = vmatprep.subr.mxu0 %v5998_v54  ;;  %2745 = vrot.lane.b32.xlu1 %v6023_v4, %s5451_s14 }
 0x1e7   : > { %4556 = vmatpush3.msra.mxu0 %v5998_v54 }
 0x1e8   : > { %4557 = vmatprep.subr.mxu0 %v6012_v62 }
 0x1e9   : > { %4558 = vmatpush3.msra.mxu0 %v6012_v62 }
 0x1ea   : > { %3113 = vrot.lane.b32.xlu1 %v6023_v4, %s5453_s3 }
 0x1ed   : > { %1100 = vmax.xlane.f32.xlu0 %v1099_v10  ;;  %v7751_v10 = vmov 12  }
 0x1ee   : > { %3111 = vrot.lane.b32.xlu1 %v6033_v7, %s5453_s3 }
 0x1f2   : > { %2749 = vrot.lane.b32.xlu1 %v6020_v2, %s5451_s14 }
 0x1f6   : > { %3117 = vrot.lane.b32.xlu1 %v6020_v2, %s5453_s3 }
 0x1fa   : > { %3115 = vrot.lane.b32.xlu1 %v6026_v5, %s5453_s3 }
 0x1fe   : > { %3386 = vrot.lane.b32.xlu1 %v6037_v8, %s5455_s29 }
 0x203   : > { %1218 = vrot.lane.b32.xlu0 %v6076_v12, %s5452_s20  ;;  %s8215_s20 = sld [smem:[#allocation190_spill]] }
 0x207   : > { %3103 = vrot.lane.b32.xlu0 %v6012_v62, %s5453_s3  ;;  %v7926_v62 = vmov 14  }
 0x226   : > { %1097 = vmax.xlane.f32.xlu0 %v1096_v13  ;;  %v6189_v13 = vsub.f32 %v1212_v53, %v1226_v59 }
 0x23c   : > { %2739 = vrot.lane.b32.xlu0 %v6046_v9, %s5451_s14 }
 0x240   : > { %v1221_v20 = vpop.permute.xlu1 %1220  ;;  %2743 = vrot.lane.b32.xlu0 %v6033_v7, %s5451_s14  ;;  %v6179_v58 = vpop.permute.xlu0 %2737 }
 0x241   : > { %v1225_v21 = vadd.f32 %v1221_v20, %v1215_v18  ;;  %7889 = vst [vmem:[#allocation32_spill] sm:$0xff] %v6179_v58  ;;  %v1274_v18 = vsub.f32 1.0, %v6189_v13  ;;  %v7747_v20 = vmov 6  }
 0x243   : > { %v1229_v24 = vfloor.f32 %v1225_v21 }
 0x244   : > { %2747 = vrot.lane.b32.xlu0 %v6026_v5, %s5451_s14 }
 0x245   : > { %vm1257_vm7 = vcmp.ge.f32.partialorder %v1229_v24, 0.0  ;;  %vm1265_vm8 = vcmp.lt.f32.partialorder %v1229_v24, %v6101_v23  ;;  %v6120_v29 = vsub.f32 %v1225_v21, %v1229_v24  ;;  %v1237_v30 = vadd.f32 1.0, %v1229_v24 }
 0x246   : > { %vm1267_vm9 = vmand %vm1257_vm7, %vm1265_vm8  ;;  %v1391_v35 = vmul.f32 %v6091_v17, %v1229_v24  ;;  %v6211_v24 = vpop.permute.xlu1 %3105 }
 0x247   : > { %vm1291_vm10 = vmand %vm6109_vm5, %vm1267_vm9  ;;  %vm1269_vm12 = vcmp.ge.f32.partialorder %v1237_v30, 0.0  ;;  %vm1271_vm13 = vcmp.lt.f32.partialorder %v1237_v30, %v6101_v23  ;;  %v1335_v37 = vmul.f32 %v1275_v33, %v6120_v29  ;;  %v1363_v41 = vmul.f32 %v6120_v29, %v6113_v27  ;;  %7896 = vst [vmem:[#allocation33_spill] sm:$0xff] %v6211_v24 }
 0x248   : > { %3384 = vrot.lane.b32.xlu0 %v6105_v25, %s5455_s29  ;;  %v4251_v32 = vsel %vm1291_vm10, 1.0, %v5456_v31  ;;  %vm1319_vm11 = vmand %vm6115_vm6, %vm1267_vm9  ;;  %v6148_v40 = vadd.f32 %v1391_v35, %v1227_v16  ;;  %v1277_v46 = vsub.f32 1.0, %v6120_v29 }
 0x249   : > { %v4253_v34 = vsel %vm1319_vm11, 1.0, %v5456_v31  ;;  %vm1273_vm14 = vmand %vm1269_vm12, %vm1271_vm13 }
 0x24a   : > { %v4889_v36 = vpack.i.bf16 %v4253_v34, %v4251_v32  ;;  %vm1347_vm15 = vmand %vm6109_vm5, %vm1273_vm14  ;;  %v1307_v48 = vmul.f32 %v1277_v46, %v6113_v27  ;;  %v1279_v29 = vmul.f32 %v1277_v46, %v1275_v33  ;;  %v6267_v53 = vadd.f32 %v6091_v17, %v6148_v40 }
 0x24b   : > { %vm1375_vm0 = vmand %vm6115_vm6, %vm1273_vm14  ;;  %v6141_v38 = vsel %vm1347_vm15, 1.0, %v5456_v31 }
 0x24c   : > { %4890 = vrot.lane.b32.xlu1 %v4889_v36, %s5455_s29  ;;  %1340 = vrot.lane.b32.xlu0 %v1335_v37, %s5455_s29  ;;  %v6146_v39 = vsel %vm1375_vm0, 1.0, %v5456_v31  ;;  %vm6194_vm5 = vmand %vm1238_vm1, %vm1246_vm2  ;;  %v6250_v36 = vpop.permute.xlu1 %2735  ;;  %vm1116_vm1 = vcmask 130048  }
 0x24d   : > { %vm6201_vm6 = vmand %vm1250_vm3, %vm1252_vm4  ;;  %7897 = vst [vmem:[#allocation34_spill] sm:$0xff] %v6250_v36  ;;  %v7770_v36 = vmov 7  }
 0x250   : > { %1368 = vrot.lane.b32.xlu1 %v1363_v41, %s5455_s29  ;;  %2216 = vperm.xlu0 %4895, %v6148_v40   ;;  %v6263_v52 = vpop.permute.xlu1 %2741 }
 0x251   : > { %7898 = vst [vmem:[#allocation35_spill] sm:$0xff] %v6263_v52 }
 0x254   : > { %2128 = vperm.xlu1 %4894, %v6148_v40   ;;  %4902 = vset.pattern.permute.xlu0 %v7733_v42 }
 0x255   : > { %3301 = vperm.xlu0 %4902, %v6148_v40  }
 0x258   : > { %4896 = vset.pattern.permute.xlu1 %v5458_v43 }
 0x259   : > { %1600 = vperm.xlu1 %4896, %v6148_v40   ;;  %4904 = vset.pattern.permute.xlu0 %v7753_v44 }
 0x25a   : > { %1512 = vperm.xlu0 %4904, %v6148_v40  }
 0x25d   : > { %4897 = vset.pattern.permute.xlu1 %v7745_v45 }
 0x25e   : > { %1688 = vperm.xlu1 %4897, %v6148_v40   ;;  %4907 = vset.pattern.permute.xlu0 %v7743_v47 }
 0x25f   : > { %2555 = vperm.xlu0 %4907, %v6148_v40  }
 0x262   : > { %4898 = vset.pattern.permute.xlu1 %v7737_v49 }
 0x263   : > { %1776 = vperm.xlu1 %4898, %v6148_v40   ;;  %1312 = vrot.lane.b32.xlu0 %v1307_v48, %s5455_s29  ;;  %v6258_v48 = vadd.f32 1.0, %v6148_v40 }
 0x264   : > { %4914 = vset.pattern.permute.xlu0 %v5454_v61 }
 0x267   : > { %4899 = vset.pattern.permute.xlu1 %v7739_v50 }
 0x268   : > { %3213 = vperm.xlu1 %4899, %v6148_v40  }
 0x26c   : > { %4900 = vset.pattern.permute.xlu1 %v7735_v51 }
 0x26d   : > { %1864 = vperm.xlu1 %4900, %v6148_v40  }
 0x271   : > { %4901 = vset.pattern.permute.xlu1 %v7741_v56 }
 0x272   : > { %1410 = vperm.xlu1 %4901, %v6148_v40  }
 0x276   : > { %4903 = vset.pattern.permute.xlu1 %v7749_v60  ;;  %v6183_v63 = vpop.xlane.xlu0 %1100 }
 0x277   : > { %2467 = vperm.xlu1 %4903, %v6148_v40  }
 0x27a   : > { %v1219_v6 = vpop.permute.xlu0 %1218 }
 0x27b   : > { %4905 = vset.pattern.permute.xlu1 %v7751_v10  ;;  %v1224_v11 = vadd.f32 %v1219_v6, %v1214_v0  ;;  %v6272_v0 = vpop.permute.xlu1 %3109 }
 0x27c   : > { %2845 = vperm.xlu1 %4905, %v6148_v40   ;;  %7899 = vst [vmem:[#allocation36_spill] sm:$0xff] %v6272_v0 }
 0x27d   : > { %v1228_v14 = vfloor.f32 %v1224_v11 }
 0x27f   : > { %v6198_v16 = vsub.f32 %v1224_v11, %v1228_v14  ;;  %vm1256_vm7 = vcmp.ge.f32.partialorder %v1228_v14, 0.0  ;;  %vm1264_vm8 = vcmp.lt.f32.partialorder %v1228_v14, %v6101_v23  ;;  %v1236_v22 = vadd.f32 1.0, %v1228_v14 }
 0x280   : > { %4906 = vset.pattern.permute.xlu1 %v7747_v20  ;;  %vm6207_vm9 = vmand %vm1256_vm7, %vm1264_vm8  ;;  %v1390_v37 = vmul.f32 %v6091_v17, %v1228_v14 }
 0x281   : > { %v1276_v26 = vsub.f32 1.0, %v6198_v16  ;;  %1952 = vperm.xlu1 %4906, %v6148_v40   ;;  %v1334_v28 = vmul.f32 %v1274_v18, %v6198_v16  ;;  %vm1290_vm10 = vmand %vm6194_vm5, %vm6207_vm9  ;;  %vm1268_vm12 = vcmp.ge.f32.partialorder %v1236_v22, 0.0  ;;  %vm1270_vm13 = vcmp.lt.f32.partialorder %v1236_v22, %v6101_v23 }
 0x282   : > { %vm1318_vm11 = vmand %vm6201_vm6, %vm6207_vm9  ;;  %v4250_v32 = vsel %vm1290_vm10, 1.0, %v5456_v31  ;;  %v1362_v23 = vmul.f32 %v6198_v16, %v6189_v13 }
 0x283   : > { %1338 = vrot.lane.b32.xlu0 %v1334_v28, %s5455_s29  ;;  %vm1272_vm14 = vmand %vm1268_vm12, %vm1270_vm13  ;;  %v6230_v30 = vmul.f32 %v1276_v26, %v1274_v18  ;;  %v4252_v34 = vsel %vm1318_vm11, 1.0, %v5456_v31 }
 0x284   : > { %vm1346_vm15 = vmand %vm6194_vm5, %vm1272_vm14  ;;  %v4908_v41 = vpack.i.bf16 %v4252_v34, %v4250_v32 }
 0x285   : > { %1284 = vrot.lane.b32.xlu1 %v1279_v29, %s5455_s29  ;;  %vm1374_vm0 = vmand %vm6201_vm6, %vm1272_vm14  ;;  %v6242_v27 = vsel %vm1346_vm15, 1.0, %v5456_v31 }
 0x286   : > { %4913 = vset.pattern.permute.xlu1 %v5454_v61  ;;  %v6246_v33 = vsel %vm1374_vm0, 1.0, %v5456_v31  ;;  %v4947_v35 = vpack.i.bf16 %v6141_v38, %v6242_v27  ;;  %v6260_v31 = vadd.f32 %v1390_v37, %v1226_v59  ;;  %v6278_v59 = vpop.permute.xlu1 %3107 }
 0x287   : > { %1366 = vrot.lane.b32.xlu0 %v1362_v23, %s5455_s29  ;;  %v4952_v46 = vpack.i.bf16 %v6146_v39, %v6246_v33  ;;  %7900 = vst [vmem:[#allocation37_spill] sm:$0xff] %v6278_v59  ;;  %v7933_v59 = vmov 11  }
 0x288   : > { %v6359_v34 = vadd.f32 1.0, %v6260_v31  ;;  %v6383_v37 = vadd.f32 %v6091_v17, %v6260_v31  ;;  %v6397_v17 = vadd.f32 1.0, %v6267_v53 }
 0x289   : > { %4909 = vrot.lane.b32.xlu1 %v4908_v41, %s5455_s29 }
 0x28a   : > { %v6284_v3 = vpop.permute.xlu1 %2745 }
 0x28b   : > { %2150 = vperm.xlu0 %4914, %v6258_v48   ;;  %7901 = vst [vmem:[#allocation38_spill] sm:$0xff] %v6284_v3  ;;  %v7953_v3 = vmov 13  }
 0x28d   : > { %2124 = vperm.xlu1 %4913, %v6260_v31  }
 0x28e   : > { %v6291_v6 = vpop.permute.xlu1 %3113 }
 0x28f   : > { %2172 = vperm.xlu0 %4914, %v6267_v53   ;;  %7902 = vst [vmem:[#allocation39_spill] sm:$0xff] %v6291_v6  ;;  %v7936_v6 = vmov 0  }
 0x291   : > { %4915 = vset.pattern.permute.xlu1 %v5450_v57 }
 0x292   : > { %2212 = vperm.xlu1 %4915, %v6260_v31   ;;  %v6297_v11 = vpop.permute.xlu1 %3111 }
 0x293   : > { %4916 = vset.pattern.permute.xlu0 %v5450_v57  ;;  %7903 = vst [vmem:[#allocation40_spill] sm:$0xff] %v6297_v11 }
 0x294   : > { %2260 = vperm.xlu0 %4916, %v6267_v53  }
 0x296   : > { %2238 = vperm.xlu1 %4915, %v6258_v48   ;;  %v6303_v14 = vpop.permute.xlu1 %2749 }
 0x297   : > { %7904 = vst [vmem:[#allocation41_spill] sm:$0xff] %v6303_v14 }
 0x298   : > { %4918 = vset.pattern.permute.xlu0 %v5458_v43 }
 0x299   : > { %1622 = vperm.xlu0 %4918, %v6258_v48  }
 0x29a   : > { %4917 = vset.pattern.permute.xlu1 %v5458_v43  ;;  %v6309_v15 = vpop.permute.xlu1 %3117 }
 0x29b   : > { %1596 = vperm.xlu1 %4917, %v6260_v31   ;;  %7905 = vst [vmem:[#allocation42_spill] sm:$0xff] %v6309_v15 }
 0x29d   : > { %1644 = vperm.xlu0 %4918, %v6267_v53  }
 0x29e   : > { %v6316_v18 = vpop.permute.xlu1 %3115 }
 0x29f   : > { %4920 = vset.pattern.permute.xlu1 %v7745_v45  ;;  %7906 = vst [vmem:[#allocation43_spill] sm:$0xff] %v6316_v18 }
 0x2a0   : > { %1710 = vperm.xlu1 %4920, %v6258_v48  }
 0x2a1   : > { %4919 = vset.pattern.permute.xlu0 %v7745_v45 }
 0x2a2   : > { %1684 = vperm.xlu0 %4919, %v6260_v31   ;;  %v6321_v19 = vpop.permute.xlu1 %3386 }
 0x2a3   : > { %7907 = vst [vmem:[#allocation44_spill] sm:$0xff] %v6321_v19 }
 0x2a4   : > { %1732 = vperm.xlu1 %4920, %v6267_v53  }
 0x2a6   : > { %4922 = vset.pattern.permute.xlu0 %v7737_v49 }
 0x2a7   : > { %1798 = vperm.xlu0 %4922, %v6258_v48  }
 0x2a8   : > { %4921 = vset.pattern.permute.xlu1 %v7737_v49 }
 0x2a9   : > { %1772 = vperm.xlu1 %4921, %v6260_v31  }
 0x2ab   : > { %4923 = vset.pattern.permute.xlu0 %v7739_v50 }
 0x2ac   : > { %3209 = vperm.xlu0 %4923, %v6260_v31  }
 0x2ad   : > { %1820 = vperm.xlu1 %4921, %v6267_v53  }
 0x2b0   : > { %4927 = vset.pattern.permute.xlu0 %v7735_v51 }
 0x2b1   : > { %4924 = vset.pattern.permute.xlu1 %v7739_v50  ;;  %1886 = vperm.xlu0 %4927, %v6258_v48  }
 0x2b2   : > { %3235 = vperm.xlu1 %4924, %v6258_v48  }
 0x2b5   : > { %1908 = vperm.xlu0 %4927, %v6267_v53  }
 0x2b6   : > { %4925 = vset.pattern.permute.xlu1 %v7735_v51 }
 0x2b7   : > { %1860 = vperm.xlu1 %4925, %v6260_v31  }
 0x2b9   : > { %4931 = vset.pattern.permute.xlu0 %v7741_v56 }
 0x2ba   : > { %1462 = vperm.xlu0 %4931, %v6267_v53  }
 0x2bb   : > { %4926 = vset.pattern.permute.xlu1 %v7739_v50 }
 0x2bc   : > { %3257 = vperm.xlu1 %4926, %v6267_v53  }
 0x2be   : > { %4934 = vset.pattern.permute.xlu0 %v7749_v60  ;;  %v6328_v21 = vpop.permute.xlu1 %4890 }
 0x2bf   : > { %2489 = vperm.xlu0 %4934, %v6258_v48  }
 0x2c0   : > { %4928 = vset.pattern.permute.xlu1 %v7741_v56 }
 0x2c1   : > { %1405 = vperm.xlu1 %4928, %v6260_v31  }
 0x2c2   : > { %v6335_v22 = vpop.permute.xlu1 %1368 }
 0x2c3   : > { %4935 = vset.pattern.permute.xlu0 %v7733_v42 }
 0x2c4   : > { %3345 = vperm.xlu0 %4935, %v6267_v53  }
 0x2c5   : > { %4929 = vset.pattern.permute.xlu1 %v7733_v42 }
 0x2c6   : > { %3297 = vperm.xlu1 %4929, %v6260_v31  }
 0x2c8   : > { %4936 = vset.pattern.permute.xlu0 %v7753_v44 }
 0x2c9   : > { %1508 = vperm.xlu0 %4936, %v6260_v31  }
 0x2ca   : > { %4930 = vset.pattern.permute.xlu1 %v7741_v56 }
 0x2cb   : > { %1436 = vperm.xlu1 %4930, %v6258_v48  }
 0x2cd   : > { %4941 = vset.pattern.permute.xlu0 %v7747_v20 }
 0x2ce   : > { %1974 = vperm.xlu0 %4941, %v6258_v48  }
 0x2cf   : > { %v6340_v28 = vpop.permute.xlu1 %2128  ;;  %4932 = vset.pattern.permute.xlu1 %v7733_v42 }
 0x2d0   : > { %7908 = vst [vmem:[#allocation45_spill] sm:$0xff] %v6340_v28  ;;  %3323 = vperm.xlu1 %4932, %v6258_v48   ;;  %v8043_v28 = vmov 33  }
 0x2d2   : > { %4942 = vset.pattern.permute.xlu0 %v7743_v47 }
 0x2d3   : > { %2551 = vperm.xlu0 %4942, %v6260_v31  }
 0x2d4   : > { %v6346_v29 = vpop.permute.xlu1 %1600  ;;  %4933 = vset.pattern.permute.xlu1 %v7749_v60 }
 0x2d5   : > { %7909 = vst [vmem:[#allocation46_spill] sm:$0xff] %v6346_v29  ;;  %2463 = vperm.xlu1 %4933, %v6260_v31  }
 0x2d7   : > { %4953 = vrot.lane.b32.xlu0 %v4952_v46, %s5455_s29 }
 0x2d8   : > { %4957 = vset.pattern.permute.xlu0 %v5454_v61 }
 0x2d9   : > { %v6355_v32 = vpop.permute.xlu1 %1688  ;;  %2511 = vperm.xlu1 %4933, %v6267_v53  }
 0x2da   : > { %7910 = vst [vmem:[#allocation47_spill] sm:$0xff] %v6355_v32 }
 0x2db   : > { %2146 = vperm.xlu0 %4957, %v6359_v34  }
 0x2dd   : > { %4937 = vset.pattern.permute.xlu1 %v7751_v10 }
 0x2de   : > { %v6363_v23 = vpop.permute.xlu1 %1776  ;;  %2841 = vperm.xlu1 %4937, %v6260_v31  }
 0x2df   : > { %4959 = vset.pattern.permute.xlu0 %v5450_v57 }
 0x2e0   : > { %2234 = vperm.xlu0 %4959, %v6359_v34  }
 0x2e2   : > { %4938 = vset.pattern.permute.xlu1 %v7753_v44 }
 0x2e3   : > { %v6369_v39 = vpop.permute.xlu1 %3213  ;;  %1534 = vperm.xlu1 %4938, %v6258_v48  }
 0x2e4   : > { %4961 = vset.pattern.permute.xlu0 %v5458_v43 }
 0x2e5   : > { %1618 = vperm.xlu0 %4961, %v6359_v34  }
 0x2e7   : > { %4939 = vset.pattern.permute.xlu1 %v7747_v20 }
 0x2e8   : > { %v6375_v33 = vpop.permute.xlu1 %1864  ;;  %1948 = vperm.xlu1 %4939, %v6260_v31  }
 0x2e9   : > { %4963 = vset.pattern.permute.xlu0 %v7745_v45 }
 0x2ea   : > { %1706 = vperm.xlu0 %4963, %v6359_v34  }
 0x2ec   : > { %4940 = vset.pattern.permute.xlu1 %v7751_v10 }
 0x2ed   : > { %v6385_v41 = vpop.permute.xlu1 %1410  ;;  %2867 = vperm.xlu1 %4940, %v6258_v48  }
 0x2ee   : > { %7911 = vst [vmem:[#allocation48_spill] sm:$0xff] %v6385_v41  ;;  %1728 = vperm.xlu0 %4963, %v6383_v37  }
 0x2f1   : > { %4943 = vset.pattern.permute.xlu1 %v7753_v44 }
 0x2f2   : > { %v6390_v46 = vpop.permute.xlu1 %2467  ;;  %1556 = vperm.xlu1 %4943, %v6267_v53   ;;  %4965 = vset.pattern.permute.xlu0 %v7737_v49 }
 0x2f3   : > { %1794 = vperm.xlu0 %4965, %v6359_v34  }
 0x2f6   : > { %4944 = vset.pattern.permute.xlu1 %v7751_v10 }
 0x2f7   : > { %v6399_v42 = vpop.permute.xlu1 %2845  ;;  %2889 = vperm.xlu1 %4944, %v6267_v53   ;;  %4971 = vset.pattern.permute.xlu0 %v7739_v50 }
 0x2f8   : > { %3279 = vperm.xlu0 %4971, %v6397_v17  }
 0x2fb   : > { %4945 = vset.pattern.permute.xlu1 %v7747_v20 }
 0x2fc   : > { %v6405_v51 = vpop.permute.xlu1 %1952  ;;  %1996 = vperm.xlu1 %4945, %v6267_v53   ;;  %4972 = vset.pattern.permute.xlu0 %v7741_v56  ;;  %v1306_v56 = vmul.f32 %v1276_v26, %v6189_v13  ;;  %v6455_v13 = vadd.f32 1.0, %v6383_v37  ;;  %v6463_v26 = vpop.permute.xlu0 %3103 }
 0x2fd   : > { %1431 = vperm.xlu0 %4972, %v6359_v34   ;;  %7918 = vst [vmem:[#allocation55_spill] sm:$0xff] %v6463_v26  ;;  %v7930_v26 = vmov 12  }
 0x300   : > { %v6410_v49 = vpop.permute.xlu1 %1284  ;;  %4946 = vset.pattern.permute.xlu1 %v7743_v47 }
 0x301   : > { %2577 = vperm.xlu1 %4946, %v6258_v48   ;;  %4979 = vset.pattern.permute.xlu0 %v7749_v60 }
 0x302   : > { %2507 = vperm.xlu0 %4979, %v6383_v37  }
 0x304   : > { %v6416_v50 = vpop.permute.xlu1 %4909 }
 0x305   : > { %1282 = vrot.lane.b32.xlu1 %v6230_v30, %s5455_s29 }
 0x306   : > { %4982 = vset.pattern.permute.xlu0 %v7751_v10  ;;  %4958 = vset.pattern.permute.xlu1 %v5454_v61 }
 0x307   : > { %2863 = vperm.xlu0 %4982, %v6359_v34  }
 0x308   : > { %v6426_v47 = vpop.permute.xlu1 %2124 }
 0x309   : > { %7912 = vst [vmem:[#allocation49_spill] sm:$0xff] %v6426_v47  ;;  %1310 = vrot.lane.b32.xlu1 %v1306_v56, %s5455_s29 }
 0x30b   : > { %4984 = vset.pattern.permute.xlu0 %v7749_v60 }
 0x30c   : > { %2533 = vperm.xlu0 %4984, %v6397_v17  }
 0x30d   : > { %v6431_v45 = vpop.permute.xlu1 %2212  ;;  %4948 = vrot.lane.b32.xlu1 %v4947_v35, %s5455_s29  ;;  %v6470_v35 = vpop.xlane.xlu0 %1097 }
 0x30e   : > { %7913 = vst [vmem:[#allocation50_spill] sm:$0xff] %v6431_v45  ;;  %v8030_v45 = vmov 47  }
 0x310   : > { %4985 = vset.pattern.permute.xlu0 %v7753_v44 }
 0x311   : > { %v6438_v30 = vpop.permute.xlu1 %2238  ;;  %2168 = vperm.xlu1 %4958, %v6383_v37   ;;  %1552 = vperm.xlu0 %4985, %v6383_v37  }
 0x312   : > { %7914 = vst [vmem:[#allocation51_spill] sm:$0xff] %v6438_v30 }
 0x315   : > { %2194 = vperm.xlu1 %4958, %v6397_v17   ;;  %4986 = vset.pattern.permute.xlu0 %v7751_v10  ;;  %v6480_v10 = vpop.permute.xlu0 %2739 }
 0x316   : > { %v6444_v56 = vpop.permute.xlu1 %1596  ;;  %2885 = vperm.xlu0 %4986, %v6383_v37   ;;  %7921 = vst [vmem:[#allocation57_spill] sm:$0xff] %v6480_v10 }
 0x317   : > { %7915 = vst [vmem:[#allocation52_spill] sm:$0xff] %v6444_v56  ;;  %v7955_v56 = vmov 7  }
 0x319   : > { %4960 = vset.pattern.permute.xlu1 %v5450_v57  ;;  %v6489_v41 = vpop.permute.xlu0 %2743 }
 0x31a   : > { %2256 = vperm.xlu1 %4960, %v6383_v37   ;;  %4990 = vset.pattern.permute.xlu0 %v7747_v20  ;;  %7925 = vst [vmem:[#allocation59_spill] sm:$0xff] %v6489_v41 }
 0x31b   : > { %v6450_v38 = vpop.permute.xlu1 %1710  ;;  %2018 = vperm.xlu0 %4990, %v6397_v17  }
 0x31c   : > { %7916 = vst [vmem:[#allocation53_spill] sm:$0xff] %v6450_v38  ;;  %v7945_v38 = vmov 6  }
 0x31d   : > { %v6498_v19 = vpop.permute.xlu0 %2747 }
 0x31e   : > { %2282 = vperm.xlu1 %4960, %v6397_v17   ;;  %7928 = vst [vmem:[#allocation60_spill] sm:$0xff] %v6498_v19  ;;  %v1102_v19 = vsub.f32 %v6076_v12, %v6470_v35 }
 0x31f   : > { %v6457_v16 = vpop.permute.xlu1 %1732  ;;  %4991 = vset.pattern.permute.xlu0 %v5454_v61  ;;  %v7920_v61 = vmov 3  }
 0x320   : > { %7917 = vst [vmem:[#allocation54_spill] sm:$0xff] %v6457_v16  ;;  %2190 = vperm.xlu0 %4991, %v6455_v13   ;;  %v7941_v16 = vmov 10  }
 0x321   : > { %v6507_v24 = vpop.permute.xlu0 %3384 }
 0x322   : > { %4962 = vset.pattern.permute.xlu1 %v5458_v43  ;;  %7931 = vst [vmem:[#allocation62_spill] sm:$0xff] %v6507_v24  ;;  %v7765_v24 = vmov 13  }
 0x323   : > { %1640 = vperm.xlu1 %4962, %v6383_v37  }
 0x324   : > { %v6465_v27 = vpop.permute.xlu1 %1772  ;;  %4992 = vset.pattern.permute.xlu0 %v5450_v57  ;;  %v7922_v57 = vmov 4  }
 0x325   : > { %7919 = vst [vmem:[#allocation56_spill] sm:$0xff] %v6465_v27  ;;  %2278 = vperm.xlu0 %4992, %v6455_v13  }
 0x327   : > { %1666 = vperm.xlu1 %4962, %v6397_v17  }
 0x328   : > { %v6472_v20 = vpop.permute.xlu1 %1820 }
 0x329   : > { %4993 = vset.pattern.permute.xlu0 %v5458_v43  ;;  %v7924_v43 = vmov 5  }
 0x32a   : > { %1662 = vperm.xlu0 %4993, %v6455_v13  }
 0x32b   : > { %4964 = vset.pattern.permute.xlu1 %v7920_v61 }
 0x32c   : > { %1754 = vperm.xlu1 %4964, %v6397_v17  }
 0x32d   : > { %v6478_v60 = vpop.permute.xlu1 %3235 }
 0x32e   : > { %4994 = vset.pattern.permute.xlu0 %v7920_v61  ;;  %v7927_v61 = vmov 1  }
 0x32f   : > { %1750 = vperm.xlu0 %4994, %v6455_v13  }
 0x330   : > { %4966 = vset.pattern.permute.xlu1 %v7922_v57 }
 0x331   : > { %1816 = vperm.xlu1 %4966, %v6383_v37  }
 0x332   : > { %v6486_v44 = vpop.permute.xlu1 %1860 }
 0x333   : > { %7923 = vst [vmem:[#allocation58_spill] sm:$0xff] %v6486_v44  ;;  %4997 = vset.pattern.permute.xlu0 %v7924_v43 }
 0x334   : > { %1926 = vperm.xlu0 %4997, %v6455_v13  }
 0x335   : > { %4967 = vset.pattern.permute.xlu1 %v7926_v62 }
 0x336   : > { %3231 = vperm.xlu1 %4967, %v6359_v34  }
 0x337   : > { %v6494_v54 = vpop.permute.xlu1 %3257 }
 0x338   : > { %5001 = vset.pattern.permute.xlu0 %v7927_v61 }
 0x339   : > { %1574 = vperm.xlu0 %5001, %v6455_v13  }
 0x33a   : > { %4968 = vset.pattern.permute.xlu1 %v7922_v57 }
 0x33b   : > { %1842 = vperm.xlu1 %4968, %v6397_v17  }
 0x33c   : > { %v6502_v44 = vpop.permute.xlu1 %1405 }
 0x33d   : > { %7929 = vst [vmem:[#allocation61_spill] sm:$0xff] %v6502_v44  ;;  %5002 = vset.pattern.permute.xlu0 %v7930_v26  ;;  %v6516_v44 = vpop.permute.xlu0 %1340 }
 0x33e   : > { %2907 = vperm.xlu0 %5002, %v6455_v13  }
 0x33f   : > { %4969 = vset.pattern.permute.xlu1 %v7926_v62 }
 0x340   : > { %3253 = vperm.xlu1 %4969, %v6383_v37  }
 0x341   : > { %v6510_v27 = vpop.permute.xlu1 %3297 }
 0x342   : > { %7932 = vst [vmem:[#allocation63_spill] sm:$0xff] %v6510_v27  ;;  %5003 = vset.pattern.permute.xlu0 %v7933_v59  ;;  %v6524_v27 = vpop.permute.xlu0 %2216 }
 0x343   : > { %2595 = vperm.xlu0 %5003, %v6383_v37   ;;  %7935 = vst [vmem:[#allocation65_spill] sm:$0xff] %v6524_v27 }
 0x344   : > { %4970 = vset.pattern.permute.xlu1 %v7924_v43 }
 0x345   : > { %1882 = vperm.xlu1 %4970, %v6359_v34  }
 0x346   : > { %v6518_v0 = vpop.permute.xlu1 %1436 }
 0x347   : > { %7934 = vst [vmem:[#allocation64_spill] sm:$0xff] %v6518_v0  ;;  %3485 = vrot.lane.b32.xlu0 %v6020_v2, %s5455_s29  ;;  %v6533_v0 = vpop.permute.xlu0 %3301 }
 0x348   : > { %5013 = vset.pattern.permute.xlu0 %v7765_v24  ;;  %v7938_v24 = vmov 15  }
 0x349   : > { %1904 = vperm.xlu1 %4970, %v6383_v37  }
 0x34b   : > { %v6526_v11 = vpop.permute.xlu1 %3323  ;;  %2955 = vperm.xlu0 %5013, %v6258_v48   ;;  %v6542_v15 = vpop.permute.xlu0 %1512 }
 0x34c   : > { %7939 = vst [vmem:[#allocation67_spill] sm:$0xff] %v6542_v15 }
 0x34d   : > { %4973 = vset.pattern.permute.xlu1 %v7936_v6 }
 0x34e   : > { %1457 = vperm.xlu1 %4973, %v6383_v37  }
 0x34f   : > { %3481 = vrot.lane.b32.xlu0 %v6023_v4, %s5455_s29 }
 0x350   : > { %v6535_v2 = vpop.permute.xlu1 %2463 }
 0x351   : > { %7937 = vst [vmem:[#allocation66_spill] sm:$0xff] %v6535_v2  ;;  %v6550_v2 = vpop.permute.xlu0 %2555 }
 0x352   : > { %4974 = vset.pattern.permute.xlu1 %v7938_v24 }
 0x353   : > { %3319 = vperm.xlu1 %4974, %v6359_v34   ;;  %2999 = vperm.xlu0 %5013, %v6397_v17  }
 0x354   : > { %v6540_v18 = vpop.permute.xlu1 %2511 }
 0x357   : > { %4975 = vset.pattern.permute.xlu1 %v7924_v43  ;;  %5018 = vset.pattern.permute.xlu0 %v7770_v36  ;;  %v6559_v43 = vpop.permute.xlu0 %1312 }
 0x358   : > { %1930 = vperm.xlu1 %4975, %v6397_v17   ;;  %2058 = vperm.xlu0 %5018, %v6359_v34  }
 0x359   : > { %v6548_v4 = vpop.permute.xlu1 %2841 }
 0x35a   : > { %7940 = vst [vmem:[#allocation68_spill] sm:$0xff] %v6548_v4 }
 0x35b   : > { %v6565_v4 = vpop.permute.xlu0 %1338 }
 0x35c   : > { %4976 = vset.pattern.permute.xlu1 %v7941_v16  ;;  %2062 = vperm.xlu0 %5018, %v6258_v48  }
 0x35d   : > { %2485 = vperm.xlu1 %4976, %v6359_v34  }
 0x35e   : > { %v6555_v15 = vpop.permute.xlu1 %1534 }
 0x35f   : > { %7942 = vst [vmem:[#allocation69_spill] sm:$0xff] %v6555_v15  ;;  %v6574_v15 = vpop.permute.xlu0 %1366 }
 0x360   : > { %2080 = vperm.xlu0 %5018, %v6383_v37  }
 0x361   : > { %4977 = vset.pattern.permute.xlu1 %v7938_v24 }
 0x362   : > { %3341 = vperm.xlu1 %4977, %v6383_v37  }
 0x363   : > { %v6562_v36 = vpop.permute.xlu1 %1948 }
 0x364   : > { %7943 = vst [vmem:[#allocation70_spill] sm:$0xff] %v6562_v36  ;;  %2106 = vperm.xlu0 %5018, %v6397_v17  }
 0x366   : > { %4978 = vset.pattern.permute.xlu1 %v7936_v6 }
 0x367   : > { %1488 = vperm.xlu1 %4978, %v6397_v17  }
 0x368   : > { %v6569_v48 = vpop.permute.xlu1 %2867  ;;  %2640 = vrot.lane.b32.xlu0 %v6105_v25, %s5451_s14 }
 0x36b   : > { %4980 = vset.pattern.permute.xlu1 %v7938_v24 }
 0x36c   : > { %3367 = vperm.xlu1 %4980, %v6397_v17   ;;  %3018 = vrot.lane.b32.xlu0 %v6037_v8, %s5453_s3 }
 0x36d   : > { %v6579_v36 = vpop.permute.xlu1 %1556 }
 0x36e   : > { %7944 = vst [vmem:[#allocation71_spill] sm:$0xff] %v6579_v36 }
 0x370   : > { %4981 = vset.pattern.permute.xlu1 %v7927_v61 }
 0x371   : > { %1530 = vperm.xlu1 %4981, %v6359_v34  }
 0x372   : > { %v6583_v58 = vpop.permute.xlu1 %2889 }
 0x375   : > { %4983 = vset.pattern.permute.xlu1 %v7945_v38 }
 0x376   : > { %1970 = vperm.xlu1 %4983, %v6359_v34  }
 0x377   : > { %v6587_v10 = vpop.permute.xlu1 %1996 }
 0x37a   : > { %1992 = vperm.xlu1 %4983, %v6383_v37  }
 0x37c   : > { %v6590_v32 = vpop.permute.xlu1 %2577 }
 0x37d   : > { %7946 = vst [vmem:[#allocation72_spill] sm:$0xff] %v6590_v32 }
 0x37e   : > { %4987 = vset.pattern.permute.xlu1 %v7933_v59 }
 0x37f   : > { %2573 = vperm.xlu1 %4987, %v6359_v34  }
 0x380   : > { %v6594_v36 = vpop.permute.xlu1 %1282 }
 0x383   : > { %4988 = vset.pattern.permute.xlu1 %v7927_v61 }
 0x384   : > { %1578 = vperm.xlu1 %4988, %v6397_v17   ;;  %v6598_v52 = vpop.permute.xlu1 %1310 }
 0x388   : > { %4989 = vset.pattern.permute.xlu1 %v7930_v26  ;;  %v6601_v41 = vpop.permute.xlu1 %4948 }
 0x389   : > { %2911 = vperm.xlu1 %4989, %v6397_v17   ;;  %v4951_v30 = vunpack.i.h.bf16 %v6601_v41 }
 0x38c   : > { %v6604_v29 = vpop.permute.xlu1 %2168 }
 0x38d   : > { %7947 = vst [vmem:[#allocation73_spill] sm:$0xff] %v6604_v29  ;;  %4995 = vset.pattern.permute.xlu1 %v7922_v57  ;;  %v7814_v29 = vmov 33  }
 0x38e   : > { %1838 = vperm.xlu1 %4995, %v6455_v13  }
 0x390   : > { %v6608_v32 = vpop.permute.xlu1 %2194 }
 0x391   : > { %7948 = vst [vmem:[#allocation74_spill] sm:$0xff] %v6608_v32 }
 0x392   : > { %4996 = vset.pattern.permute.xlu1 %v7926_v62 }
 0x393   : > { %3275 = vperm.xlu1 %4996, %v6455_v13  }
 0x395   : > { %v6612_v61 = vpop.permute.xlu1 %2256 }
 0x396   : > { %7949 = vst [vmem:[#allocation75_spill] sm:$0xff] %v6612_v61 }
 0x397   : > { %4998 = vset.pattern.permute.xlu1 %v7936_v6 }
 0x398   : > { %1483 = vperm.xlu1 %4998, %v6455_v13  }
 0x399   : > { %v6616_v26 = vpop.permute.xlu1 %2282 }
 0x39a   : > { %7950 = vst [vmem:[#allocation76_spill] sm:$0xff] %v6616_v26 }
 0x39c   : > { %4999 = vset.pattern.permute.xlu1 %v7938_v24 }
 0x39d   : > { %3363 = vperm.xlu1 %4999, %v6455_v13  }
 0x39e   : > { %v6620_v57 = vpop.permute.xlu1 %1640 }
 0x39f   : > { %7951 = vst [vmem:[#allocation77_spill] sm:$0xff] %v6620_v57  ;;  %v1103_v57 = vsub.f32 %v6001_v55, %v6183_v63 }
 0x3a1   : > { %5000 = vset.pattern.permute.xlu1 %v7941_v16 }
 0x3a2   : > { %2529 = vperm.xlu1 %5000, %v6455_v13   ;;  %v6624_v62 = vpop.permute.xlu1 %1666 }
 0x3a3   : > { %7952 = vst [vmem:[#allocation78_spill] sm:$0xff] %v6624_v62  ;;  %v1106_v62 = vmul.f32 1.442695, %v1103_v57 }
 0x3a5   : > { %5112 = vpow2.f32 %v1106_v62 }
 0x3a6   : > { %5004 = vset.pattern.permute.xlu1 %v7953_v3 }
 0x3a7   : > { %2929 = vperm.xlu1 %5004, %v6260_v31   ;;  %v6628_v6 = vpop.permute.xlu1 %1754 }
 0x3a8   : > { %7954 = vst [vmem:[#allocation79_spill] sm:$0xff] %v6628_v6  ;;  %v1104_v6 = vmul.f32 1.442695, %v1102_v19 }
 0x3aa   : > { %5114 = vpow2.f32 %v1104_v6 }
 0x3ab   : > { %5005 = vset.pattern.permute.xlu1 %v7955_v56 }
 0x3ac   : > { %2036 = vperm.xlu1 %5005, %v6260_v31   ;;  %v6632_v24 = vpop.permute.xlu1 %1816 }
 0x3ad   : > { %7956 = vst [vmem:[#allocation80_spill] sm:$0xff] %v6632_v24 }
 0x3b0   : > { %5006 = vset.pattern.permute.xlu1 %v7933_v59 }
 0x3b1   : > { %2599 = vperm.xlu1 %5006, %v6267_v53   ;;  %v6638_v16 = vpop.permute.xlu1 %3231 }
 0x3b2   : > { %7957 = vst [vmem:[#allocation81_spill] sm:$0xff] %v6638_v16  ;;  %v6654_v63 = vpop.eup %5112 }
 0x3b5   : > { %5007 = vset.pattern.permute.xlu1 %v7953_v3 }
 0x3b6   : > { %2933 = vperm.xlu1 %5007, %v6148_v40   ;;  %v6644_v31 = vpop.permute.xlu1 %1842 }
 0x3ba   : > { %5008 = vset.pattern.permute.xlu1 %v7945_v38  ;;  %v6661_v38 = vpop.eup %5114 }
 0x3bb   : > { %2014 = vperm.xlu1 %5008, %v6455_v13   ;;  %v6648_v55 = vpop.permute.xlu1 %3253 }
 0x3bc   : > { %7958 = vst [vmem:[#allocation82_spill] sm:$0xff] %v6648_v55 }
 0x3bf   : > { %5009 = vset.pattern.permute.xlu1 %v7955_v56 }
 0x3c0   : > { %2040 = vperm.xlu1 %5009, %v6148_v40   ;;  %v6652_v12 = vpop.permute.xlu1 %1882 }
 0x3c1   : > { %7959 = vst [vmem:[#allocation83_spill] sm:$0xff] %v6652_v12 }
 0x3c4   : > { %1114 = vrot.lane.b32.xlu1 %v6654_v63, %s5451_s14  ;;  %v6658_v19 = vpop.permute.xlu1 %1904 }
 0x3c5   : > { %7960 = vst [vmem:[#allocation84_spill] sm:$0xff] %v6658_v19  ;;  %5010 = vset.pattern.permute.xlu1 %v7933_v59 }
 0x3c8   : > { %1112 = vrot.lane.b32.xlu1 %v6661_v38, %s5451_s14 }
 0x3c9   : > { %v6665_v35 = vpop.permute.xlu1 %1457 }
 0x3ca   : > { %7961 = vst [vmem:[#allocation85_spill] sm:$0xff] %v6665_v35 }
 0x3cc   : > { %2617 = vperm.xlu1 %5010, %v6455_v13  }
 0x3ce   : > { %v6668_v40 = vpop.permute.xlu1 %3319 }
 0x3cf   : > { %7962 = vst [vmem:[#allocation86_spill] sm:$0xff] %v6668_v40 }
 0x3d0   : > { %5011 = vset.pattern.permute.xlu1 %v7953_v3 }
 0x3d1   : > { %2951 = vperm.xlu1 %5011, %v6359_v34  }
 0x3d3   : > { %v6672_v57 = vpop.permute.xlu1 %1930 }
 0x3d5   : > { %5012 = vset.pattern.permute.xlu1 %v7933_v59 }
 0x3d6   : > { %2621 = vperm.xlu1 %5012, %v6397_v17  }
 0x3d8   : > { %v6676_v62 = vpop.permute.xlu1 %2485 }
 0x3d9   : > { %7963 = vst [vmem:[#allocation87_spill] sm:$0xff] %v6676_v62 }
 0x3da   : > { %3483 = vrot.lane.b32.xlu1 %v6026_v5, %s5455_s29 }
 0x3db   : > { %5014 = vset.pattern.permute.xlu1 %v7953_v3 }
 0x3dd   : > { %v6681_v6 = vpop.permute.xlu1 %3341 }
 0x3de   : > { %7964 = vst [vmem:[#allocation88_spill] sm:$0xff] %v6681_v6  ;;  %2973 = vperm.xlu1 %5014, %v6383_v37  }
 0x3e2   : > { %v6684_v35 = vpop.permute.xlu1 %1488  ;;  %2977 = vperm.xlu1 %5014, %v6267_v53  }
 0x3e3   : > { %7965 = vst [vmem:[#allocation89_spill] sm:$0xff] %v6684_v35 }
 0x3e6   : > { %5015 = vset.pattern.permute.xlu1 %v7955_v56 }
 0x3e7   : > { %v6688_v59 = vpop.permute.xlu1 %3367  ;;  %2084 = vperm.xlu1 %5015, %v6267_v53  }
 0x3e8   : > { %7966 = vst [vmem:[#allocation90_spill] sm:$0xff] %v6688_v59 }
 0x3eb   : > { %5016 = vset.pattern.permute.xlu1 %v7953_v3 }
 0x3ec   : > { %v6692_v34 = vpop.permute.xlu1 %1530  ;;  %2995 = vperm.xlu1 %5016, %v6455_v13  }
 0x3ed   : > { %7967 = vst [vmem:[#allocation91_spill] sm:$0xff] %v6692_v34 }
 0x3f0   : > { %5017 = vset.pattern.permute.xlu1 %v7955_v56 }
 0x3f1   : > { %v6696_v5 = vpop.permute.xlu1 %1970  ;;  %2102 = vperm.xlu1 %5017, %v6455_v13  }
 0x3f2   : > { %7968 = vst [vmem:[#allocation92_spill] sm:$0xff] %v6696_v5 }
 0x3f5   : > { %v6699_v37 = vpop.permute.xlu1 %1992  ;;  %3479 = vrot.lane.b32.xlu1 %v6033_v7, %s5455_s29 }
 0x3f6   : > { %7969 = vst [vmem:[#allocation93_spill] sm:$0xff] %v6699_v37 }
 0x3f9   : > { %2642 = vrot.lane.b32.xlu1 %v6037_v8, %s5451_s14 }
 0x3fa   : > { %v6705_v53 = vpop.permute.xlu1 %2573 }
 0x3fb   : > { %7970 = vst [vmem:[#allocation94_spill] sm:$0xff] %v6705_v53 }
 0x3fd   : > { %3477 = vrot.lane.b32.xlu1 %v6017_v1, %s5455_s29 }
 0x3ff   : > { %v6709_v3 = vpop.permute.xlu1 %1578 }
 0x400   : > { %7971 = vst [vmem:[#allocation95_spill] sm:$0xff] %v6709_v3 }
 0x401   : > { %3475 = vrot.lane.b32.xlu1 %v6046_v9, %s5455_s29 }
 0x404   : > { %v6713_v17 = vpop.permute.xlu1 %2911 }
 0x409   : > { %v6715_v56 = vpop.permute.xlu1 %1838 }
 0x40a   : > { %7972 = vst [vmem:[#allocation96_spill] sm:$0xff] %v6715_v56 }
 0x40e   : > { %v6717_v13 = vpop.permute.xlu1 %3275 }
 0x40f   : > { %7973 = vst [vmem:[#allocation97_spill] sm:$0xff] %v6717_v13 }
 0x413   : > { %v6719_v7 = vpop.permute.xlu1 %1483 }
 0x414   : > { %7974 = vst [vmem:[#allocation98_spill] sm:$0xff] %v6719_v7 }
 0x418   : > { %v6721_v37 = vpop.permute.xlu1 %3363 }
 0x419   : > { %7975 = vst [vmem:[#allocation99_spill] sm:$0xff] %v6721_v37 }
 0x41d   : > { %v6723_v5 = vpop.permute.xlu1 %2529 }
 0x41e   : > { %7976 = vst [vmem:[#allocation100_spill] sm:$0xff] %v6723_v5 }
 0x422   : > { %v6725_v53 = vpop.permute.xlu1 %2929 }
 0x423   : > { %7977 = vst [vmem:[#allocation101_spill] sm:$0xff] %v6725_v53 }
 0x427   : > { %v6727_v1 = vpop.permute.xlu1 %2036 }
 0x428   : > { %7978 = vst [vmem:[#allocation102_spill] sm:$0xff] %v6727_v1 }
 0x42c   : > { %v6729_v62 = vpop.permute.xlu1 %2599 }
 0x42d   : > { %7979 = vst [vmem:[#allocation103_spill] sm:$0xff] %v6729_v62 }
 0x431   : > { %v6731_v3 = vpop.permute.xlu1 %2933 }
 0x436   : > { %v6733_v9 = vpop.permute.xlu1 %2014 }
 0x437   : > { %7980 = vst [vmem:[#allocation104_spill] sm:$0xff] %v6733_v9 }
 0x43b   : > { %v6735_v34 = vpop.permute.xlu1 %2040 }
 0x43c   : > { %7981 = vst [vmem:[#allocation105_spill] sm:$0xff] %v6735_v34 }
 0x43f   : > { %v1115_v35 = vpop.permute.xlu1 %1114 }
 0x443   : > { %v1113_v59 = vpop.permute.xlu1 %1112 }
 0x444   : > { %4533 = vmatprep.mubr.msk.f32.mxu1 %vm1116_vm1, %v1113_v59 }
 0x445   : > { %4534 = vmatmul.mubr.msk.f32.vlgmr.msra.gmra.mxu1 %vm1116_vm1, %v1115_v35 }
 0x446   : > { %4537 = vmatpush3.msra.mxu1 %v6037_v8 }
 0x447   : > { %4538 = vmatprep.subr.mxu1 %v6105_v25  ;;  %v6741_v1 = vpop.permute.xlu1 %2617 }
 0x448   : > { %7982 = vst [vmem:[#allocation106_spill] sm:$0xff] %v6741_v1  ;;  %4539 = vmatpush3.msra.mxu1 %v6105_v25 }
 0x449   : > { %4569 = vmatprep.subr.mxu1 %v6303_v14 }
 0x44c   : > { %v6745_v53 = vpop.permute.xlu1 %2951 }
 0x44d   : > { %7983 = vst [vmem:[#allocation107_spill] sm:$0xff] %v6745_v53  ;;  %v6766_v53 = vpop.permute.xlu0 %2150 }
 0x44e   : > { %7993 = vst [vmem:[#allocation117_spill] sm:$0xff] %v6766_v53 }
 0x451   : > { %v6747_v9 = vpop.permute.xlu1 %2621 }
 0x452   : > { %7984 = vst [vmem:[#allocation108_spill] sm:$0xff] %v6747_v9  ;;  %v6768_v9 = vpop.permute.xlu0 %2172 }
 0x453   : > { %7994 = vst [vmem:[#allocation118_spill] sm:$0xff] %v6768_v9  ;;  %v4950_v9 = vunpack.i.l.bf16 %v6601_v41  ;;  %v4911_v41 = vunpack.i.l.bf16 %v6416_v50 }
 0x455   : > { %v6749_v62 = vpop.permute.xlu1 %3483 }
 0x456   : > { %7985 = vst [vmem:[#allocation109_spill] sm:$0xff] %v6749_v62 }
 0x459   : > { %v6751_v5 = vpop.permute.xlu1 %2973 }
 0x45a   : > { %7986 = vst [vmem:[#allocation110_spill] sm:$0xff] %v6751_v5  ;;  %v6771_v5 = vpop.permute.xlu0 %2260 }
 0x45b   : > { %7995 = vst [vmem:[#allocation119_spill] sm:$0xff] %v6771_v5 }
 0x45d   : > { %v6753_v59 = vpop.permute.xlu1 %2977 }
 0x45e   : > { %7987 = vst [vmem:[#allocation111_spill] sm:$0xff] %v6753_v59 }
 0x462   : > { %v6755_v35 = vpop.permute.xlu1 %2084 }
 0x463   : > { %7988 = vst [vmem:[#allocation112_spill] sm:$0xff] %v6755_v35 }
 0x467   : > { %v6757_v8 = vpop.permute.xlu1 %2995 }
 0x468   : > { %7989 = vst [vmem:[#allocation113_spill] sm:$0xff] %v6757_v8  ;;  %v7781_v8 = vmov 40  }
 0x469   : > { %5020 = vset.pattern.permute.xlu1 %v7781_v8  ;;  %5019 = vset.pattern.permute.xlu0 %v7781_v8 }
 0x46c   : > { %v6759_v7 = vpop.permute.xlu1 %2102 }
 0x46d   : > { %7990 = vst [vmem:[#allocation114_spill] sm:$0xff] %v6759_v7  ;;  %v6776_v7 = vpop.permute.xlu0 %1622 }
 0x46e   : > { %7996 = vst [vmem:[#allocation120_spill] sm:$0xff] %v6776_v7 }
 0x470   : > { %v6761_v1 = vpop.permute.xlu1 %3479 }
 0x471   : > { %7991 = vst [vmem:[#allocation115_spill] sm:$0xff] %v6761_v1 }
 0x474   : > { %v6763_v37 = vpop.permute.xlu1 %2642 }
 0x475   : > { %7992 = vst [vmem:[#allocation116_spill] sm:$0xff] %v6763_v37  ;;  %4562 = vmatprep.subr.mxu0 %v6763_v37  ;;  %v6778_v37 = vpop.permute.xlu0 %1644 }
 0x476   : > { %7997 = vst [vmem:[#allocation121_spill] sm:$0xff] %v6778_v37 }
 0x478   : > { %v6808_v37 = vpop.permute.xlu1 %3477 }
 0x479   : > { %v6780_v1 = vpop.permute.xlu0 %1684  ;;  %8006 = vst [vmem:[#allocation130_spill] sm:$0xff] %v6808_v37  ;;  %v4892_v37 = vunpack.i.l.bf16 %v6328_v21 }
 0x47a   : > { %7998 = vst [vmem:[#allocation122_spill] sm:$0xff] %v6780_v1 }
 0x47d   : > { %v6782_v40 = vpop.permute.xlu0 %1798 }
 0x481   : > { %v6784_v13 = vpop.permute.xlu0 %3209 }
 0x482   : > { %7999 = vst [vmem:[#allocation123_spill] sm:$0xff] %v6784_v13 }
 0x505   : > { %v4535_v62 = vpop.f32.mrf.mxu1 }
 0x506   : > { %1200 = vrot.lane.b32.xlu1 %v4535_v62, %s5455_s29  ;;  %v6786_v62 = vpop.permute.xlu0 %1886 }
 0x507   : > { %v1187_v6 = vpop.f32.mrf.mxu1 }
 0x50a   : > { %1198 = vrot.lane.b32.xlu1 %v1187_v6, %s5455_s29  ;;  %v6788_v55 = vpop.permute.xlu0 %1908 }
 0x50e   : > { %v6790_v6 = vpop.permute.xlu0 %1462 }
 0x50f   : > { %8000 = vst [vmem:[#allocation124_spill] sm:$0xff] %v6790_v6  ;;  %v6812_v6 = vpop.permute.xlu1 %3475 }
 0x510   : > { %8008 = vst [vmem:[#allocation132_spill] sm:$0xff] %v6812_v6 }
 0x512   : > { %v6792_v16 = vpop.permute.xlu0 %2489 }
 0x516   : > { %v6794_v19 = vpop.permute.xlu0 %3345 }
 0x517   : > { %8001 = vst [vmem:[#allocation125_spill] sm:$0xff] %v6794_v19 }
 0x51a   : > { %v6796_v8 = vpop.permute.xlu0 %1508 }
 0x51b   : > { %8002 = vst [vmem:[#allocation126_spill] sm:$0xff] %v6796_v8 }
 0x51e   : > { %v6798_v12 = vpop.permute.xlu0 %1974 }
 0x522   : > { %v6800_v56 = vpop.permute.xlu0 %2551 }
 0x523   : > { %8003 = vst [vmem:[#allocation127_spill] sm:$0xff] %v6800_v56 }
 0x526   : > { %v6802_v24 = vpop.permute.xlu0 %4953 }
 0x52a   : > { %v6804_v1 = vpop.permute.xlu0 %2146 }
 0x52b   : > { %8004 = vst [vmem:[#allocation128_spill] sm:$0xff] %v6804_v1 }
 0x52e   : > { %v6806_v13 = vpop.permute.xlu0 %2234 }
 0x52f   : > { %8005 = vst [vmem:[#allocation129_spill] sm:$0xff] %v6806_v13  ;;  %v4893_v13 = vunpack.i.h.bf16 %v6328_v21  ;;  %v4956_v21 = vunpack.i.h.bf16 %v6802_v24 }
 0x532   : > { %v6810_v7 = vpop.permute.xlu0 %1618 }
 0x533   : > { %8007 = vst [vmem:[#allocation131_spill] sm:$0xff] %v6810_v7 }
 0x536   : > { %v6814_v14 = vpop.permute.xlu0 %1706 }
 0x537   : > { %8009 = vst [vmem:[#allocation133_spill] sm:$0xff] %v6814_v14 }
 0x53a   : > { %v6816_v8 = vpop.permute.xlu0 %1728 }
 0x53b   : > { %8010 = vst [vmem:[#allocation134_spill] sm:$0xff] %v6816_v8 }
 0x53e   : > { %v6818_v26 = vpop.permute.xlu0 %1794 }
 0x53f   : > { %8011 = vst [vmem:[#allocation135_spill] sm:$0xff] %v6818_v26 }
 0x542   : > { %v6820_v61 = vpop.permute.xlu0 %3279 }
 0x546   : > { %v6832_v26 = vpop.permute.xlu0 %1431 }
 0x547   : > { %8012 = vst [vmem:[#allocation136_spill] sm:$0xff] %v6832_v26  ;;  %v8024_v26 = vmov 37  }
 0x578   : > { %v1201_v19 = vpop.permute.xlu1 %1200 }
 0x579   : > { %5116 = vrcp.f32 %v1201_v19 }
 0x586   : > { %v5117_v56 = vpop.eup %5116 }
 0x587   : > { %v1207_v5 = vmul.f32 %v5117_v56, %v6654_v63  ;;  %v7794_v56 = vmov 36  }
 0x589   : > { %v1289_v7 = vmul.f32 %v6410_v49, %v1207_v5  ;;  %v1317_v6 = vmul.f32 %v6559_v43, %v1207_v5  ;;  %v1345_v8 = vmul.f32 %v6516_v44, %v1207_v5  ;;  %v1373_v49 = vmul.f32 %v6335_v22, %v1207_v5  ;;  %v6844_v44 = vpop.permute.xlu0 %2507 }
 0x58a   : > { %v7786_v43 = vmov 34   ;;  %8013 = vst [vmem:[#allocation137_spill] sm:$0xff] %v6844_v44  ;;  %v1199_v44 = vpop.permute.xlu1 %1198 }
 0x58b   : > { %v6827_v14 = vmul.f32 %v4892_v37, %v1289_v7  ;;  %v6829_v19 = vmul.f32 %v4893_v13, %v1317_v6  ;;  %v6837_v63 = vmul.f32 %v4951_v30, %v1345_v8  ;;  %v6846_v37 = vmul.f32 %v4956_v21, %v1373_v49 }
 0x58c   : > { %v7788_v30 = vmov 41   ;;  %v7790_v13 = vmov 46   ;;  %v7792_v6 = vmov 32   ;;  %v7796_v21 = vmov 37  }
 0x58d   : > { %2160 = vperm.xlu1 %5020, %v6829_v19   ;;  %2138 = vperm.xlu0 %5019, %v6827_v14   ;;  %v6851_v22 = vpop.permute.xlu0 %2863  ;;  %5118 = vrcp.f32 %v1199_v44 }
 0x58e   : > { %8014 = vst [vmem:[#allocation138_spill] sm:$0xff] %v6851_v22  ;;  %v7804_v22 = vmov 43  }
 0x591   : > { %2182 = vperm.xlu1 %5020, %v6837_v63   ;;  %5022 = vset.pattern.permute.xlu0 %v7786_v43  ;;  %v6857_v5 = vpop.permute.xlu0 %2533 }
 0x592   : > { %1610 = vperm.xlu0 %5022, %v6827_v14  }
 0x595   : > { %2204 = vperm.xlu1 %5020, %v6846_v37   ;;  %v6863_v7 = vpop.permute.xlu0 %1552 }
 0x596   : > { %5026 = vset.pattern.permute.xlu0 %v7794_v56  ;;  %8015 = vst [vmem:[#allocation139_spill] sm:$0xff] %v6863_v7  ;;  %v7802_v56 = vmov 42  }
 0x597   : > { %1808 = vperm.xlu0 %5026, %v6829_v19  }
 0x599   : > { %5021 = vset.pattern.permute.xlu1 %v7788_v30  ;;  %v6868_v8 = vpop.permute.xlu0 %2885  ;;  %v7798_v30 = vmov 35  }
 0x59a   : > { %2226 = vperm.xlu1 %5021, %v6827_v14   ;;  %8016 = vst [vmem:[#allocation140_spill] sm:$0xff] %v6868_v8  ;;  %v5119_v44 = vpop.eup %5118 }
 0x59b   : > { %1830 = vperm.xlu0 %5026, %v6837_v63  }
 0x59d   : > { %v6874_v49 = vpop.permute.xlu0 %2018 }
 0x59e   : > { %2248 = vperm.xlu1 %5021, %v6829_v19  }
 0x59f   : > { %1852 = vperm.xlu0 %5026, %v6846_v37  }
 0x5a2   : > { %2270 = vperm.xlu1 %5021, %v6837_v63  }
 0x5a3   : > { %5028 = vset.pattern.permute.xlu0 %v7790_v13  ;;  %v7800_v13 = vmov 47  }
 0x5a4   : > { %3245 = vperm.xlu0 %5028, %v6829_v19  }
 0x5a6   : > { %2292 = vperm.xlu1 %5021, %v6846_v37  }
 0x5a8   : > { %3267 = vperm.xlu0 %5028, %v6837_v63  }
 0x5aa   : > { %5023 = vset.pattern.permute.xlu1 %v7786_v43  ;;  %v6880_v43 = vpop.permute.xlu0 %2190 }
 0x5ab   : > { %1632 = vperm.xlu1 %5023, %v6829_v19   ;;  %8017 = vst [vmem:[#allocation141_spill] sm:$0xff] %v6880_v43 }
 0x5ac   : > { %3289 = vperm.xlu0 %5028, %v6846_v37  }
 0x5af   : > { %1654 = vperm.xlu1 %5023, %v6837_v63  }
 0x5b0   : > { %5031 = vset.pattern.permute.xlu0 %v7792_v6  ;;  %v6887_v6 = vpop.permute.xlu0 %2278 }
 0x5b1   : > { %1448 = vperm.xlu0 %5031, %v6829_v19   ;;  %8018 = vst [vmem:[#allocation142_spill] sm:$0xff] %v6887_v6  ;;  %v8029_v6 = vmov 45  }
 0x5b3   : > { %1676 = vperm.xlu1 %5023, %v6846_v37  }
 0x5b5   : > { %5035 = vset.pattern.permute.xlu0 %v7796_v21  ;;  %v6892_v21 = vpop.permute.xlu0 %1662 }
 0x5b6   : > { %1940 = vperm.xlu0 %5035, %v6846_v37   ;;  %8019 = vst [vmem:[#allocation143_spill] sm:$0xff] %v6892_v21  ;;  %v7810_v21 = vmov 39  }
 0x5b7   : > { %5024 = vset.pattern.permute.xlu1 %v7798_v30  ;;  %v7806_v30 = vmov 38  }
 0x5b8   : > { %1698 = vperm.xlu1 %5024, %v6827_v14  }
 0x5b9   : > { %v6898_v8 = vpop.permute.xlu0 %1750 }
 0x5ba   : > { %5036 = vset.pattern.permute.xlu0 %v7800_v13  ;;  %v8020_v13 = vmov 36   ;;  %8021 = vst [vmem:[#allocation144_spill] sm:$0xff] %v6898_v8  ;;  %v7808_v8 = vmov 45  }
 0x5bb   : > { %3333 = vperm.xlu0 %5036, %v6829_v19  }
 0x5bc   : > { %1720 = vperm.xlu1 %5024, %v6829_v19  }
 0x5bd   : > { %v6906_v7 = vpop.permute.xlu0 %1926 }
 0x5be   : > { %8023 = vst [vmem:[#allocation145_spill] sm:$0xff] %v6906_v7  ;;  %v8027_v7 = vmov 32  }
 0x5bf   : > { %5040 = vset.pattern.permute.xlu0 %v7802_v56  ;;  %v8022_v56 = vmov 46  }
 0x5c0   : > { %2521 = vperm.xlu0 %5040, %v6837_v63   ;;  %1742 = vperm.xlu1 %5024, %v6837_v63  }
 0x5c4   : > { %5045 = vset.pattern.permute.xlu0 %v7806_v30  ;;  %1764 = vperm.xlu1 %5024, %v6846_v37  }
 0x5c5   : > { %1962 = vperm.xlu0 %5045, %v6827_v14  }
 0x5c8   : > { %5025 = vset.pattern.permute.xlu1 %v8020_v13 }
 0x5c9   : > { %5048 = vset.pattern.permute.xlu0 %v7804_v22  ;;  %1786 = vperm.xlu1 %5025, %v6827_v14   ;;  %v6912_v22 = vpop.permute.xlu0 %1574 }
 0x5ca   : > { %2565 = vperm.xlu0 %5048, %v6827_v14   ;;  %8025 = vst [vmem:[#allocation146_spill] sm:$0xff] %v6912_v22 }
 0x5cd   : > { %5027 = vset.pattern.permute.xlu1 %v8022_v56 }
 0x5ce   : > { %5050 = vset.pattern.permute.xlu0 %v7806_v30  ;;  %3223 = vperm.xlu1 %5027, %v6827_v14   ;;  %v6917_v30 = vpop.permute.xlu0 %2907 }
 0x5cf   : > { %2006 = vperm.xlu0 %5050, %v6837_v63   ;;  %8026 = vst [vmem:[#allocation147_spill] sm:$0xff] %v6917_v30 }
 0x5d2   : > { %5029 = vset.pattern.permute.xlu1 %v8024_v26  ;;  %v6924_v22 = vpop.permute.xlu0 %2595 }
 0x5d3   : > { %2028 = vperm.xlu0 %5050, %v6846_v37   ;;  %1874 = vperm.xlu1 %5029, %v6827_v14   ;;  %8028 = vst [vmem:[#allocation148_spill] sm:$0xff] %v6924_v22 }
 0x5d6   : > { %v6935_v27 = vpop.permute.xlu0 %3485 }
 0x5d7   : > { %5055 = vset.pattern.permute.xlu0 %v7808_v8  ;;  %1896 = vperm.xlu1 %5029, %v6829_v19   ;;  %v1205_v8 = vmul.f32 %v5119_v44, %v6661_v38  ;;  %8031 = vst [vmem:[#allocation149_spill] sm:$0xff] %v6935_v27  ;;  %v8032_v44 = vmov 40  }
 0x5d8   : > { %2943 = vperm.xlu0 %5055, %v6827_v14  }
 0x5d9   : > { %v1372_v30 = vmul.f32 %v6574_v15, %v1205_v8  ;;  %v1316_v38 = vmul.f32 %v6598_v52, %v1205_v8  ;;  %v4912_v15 = vunpack.i.h.bf16 %v6416_v50  ;;  %v1344_v27 = vmul.f32 %v6565_v4, %v1205_v8 }
 0x5da   : > { %v6945_v43 = vpop.permute.xlu0 %2955  ;;  %v7816_v50 = vmov 44  }
 0x5db   : > { %5030 = vset.pattern.permute.xlu1 %v8027_v7  ;;  %v6947_v32 = vmul.f32 %v4912_v15, %v1316_v38  ;;  %v8038_v15 = vmov 35   ;;  %v6975_v53 = vmul.f32 %v4950_v9, %v1344_v27 }
 0x5dc   : > { %2965 = vperm.xlu0 %5055, %v6829_v19   ;;  %1422 = vperm.xlu1 %5030, %v6827_v14  }
 0x5de   : > { %v6952_v52 = vpop.permute.xlu0 %3481 }
 0x5df   : > { %8034 = vst [vmem:[#allocation150_spill] sm:$0xff] %v6952_v52 }
 0x5e0   : > { %5060 = vset.pattern.permute.xlu0 %v7810_v21  ;;  %5032 = vset.pattern.permute.xlu1 %v8024_v26  ;;  %v4955_v21 = vunpack.i.l.bf16 %v6802_v24  ;;  %v8033_v24 = vmov 41  }
 0x5e1   : > { %2094 = vperm.xlu0 %5060, %v6837_v63   ;;  %1918 = vperm.xlu1 %5032, %v6837_v63  }
 0x5e2   : > { %v6937_v22 = vmul.f32 %v4955_v21, %v1372_v30  ;;  %v8035_v30 = vmov 42   ;;  %v8036_v21 = vmov 34   ;;  %v6959_v38 = vpop.permute.xlu0 %2999 }
 0x5e3   : > { %8037 = vst [vmem:[#allocation151_spill] sm:$0xff] %v6959_v38  ;;  %v8065_v38 = vmov 39  }
 0x5e5   : > { %5061 = vset.pattern.permute.xlu0 %v8029_v6  ;;  %5033 = vset.pattern.permute.xlu1 %v8030_v45 }
 0x5e6   : > { %3009 = vperm.xlu0 %5061, %v6846_v37   ;;  %3311 = vperm.xlu1 %5033, %v6827_v14   ;;  %v6966_v52 = vpop.permute.xlu0 %2058 }
 0x5e7   : > { %8039 = vst [vmem:[#allocation152_spill] sm:$0xff] %v6966_v52 }
 0x5ea   : > { %5064 = vset.pattern.permute.xlu0 %v8032_v44  ;;  %5034 = vset.pattern.permute.xlu1 %v8027_v7  ;;  %v6973_v47 = vpop.permute.xlu0 %2062 }
 0x5eb   : > { %1474 = vperm.xlu1 %5034, %v6837_v63   ;;  %2200 = vperm.xlu0 %5064, %v6937_v22   ;;  %8040 = vst [vmem:[#allocation153_spill] sm:$0xff] %v6973_v47 }
 0x5ee   : > { %v6984_v52 = vpop.permute.xlu0 %2080 }
 0x5ef   : > { %1500 = vperm.xlu1 %5034, %v6846_v37   ;;  %5066 = vset.pattern.permute.xlu0 %v8033_v24  ;;  %8042 = vst [vmem:[#allocation155_spill] sm:$0xff] %v6984_v52 }
 0x5f0   : > { %2244 = vperm.xlu0 %5066, %v6947_v32  }
 0x5f3   : > { %5037 = vset.pattern.permute.xlu1 %v8035_v30 }
 0x5f4   : > { %2477 = vperm.xlu1 %5037, %v6827_v14   ;;  %2288 = vperm.xlu0 %5066, %v6937_v22  }
 0x5f8   : > { %2499 = vperm.xlu1 %5037, %v6829_v19   ;;  %5068 = vset.pattern.permute.xlu0 %v8036_v21 }
 0x5f9   : > { %1672 = vperm.xlu0 %5068, %v6937_v22  }
 0x5fc   : > { %5038 = vset.pattern.permute.xlu1 %v8030_v45 }
 0x5fd   : > { %3355 = vperm.xlu1 %5038, %v6837_v63   ;;  %5070 = vset.pattern.permute.xlu0 %v8038_v15 }
 0x5fe   : > { %1716 = vperm.xlu0 %5070, %v6947_v32  }
 0x601   : > { %5039 = vset.pattern.permute.xlu1 %v7814_v29  ;;  %v1288_v29 = vmul.f32 %v6594_v36, %v1205_v8  ;;  %v6999_v36 = vpop.permute.xlu0 %2106 }
 0x602   : > { %1522 = vperm.xlu1 %5039, %v6827_v14   ;;  %1760 = vperm.xlu0 %5070, %v6937_v22   ;;  %8046 = vst [vmem:[#allocation158_spill] sm:$0xff] %v6999_v36 }
 0x603   : > { %v6992_v9 = vmul.f32 %v4911_v41, %v1288_v29 }
 0x605   : > { %v7008_v29 = vpop.permute.xlu0 %2640 }
 0x606   : > { %5041 = vset.pattern.permute.xlu1 %v8030_v45  ;;  %5072 = vset.pattern.permute.xlu0 %v8020_v13  ;;  %8048 = vst [vmem:[#allocation160_spill] sm:$0xff] %v7008_v29 }
 0x607   : > { %3377 = vperm.xlu1 %5041, %v6846_v37   ;;  %1826 = vperm.xlu0 %5072, %v6975_v53  }
 0x608   : > { %v6981_v4 = vpop.permute.xlu1 %2160 }
 0x609   : > { %8041 = vst [vmem:[#allocation154_spill] sm:$0xff] %v6981_v4  ;;  %v7015_v52 = vpop.permute.xlu0 %3018 }
 0x60a   : > { %8050 = vst [vmem:[#allocation162_spill] sm:$0xff] %v7015_v52 }
 0x60b   : > { %5042 = vset.pattern.permute.xlu1 %v8043_v28  ;;  %1848 = vperm.xlu0 %5072, %v6937_v22  }
 0x60c   : > { %v6989_v27 = vpop.permute.xlu1 %2182  ;;  %1544 = vperm.xlu1 %5042, %v6829_v19  }
 0x60d   : > { %8044 = vst [vmem:[#allocation156_spill] sm:$0xff] %v6989_v27  ;;  %v7023_v29 = vpop.permute.xlu0 %2138 }
 0x60e   : > { %8053 = vst [vmem:[#allocation164_spill] sm:$0xff] %v7023_v29 }
 0x60f   : > { %5073 = vset.pattern.permute.xlu0 %v8022_v56 }
 0x610   : > { %5043 = vset.pattern.permute.xlu1 %v8035_v30  ;;  %v6996_v4 = vpop.permute.xlu1 %2204  ;;  %3219 = vperm.xlu0 %5073, %v6992_v9  }
 0x611   : > { %8045 = vst [vmem:[#allocation157_spill] sm:$0xff] %v6996_v4  ;;  %2543 = vperm.xlu1 %5043, %v6846_v37  }
 0x614   : > { %5075 = vset.pattern.permute.xlu0 %v8024_v26 }
 0x615   : > { %5044 = vset.pattern.permute.xlu1 %v7816_v50  ;;  %v7004_v8 = vpop.permute.xlu1 %2226  ;;  %1870 = vperm.xlu0 %5075, %v6992_v9   ;;  %v8052_v50 = vmov 38  }
 0x616   : > { %8047 = vst [vmem:[#allocation159_spill] sm:$0xff] %v7004_v8  ;;  %2855 = vperm.xlu1 %5044, %v6827_v14   ;;  %v8057_v8 = vmov 44  }
 0x619   : > { %v7010_v41 = vpop.permute.xlu1 %2248  ;;  %5076 = vset.pattern.permute.xlu0 %v8022_v56 }
 0x61a   : > { %8049 = vst [vmem:[#allocation161_spill] sm:$0xff] %v7010_v41  ;;  %2877 = vperm.xlu1 %5044, %v6829_v19   ;;  %3263 = vperm.xlu0 %5076, %v6975_v53  }
 0x61d   : > { %v7017_v4 = vpop.permute.xlu1 %2270 }
 0x61e   : > { %8051 = vst [vmem:[#allocation163_spill] sm:$0xff] %v7017_v4  ;;  %5046 = vset.pattern.permute.xlu1 %v8052_v50  ;;  %5079 = vset.pattern.permute.xlu0 %v8027_v7  ;;  %v7033_v4 = vpop.permute.xlu0 %1610 }
 0x61f   : > { %1984 = vperm.xlu1 %5046, %v6829_v19   ;;  %1417 = vperm.xlu0 %5079, %v6992_v9   ;;  %8056 = vst [vmem:[#allocation167_spill] sm:$0xff] %v7033_v4  ;;  %v8060_v4 = vmov 43  }
 0x621   : > { %v7025_v41 = vpop.permute.xlu1 %2292 }
 0x622   : > { %8054 = vst [vmem:[#allocation165_spill] sm:$0xff] %v7025_v41  ;;  %v1809_v27 = vpop.permute.xlu0 %1808 }
 0x623   : > { %5047 = vset.pattern.permute.xlu1 %v8043_v28  ;;  %5084 = vset.pattern.permute.xlu0 %v8024_v26 }
 0x624   : > { %1566 = vperm.xlu1 %5047, %v6837_v63   ;;  %1936 = vperm.xlu0 %5084, %v6937_v22  }
 0x626   : > { %v7031_v52 = vpop.permute.xlu1 %1632  ;;  %v1831_v29 = vpop.permute.xlu0 %1830 }
 0x627   : > { %8055 = vst [vmem:[#allocation166_spill] sm:$0xff] %v7031_v52 }
 0x628   : > { %5049 = vset.pattern.permute.xlu1 %v8057_v8  ;;  %5085 = vset.pattern.permute.xlu0 %v8030_v45 }
 0x629   : > { %2899 = vperm.xlu1 %5049, %v6837_v63   ;;  %3329 = vperm.xlu0 %5085, %v6947_v32  }
 0x62a   : > { %v7039_v41 = vpop.permute.xlu1 %1654 }
 0x62b   : > { %8058 = vst [vmem:[#allocation168_spill] sm:$0xff] %v7039_v41 }
 0x62d   : > { %5051 = vset.pattern.permute.xlu1 %v8043_v28  ;;  %5086 = vset.pattern.permute.xlu0 %v8027_v7 }
 0x62e   : > { %1588 = vperm.xlu1 %5051, %v6846_v37   ;;  %v7044_v52 = vpop.permute.xlu1 %1676  ;;  %1495 = vperm.xlu0 %5086, %v6937_v22  }
 0x62f   : > { %8059 = vst [vmem:[#allocation169_spill] sm:$0xff] %v7044_v52  ;;  %v1853_v52 = vpop.permute.xlu0 %1852 }
 0x632   : > { %5052 = vset.pattern.permute.xlu1 %v8060_v4  ;;  %5090 = vset.pattern.permute.xlu0 %v8035_v30 }
 0x633   : > { %2587 = vperm.xlu1 %5052, %v6829_v19   ;;  %v7050_v1 = vpop.permute.xlu1 %1698  ;;  %2517 = vperm.xlu0 %5090, %v6975_v53   ;;  %v3246_v50 = vpop.permute.xlu0 %3245 }
 0x634   : > { %8061 = vst [vmem:[#allocation170_spill] sm:$0xff] %v7050_v1  ;;  %v1400_v1 = vlaneseq }
 0x637   : > { %5053 = vset.pattern.permute.xlu1 %v8057_v8  ;;  %v7054_v41 = vpop.permute.xlu1 %1720  ;;  %5091 = vset.pattern.permute.xlu0 %v8030_v45  ;;  %v3268_v35 = vpop.permute.xlu0 %3267 }
 0x638   : > { %8062 = vst [vmem:[#allocation171_spill] sm:$0xff] %v7054_v41  ;;  %2921 = vperm.xlu1 %5053, %v6846_v37   ;;  %3373 = vperm.xlu0 %5091, %v6937_v22  }
 0x63b   : > { %v7059_v36 = vpop.permute.xlu1 %1742 }
 0x63c   : > { %8063 = vst [vmem:[#allocation172_spill] sm:$0xff] %v7059_v36  ;;  %5054 = vset.pattern.permute.xlu1 %v8060_v4  ;;  %5092 = vset.pattern.permute.xlu0 %v8043_v28  ;;  %v1401_v36 = vand.u32 127, %v1400_v1  ;;  %v3290_v1 = vpop.permute.xlu0 %3289 }
 0x63d   : > { %2609 = vperm.xlu1 %5054, %v6837_v63   ;;  %1540 = vperm.xlu0 %5092, %v6947_v32  }
 0x63e   : > { %v7073_v47 = vcvt.s32.f32 %v1401_v36 }
 0x63f   : > { %v7065_v41 = vpop.permute.xlu1 %1764 }
 0x640   : > { %8064 = vst [vmem:[#allocation173_spill] sm:$0xff] %v7065_v41  ;;  %vm3217_vm2 = vcmp.eq.f32.partialorder %v6369_v39, %v7073_v47  ;;  %vm3239_vm3 = vcmp.eq.f32.partialorder %v6478_v60, %v7073_v47  ;;  %vm3261_vm4 = vcmp.eq.f32.partialorder %v6494_v54, %v7073_v47  ;;  %vm1780_vm5 = vcmp.eq.f32.partialorder %v6363_v23, %v7073_v47 }
 0x641   : > { %5056 = vset.pattern.permute.xlu1 %v8065_v38  ;;  %5094 = vset.pattern.permute.xlu0 %v8057_v8  ;;  %v3249_v41 = vsel %vm3239_vm3, %v3246_v50, 0.0  ;;  %v3271_v39 = vsel %vm3261_vm4, %v3268_v35, 0.0  ;;  %vm3283_vm6 = vcmp.eq.f32.partialorder %v6820_v61, %v7073_v47  ;;  %vm1802_vm7 = vcmp.eq.f32.partialorder %v6782_v40, %v7073_v47  ;;  %v7099_v40 = vpop.permute.xlu0 %1448 }
 0x642   : > { %2050 = vperm.xlu1 %5056, %v6827_v14   ;;  %2851 = vperm.xlu0 %5094, %v6992_v9   ;;  %v3293_v54 = vsel %vm3283_vm6, %v3290_v1, 0.0  ;;  %vm1824_vm8 = vcmp.eq.f32.partialorder %v6472_v20, %v7073_v47  ;;  %vm1868_vm9 = vcmp.eq.f32.partialorder %v6375_v33, %v7073_v47  ;;  %vm1846_vm10 = vcmp.eq.f32.partialorder %v6644_v31, %v7073_v47 }
 0x643   : > { %v1834_v61 = vsel %vm1824_vm8, %v1831_v29, 0.0  ;;  %v1856_v20 = vsel %vm1846_vm10, %v1853_v52, 0.0  ;;  %vm1890_vm11 = vcmp.eq.f32.partialorder %v6786_v62, %v7073_v47  ;;  %vm1912_vm12 = vcmp.eq.f32.partialorder %v6788_v55, %v7073_v47 }
 0x644   : > { %v1787_v59 = vpop.permute.xlu1 %1786  ;;  %vm1934_vm13 = vcmp.eq.f32.partialorder %v6672_v57, %v7073_v47  ;;  %vm3305_vm14 = vcmp.eq.f32.partialorder %v6533_v0, %v7073_v47  ;;  %vm3327_vm15 = vcmp.eq.f32.partialorder %v6526_v11, %v7073_v47  ;;  %vm2493_vm0 = vcmp.eq.f32.partialorder %v6792_v16, %v7073_v47 }
 0x645   : > { %v1790_v60 = vsel %vm1780_vm5, %v1787_v59, 0.0  ;;  %v1941_v33 = vpop.permute.xlu0 %1940  ;;  %vm2515_vm3 = vcmp.eq.f32.partialorder %v6540_v18, %v7073_v47  ;;  %vm2537_vm4 = vcmp.eq.f32.partialorder %v6857_v5, %v7073_v47  ;;  %vm2559_vm5 = vcmp.eq.f32.partialorder %v6550_v2, %v7073_v47 }
 0x646   : > { %5057 = vset.pattern.permute.xlu1 %v8060_v4  ;;  %2895 = vperm.xlu0 %5094, %v6975_v53   ;;  %v1944_v29 = vsel %vm1934_vm13, %v1941_v33, 0.0  ;;  %vm1978_vm6 = vcmp.eq.f32.partialorder %v6798_v12, %v7073_v47  ;;  %vm2000_vm8 = vcmp.eq.f32.partialorder %v6587_v10, %v7073_v47  ;;  %vm2871_vm10 = vcmp.eq.f32.partialorder %v6569_v48, %v7073_v47 }
 0x647   : > { %2631 = vperm.xlu1 %5057, %v6846_v37   ;;  %vm2915_vm13 = vcmp.eq.f32.partialorder %v6713_v17, %v7073_v47 }
 0x649   : > { %v3224_v14 = vpop.permute.xlu1 %3223  ;;  %v3334_v55 = vpop.permute.xlu0 %3333 }
 0x64a   : > { %v3227_v8 = vsel %vm3217_vm2, %v3224_v14, 0.0  ;;  %5101 = vset.pattern.permute.xlu0 %v8060_v4  ;;  %vm2471_vm2 = vcmp.eq.f32.partialorder %v6390_v46, %v7073_v47 }
 0x64b   : > { %v3251_v34 = vadd.f32 %v3249_v41, %v3227_v8  ;;  %5058 = vset.pattern.permute.xlu1 %v8065_v38  ;;  %2583 = vperm.xlu0 %5101, %v6947_v32   ;;  %v1812_v8 = vsel %vm1802_vm7, %v1809_v27, 0.0  ;;  %vm1956_vm7 = vcmp.eq.f32.partialorder %v6405_v51, %v7073_v47 }
 0x64c   : > { %2072 = vperm.xlu1 %5058, %v6829_v19   ;;  %v1814_v14 = vadd.f32 %v1812_v8, %v1790_v60  ;;  %v3337_v60 = vsel %vm3327_vm15, %v3334_v55, 0.0  ;;  %vm2959_vm15 = vcmp.eq.f32.partialorder %v6945_v43, %v7073_v47  ;;  %v8066_v43 = vld [vmem:[#allocation105_spill] sm:$0xff] }
 0x64d   : > { %v3273_v36 = vadd.f32 %v3271_v39, %v3251_v34  ;;  %v2522_v8 = vpop.permute.xlu0 %2521 }
 0x64e   : > { %v1875_v50 = vpop.permute.xlu1 %1874  ;;  %v1836_v34 = vadd.f32 %v1834_v61, %v1814_v14 }
 0x64f   : > { %2605 = vperm.xlu0 %5101, %v6975_v53   ;;  %v3295_v41 = vadd.f32 %v3293_v54, %v3273_v36  ;;  %v1878_v59 = vsel %vm1868_vm9, %v1875_v50, 0.0  ;;  %vm2022_vm9 = vcmp.eq.f32.partialorder %v6874_v49, %v7073_v47 }
 0x650   : > { %5059 = vset.pattern.permute.xlu1 %v8029_v6  ;;  %v1858_v19 = vadd.f32 %v1856_v20, %v1836_v34  ;;  %v2525_v34 = vsel %vm2515_vm3, %v2522_v8, 0.0 }
 0x651   : > { %2987 = vperm.xlu1 %5059, %v6837_v63   ;;  %v1963_v14 = vpop.permute.xlu0 %1962 }
 0x652   : > { %v1897_v23 = vpop.permute.xlu1 %1896  ;;  %v1880_v27 = vadd.f32 %v1878_v59, %v1858_v19  ;;  %v1966_v33 = vsel %vm1956_vm7, %v1963_v14, 0.0 }
 0x653   : > { %5105 = vset.pattern.permute.xlu0 %v8065_v38  ;;  %v1900_v63 = vsel %vm1890_vm11, %v1897_v23, 0.0  ;;  %vm2849_vm11 = vcmp.eq.f32.partialorder %v6399_v42, %v7073_v47 }
 0x654   : > { %2046 = vperm.xlu0 %5105, %v6992_v9   ;;  %v1902_v31 = vadd.f32 %v1900_v63, %v1880_v27 }
 0x655   : > { %5062 = vset.pattern.permute.xlu1 %v8065_v38  ;;  %v2566_v16 = vpop.permute.xlu0 %2565 }
 0x656   : > { %2116 = vperm.xlu1 %5062, %v6846_v37   ;;  %v2569_v19 = vsel %vm2559_vm5, %v2566_v16, 0.0 }
 0x657   : > { %v7107_v35 = vpop.permute.xlu1 %1422 }
 0x658   : > { %2090 = vperm.xlu0 %5105, %v6975_v53  }
 0x659   : > { %v2007_v27 = vpop.permute.xlu0 %2006 }
 0x65a   : > { %5063 = vset.pattern.permute.xlu1 %v8032_v44 }
 0x65b   : > { %2134 = vperm.xlu1 %5063, %v6992_v9  }
 0x65c   : > { %v1919_v37 = vpop.permute.xlu1 %1918  ;;  %3016 = vrot.lane.b32.xlu0 %v6105_v25, %s5453_s3 }
 0x65d   : > { %v1922_v52 = vsel %vm1912_vm12, %v1919_v37, 0.0  ;;  %5111 = vset.pattern.permute.xlu0 %v8030_v45  ;;  %v2029_v37 = vpop.permute.xlu0 %2028  ;;  %vm2893_vm12 = vcmp.eq.f32.partialorder %v6583_v58, %v7073_v47 }
 0x65e   : > { %v1924_v62 = vadd.f32 %v1922_v52, %v1902_v31  ;;  %v2032_v12 = vsel %vm2022_vm9, %v2029_v37, 0.0 }
 0x65f   : > { %2156 = vperm.xlu1 %5063, %v6947_v32  }
 0x660   : > { %v7122_v44 = vadd.f32 %v1944_v29, %v1924_v62  ;;  %v2010_v62 = vsel %vm2000_vm8, %v2007_v27, 0.0 }
 0x661   : > { %v3312_v1 = vpop.permute.xlu1 %3311 }
 0x662   : > { %v3315_v39 = vsel %vm3305_vm14, %v3312_v1, 0.0  ;;  %vm2937_vm14 = vcmp.eq.f32.partialorder %v6731_v3, %v7073_v47 }
 0x663   : > { %v3317_v25 = vadd.f32 %v3315_v39, %v3295_v41  ;;  %2178 = vperm.xlu1 %5063, %v6975_v53  }
 0x665   : > { %v7129_v57 = vadd.f32 %v3337_v60, %v3317_v25 }
 0x666   : > { %v7131_v36 = vpop.permute.xlu1 %1474 }
 0x667   : > { %5065 = vset.pattern.permute.xlu1 %v8033_v24 }
 0x668   : > { %2222 = vperm.xlu1 %5065, %v6992_v9  }
 0x66a   : > { %v7135_v54 = vpop.permute.xlu1 %1500 }
 0x66c   : > { %2266 = vperm.xlu1 %5065, %v6975_v53  }
 0x66f   : > { %v2478_v0 = vpop.permute.xlu1 %2477 }
 0x670   : > { %5067 = vset.pattern.permute.xlu1 %v8036_v21 }
 0x671   : > { %1606 = vperm.xlu1 %5067, %v6992_v9  }
 0x673   : > { %v2500_v11 = vpop.permute.xlu1 %2499 }
 0x674   : > { %v2503_v21 = vsel %vm2493_vm0, %v2500_v11, 0.0  ;;  %vm2044_vm0 = vcmp.eq.f32.partialorder %v8066_v43, %v7073_v47  ;;  %v8080_v43 = vld [vmem:[#allocation118_spill] sm:$0xff] }
 0x675   : > { %1628 = vperm.xlu1 %5067, %v6947_v32  }
 0x678   : > { %v7141_v50 = vpop.permute.xlu1 %3355 }
 0x679   : > { %1650 = vperm.xlu1 %5067, %v6975_v53  }
 0x67d   : > { %5069 = vset.pattern.permute.xlu1 %v8038_v15  ;;  %v7145_v24 = vpop.permute.xlu1 %1522  ;;  %v2481_v15 = vsel %vm2471_vm2, %v2478_v0, 0.0 }
 0x67e   : > { %1694 = vperm.xlu1 %5069, %v6992_v9   ;;  %v2505_v61 = vadd.f32 %v2503_v21, %v2481_v15 }
 0x680   : > { %v2527_v46 = vadd.f32 %v2525_v34, %v2505_v61 }
 0x682   : > { %1738 = vperm.xlu1 %5069, %v6975_v53   ;;  %v7149_v41 = vpop.permute.xlu1 %3377 }
 0x686   : > { %5071 = vset.pattern.permute.xlu1 %v8020_v13 }
 0x687   : > { %1782 = vperm.xlu1 %5071, %v6992_v9   ;;  %v7157_v23 = vpop.permute.xlu1 %1544 }
 0x68b   : > { %1804 = vperm.xlu1 %5071, %v6947_v32  }
 0x68c   : > { %v2544_v20 = vpop.permute.xlu1 %2543 }
 0x68d   : > { %v2547_v59 = vsel %vm2537_vm4, %v2544_v20, 0.0 }
 0x68e   : > { %v2549_v13 = vadd.f32 %v2547_v59, %v2527_v46  ;;  %v8068_v59 = vld [vmem:[#allocation112_spill] sm:$0xff] }
 0x68f   : > { %5074 = vset.pattern.permute.xlu1 %v8022_v56  ;;  %vm2088_vm3 = vcmp.eq.f32.partialorder %v8068_v59, %v7073_v47  ;;  %v8083_v59 = vld [vmem:[#allocation74_spill] sm:$0xff] }
 0x690   : > { %3241 = vperm.xlu1 %5074, %v6947_v32   ;;  %v7168_v18 = vadd.f32 %v2569_v19, %v2549_v13 }
 0x691   : > { %v2856_v63 = vpop.permute.xlu1 %2855 }
 0x692   : > { %v2859_v39 = vsel %vm2849_vm11, %v2856_v63, 0.0  ;;  %v8069_v63 = vmov 44   ;;  %vm2176_vm11 = vcmp.eq.f32.partialorder %v8080_v43, %v7073_v47  ;;  %v8094_v43 = vld [vmem:[#allocation75_spill] sm:$0xff] }
 0x694   : > { %5077 = vset.pattern.permute.xlu1 %v8024_v26 }
 0x695   : > { %1892 = vperm.xlu1 %5077, %v6947_v32   ;;  %v2878_v5 = vpop.permute.xlu1 %2877 }
 0x696   : > { %v2881_v49 = vsel %vm2871_vm10, %v2878_v5, 0.0 }
 0x697   : > { %v2883_v60 = vadd.f32 %v2881_v49, %v2859_v39 }
 0x699   : > { %5078 = vset.pattern.permute.xlu1 %v8022_v56 }
 0x69a   : > { %v1985_v2 = vpop.permute.xlu1 %1984  ;;  %3285 = vperm.xlu1 %5078, %v6937_v22  }
 0x69b   : > { %v1988_v31 = vsel %vm1978_vm6, %v1985_v2, 0.0 }
 0x69c   : > { %v1990_v52 = vadd.f32 %v1988_v31, %v1966_v33  ;;  %v8071_v31 = vld [vmem:[#allocation151_spill] sm:$0xff] }
 0x69d   : > { %vm3003_vm5 = vcmp.eq.f32.partialorder %v8071_v31, %v7073_v47 }
 0x69e   : > { %v2012_v56 = vadd.f32 %v2010_v62, %v1990_v52  ;;  %5080 = vset.pattern.permute.xlu1 %v8027_v7  ;;  %v8072_v62 = vmov 38  }
 0x69f   : > { %v7183_v29 = vpop.permute.xlu1 %1566  ;;  %1443 = vperm.xlu1 %5080, %v6947_v32  }
 0x6a0   : > { %v2034_v51 = vadd.f32 %v2032_v12, %v2012_v56  ;;  %v8073_v12 = vld [vmem:[#allocation158_spill] sm:$0xff] }
 0x6a1   : > { %vm2110_vm6 = vcmp.eq.f32.partialorder %v8073_v12, %v7073_v47 }
 0x6a3   : > { %5081 = vset.pattern.permute.xlu1 %v8024_v26  ;;  %v2944_v26 = vpop.permute.xlu0 %2943 }
 0x6a4   : > { %v2900_v55 = vpop.permute.xlu1 %2899  ;;  %1914 = vperm.xlu1 %5081, %v6975_v53   ;;  %v2947_v58 = vsel %vm2937_vm14, %v2944_v26, 0.0 }
 0x6a5   : > { %v2903_v25 = vsel %vm2893_vm12, %v2900_v55, 0.0 }
 0x6a6   : > { %v2905_v48 = vadd.f32 %v2903_v25, %v2883_v60  ;;  %v8074_v25 = vld [vmem:[#allocation128_spill] sm:$0xff] }
 0x6a7   : > { %v2966_v42 = vpop.permute.xlu0 %2965  ;;  %vm2153_vm7 = vcmp.eq.f32.partialorder %v8074_v25, %v7073_v47  ;;  %v8089_v25 = vld [vmem:[#allocation51_spill] sm:$0xff] }
 0x6a8   : > { %5082 = vset.pattern.permute.xlu1 %v8030_v45  ;;  %v2969_v21 = vsel %vm2959_vm15, %v2966_v42, 0.0  ;;  %v8077_v42 = vld [vmem:[#allocation49_spill] sm:$0xff] }
 0x6a9   : > { %v7189_v10 = vpop.permute.xlu1 %1588  ;;  %3307 = vperm.xlu1 %5082, %v6992_v9   ;;  %vm2131_vm10 = vcmp.eq.f32.partialorder %v8077_v42, %v7073_v47 }
 0x6ab   : > { %v2095_v34 = vpop.permute.xlu0 %2094 }
 0x6ac   : > { %v2098_v19 = vsel %vm2088_vm3, %v2095_v34, 0.0  ;;  %v8081_v34 = vld [vmem:[#allocation73_spill] sm:$0xff] }
 0x6ad   : > { %5083 = vset.pattern.permute.xlu1 %v8027_v7  ;;  %vm2175_vm12 = vcmp.eq.f32.partialorder %v8081_v34, %v7073_v47 }
 0x6ae   : > { %v7195_v1 = vpop.permute.xlu1 %2587  ;;  %1469 = vperm.xlu1 %5083, %v6975_v53  }
 0x6af   : > { %v3010_v27 = vpop.permute.xlu0 %3009 }
 0x6b0   : > { %v3013_v52 = vsel %vm3003_vm5, %v3010_v27, 0.0  ;;  %vm2263_vm5 = vcmp.eq.f32.partialorder %v8094_v43, %v7073_v47 }
 0x6b2   : > { %5087 = vset.pattern.permute.xlu1 %v8035_v30 }
 0x6b3   : > { %v2922_v7 = vpop.permute.xlu1 %2921  ;;  %2473 = vperm.xlu1 %5087, %v6992_v9   ;;  %v2201_v39 = vpop.permute.xlu0 %2200 }
 0x6b4   : > { %v2925_v0 = vsel %vm2915_vm13, %v2922_v7, 0.0  ;;  %v8075_v7 = vld [vmem:[#allocation45_spill] sm:$0xff]  ;;  %vm2198_vm13 = vcmp.eq.f32.partialorder %v8083_v59, %v7073_v47 }
 0x6b5   : > { %v2927_v11 = vadd.f32 %v2925_v0, %v2905_v48  ;;  %vm2132_vm8 = vcmp.eq.f32.partialorder %v8075_v7, %v7073_v47  ;;  %v8076_v0 = vld [vmem:[#allocation117_spill] sm:$0xff] }
 0x6b6   : > { %vm2154_vm9 = vcmp.eq.f32.partialorder %v8076_v0, %v7073_v47  ;;  %v8091_v0 = vld [vmem:[#allocation129_spill] sm:$0xff] }
 0x6b7   : > { %v2949_v8 = vadd.f32 %v2947_v58, %v2927_v11  ;;  %2495 = vperm.xlu1 %5087, %v6947_v32   ;;  %v8078_v11 = vld [vmem:[#allocation154_spill] sm:$0xff]  ;;  %vm2241_vm3 = vcmp.eq.f32.partialorder %v8091_v0, %v7073_v47  ;;  %v8107_v0 = vld [vmem:[#allocation59_spill] sm:$0xff] }
 0x6b8   : > { %v7211_v14 = vpop.permute.xlu1 %2609  ;;  %v2164_v58 = vsel %vm2154_vm9, %v8078_v11, 0.0  ;;  %v8092_v11 = vld [vmem:[#allocation119_spill] sm:$0xff] }
 0x6b9   : > { %v2971_v17 = vadd.f32 %v2969_v21, %v2949_v8  ;;  %v8079_v8 = vld [vmem:[#allocation164_spill] sm:$0xff] }
 0x6ba   : > { %v2142_v21 = vsel %vm2132_vm8, %v8079_v8, 0.0 }
 0x6bb   : > { %5088 = vset.pattern.permute.xlu1 %v8030_v45  ;;  %v8067_v45 = vld [vmem:[#allocation153_spill] sm:$0xff] }
 0x6bc   : > { %3351 = vperm.xlu1 %5088, %v6975_v53   ;;  %vm2066_vm2 = vcmp.eq.f32.partialorder %v8067_v45, %v7073_v47 }
 0x6bd   : > { %v2051_v15 = vpop.permute.xlu1 %2050 }
 0x6be   : > { %v2054_v61 = vsel %vm2044_vm0, %v2051_v15, 0.0 }
 0x6bf   : > { %v2056_v16 = vadd.f32 %v2054_v61, %v2034_v51 }
 0x6c0   : > { %5089 = vset.pattern.permute.xlu1 %v8043_v28 }
 0x6c1   : > { %1518 = vperm.xlu1 %5089, %v6992_v9  }
 0x6c2   : > { %v7217_v3 = vpop.permute.xlu1 %2631 }
 0x6c5   : > { %5093 = vset.pattern.permute.xlu1 %v8035_v30  ;;  %v8070_v30 = vld [vmem:[#allocation111_spill] sm:$0xff] }
 0x6c6   : > { %2539 = vperm.xlu1 %5093, %v6937_v22   ;;  %vm2981_vm4 = vcmp.eq.f32.partialorder %v8070_v30, %v7073_v47  ;;  %v8085_v30 = vld [vmem:[#allocation157_spill] sm:$0xff] }
 0x6c7   : > { %v2073_v46 = vpop.permute.xlu1 %2072  ;;  %v2208_v27 = vsel %vm2198_vm13, %v8085_v30, 0.0 }
 0x6c8   : > { %v2076_v20 = vsel %vm2066_vm2, %v2073_v46, 0.0  ;;  %vm2242_vm2 = vcmp.eq.f32.partialorder %v8089_v25, %v7073_v47  ;;  %v8104_v25 = vld [vmem:[#allocation166_spill] sm:$0xff] }
 0x6c9   : > { %v2078_v13 = vadd.f32 %v2076_v20, %v2056_v16  ;;  %v8082_v16 = vld [vmem:[#allocation156_spill] sm:$0xff] }
 0x6ca   : > { %5095 = vset.pattern.permute.xlu1 %v8069_v63  ;;  %v2186_v46 = vsel %vm2176_vm11, %v8082_v16, 0.0 }
 0x6cb   : > { %2873 = vperm.xlu1 %5095, %v6947_v32   ;;  %v2100_v5 = vadd.f32 %v2098_v19, %v2078_v13  ;;  %v2166_v13 = vadd.f32 %v2164_v58, %v2142_v21  ;;  %v8084_v19 = vld [vmem:[#allocation141_spill] sm:$0xff]  ;;  %v8093_v21 = vld [vmem:[#allocation163_spill] sm:$0xff] }
 0x6cc   : > { %v2988_v2 = vpop.permute.xlu1 %2987  ;;  %vm2197_vm14 = vcmp.eq.f32.partialorder %v8084_v19, %v7073_v47 }
 0x6cd   : > { %v2991_v33 = vsel %vm2981_vm4, %v2988_v2, 0.0  ;;  %v2207_v2 = vsel %vm2197_vm14, %v2201_v39, 0.0  ;;  %v2188_v31 = vadd.f32 %v2186_v46, %v2166_v13  ;;  %vm2264_vm4 = vcmp.eq.f32.partialorder %v8092_v11, %v7073_v47 }
 0x6ce   : > { %v2993_v37 = vadd.f32 %v2991_v33, %v2971_v17  ;;  %v2245_v17 = vpop.permute.xlu0 %2244  ;;  %v8086_v33 = vld [vmem:[#allocation65_spill] sm:$0xff] }
 0x6cf   : > { %5096 = vset.pattern.permute.xlu1 %v8072_v62  ;;  %vm2220_vm15 = vcmp.eq.f32.partialorder %v8086_v33, %v7073_v47  ;;  %v2210_v39 = vadd.f32 %v2208_v27, %v2188_v31  ;;  %v2251_v8 = vsel %vm2241_vm3, %v2245_v17, 0.0  ;;  %v8097_v17 = vld [vmem:[#allocation142_spill] sm:$0xff]  ;;  %v8098_v31 = vld [vmem:[#allocation41_spill] sm:$0xff] }
 0x6d0   : > { %v7234_v56 = vadd.f32 %v3013_v52, %v2993_v37  ;;  %1958 = vperm.xlu1 %5096, %v6992_v9   ;;  %v8087_v52 = vld [vmem:[#allocation159_spill] sm:$0xff] }
 0x6d1   : > { %v2117_v51 = vpop.permute.xlu1 %2116  ;;  %v2230_v12 = vsel %vm2220_vm15, %v8087_v52, 0.0  ;;  %v8100_v52 = vld [vmem:[#allocation131_spill] sm:$0xff] }
 0x6d2   : > { %v2120_v55 = vsel %vm2110_vm6, %v2117_v51, 0.0  ;;  %v2289_v51 = vpop.permute.xlu0 %2288  ;;  %v2232_v58 = vadd.f32 %v2230_v12, %v2210_v39  ;;  %vm1625_vm8 = vcmp.eq.f32.partialorder %v8100_v52, %v7073_v47 }
 0x6d3   : > { %v7239_v49 = vadd.f32 %v2120_v55, %v2100_v5  ;;  %v8088_v55 = vld [vmem:[#allocation50_spill] sm:$0xff] }
 0x6d4   : > { %1980 = vperm.xlu1 %5096, %v6947_v32   ;;  %vm2219_vm0 = vcmp.eq.f32.partialorder %v8088_v55, %v7073_v47  ;;  %v8102_v55 = vld [vmem:[#allocation52_spill] sm:$0xff] }
 0x6d6   : > { %v2135_v26 = vpop.permute.xlu1 %2134  ;;  %v1673_v13 = vpop.permute.xlu0 %1672 }
 0x6d7   : > { %v2141_v15 = vsel %vm2131_vm10, %v2135_v26, 0.0  ;;  %vm1603_vm10 = vcmp.eq.f32.partialorder %v8102_v55, %v7073_v47 }
 0x6d8   : > { %5097 = vset.pattern.permute.xlu1 %v8043_v28 }
 0x6d9   : > { %1562 = vperm.xlu1 %5097, %v6975_v53  }
 0x6da   : > { %v2157_v60 = vpop.permute.xlu1 %2156 }
 0x6db   : > { %v2163_v48 = vsel %vm2153_vm7, %v2157_v60, 0.0  ;;  %vm2285_vm7 = vcmp.eq.f32.partialorder %v8097_v17, %v7073_v47 }
 0x6dc   : > { %v2165_v61 = vadd.f32 %v2163_v48, %v2141_v15  ;;  %v8090_v48 = vld [vmem:[#allocation161_spill] sm:$0xff]  ;;  %v2274_v15 = vsel %vm2264_vm4, %v8093_v21, 0.0  ;;  %v2295_v30 = vsel %vm2285_vm7, %v2289_v51, 0.0 }
 0x6dd   : > { %5098 = vset.pattern.permute.xlu1 %v8060_v4  ;;  %v2252_v7 = vsel %vm2242_vm2, %v8090_v48, 0.0  ;;  %v8105_v48 = vld [vmem:[#allocation46_spill] sm:$0xff] }
 0x6de   : > { %v2179_v45 = vpop.permute.xlu1 %2178  ;;  %2561 = vperm.xlu1 %5098, %v6992_v9   ;;  %v2254_v16 = vadd.f32 %v2252_v7, %v2232_v58  ;;  %vm1604_vm11 = vcmp.eq.f32.partialorder %v8105_v48, %v7073_v47  ;;  %v8109_v58 = vld [vmem:[#allocation78_spill] sm:$0xff] }
 0x6df   : > { %v2185_v20 = vsel %vm2175_vm12, %v2179_v45, 0.0  ;;  %v8095_v45 = vld [vmem:[#allocation76_spill] sm:$0xff]  ;;  %vm1670_vm14 = vcmp.eq.f32.partialorder %v8109_v58, %v7073_v47 }
 0x6e0   : > { %v2187_v5 = vadd.f32 %v2185_v20, %v2165_v61  ;;  %vm2286_vm6 = vcmp.eq.f32.partialorder %v8095_v45, %v7073_v47  ;;  %v8096_v20 = vld [vmem:[#allocation165_spill] sm:$0xff] }
 0x6e1   : > { %v2296_v59 = vsel %vm2286_vm6, %v8096_v20, 0.0  ;;  %v8113_v20 = vld [vmem:[#allocation35_spill] sm:$0xff] }
 0x6e2   : > { %5099 = vset.pattern.permute.xlu1 %v8072_v62  ;;  %v2209_v37 = vadd.f32 %v2207_v2, %v2187_v5  ;;  %v2276_v5 = vadd.f32 %v2274_v15, %v2254_v16  ;;  %v8111_v15 = vld [vmem:[#allocation168_spill] sm:$0xff]  ;;  %v8112_v16 = vld [vmem:[#allocation143_spill] sm:$0xff] }
 0x6e3   : > { %v2223_v26 = vpop.permute.xlu1 %2222  ;;  %2002 = vperm.xlu1 %5099, %v6975_v53   ;;  %vm1669_vm15 = vcmp.eq.f32.partialorder %v8112_v16, %v7073_v47 }
 0x6e4   : > { %v2229_v60 = vsel %vm2219_vm0, %v2223_v26, 0.0  ;;  %v2298_v2 = vadd.f32 %v2296_v59, %v2276_v5  ;;  %v8103_v26 = vld [vmem:[#allocation38_spill] sm:$0xff]  ;;  %v8114_v59 = vld [vmem:[#allocation169_spill] sm:$0xff]  ;;  %v8115_v5 = vld [vmem:[#allocation47_spill] sm:$0xff] }
 0x6e5   : > { %v2231_v42 = vadd.f32 %v2229_v60, %v2209_v37  ;;  %v8099_v37 = vld [vmem:[#allocation60_spill] sm:$0xff]  ;;  %v1680_v17 = vsel %vm1670_vm14, %v8114_v59, 0.0  ;;  %vm1692_vm0 = vcmp.eq.f32.partialorder %v8115_v5, %v7073_v47 }
 0x6e7   : > { %v2267_v61 = vpop.permute.xlu1 %2266  ;;  %v2253_v34 = vadd.f32 %v2251_v8, %v2231_v42  ;;  %5100 = vset.pattern.permute.xlu1 %v8043_v28  ;;  %v1717_v28 = vpop.permute.xlu0 %1716  ;;  %v8108_v42 = vld [vmem:[#allocation77_spill] sm:$0xff]  ;;  %v8110_v8 = vld [vmem:[#allocation167_spill] sm:$0xff] }
 0x6e8   : > { %v2273_v46 = vsel %vm2263_vm5, %v2267_v61, 0.0  ;;  %1584 = vperm.xlu1 %5100, %v6937_v22   ;;  %vm1647_vm13 = vcmp.eq.f32.partialorder %v8108_v42, %v7073_v47  ;;  %v1614_v21 = vsel %vm1604_vm11, %v8110_v8, 0.0 }
 0x6e9   : > { %v2275_v19 = vadd.f32 %v2273_v46, %v2253_v34 }
 0x6eb   : > { %v2297_v27 = vadd.f32 %v2295_v30, %v2275_v19  ;;  %v1761_v61 = vpop.permute.xlu0 %1760  ;;  %v1679_v19 = vsel %vm1669_vm15, %v1673_v13, 0.0  ;;  %v8119_v13 = vld [vmem:[#allocation53_spill] sm:$0xff] }
 0x6ec   : > { %v1607_v33 = vpop.permute.xlu1 %1606  ;;  %5102 = vset.pattern.permute.xlu1 %v8069_v63  ;;  %v8101_v63 = vld [vmem:[#allocation120_spill] sm:$0xff]  ;;  %vm1714_vm3 = vcmp.eq.f32.partialorder %v8119_v13, %v7073_v47 }
 0x6ed   : > { %2917 = vperm.xlu1 %5102, %v6937_v22   ;;  %4540 = vmatprep.mubr.msk.f32.mxu1 %vm1116_vm1, %v2297_v27  ;;  %vm1626_vm9 = vcmp.eq.f32.partialorder %v8101_v63, %v7073_v47  ;;  %v1613_v60 = vsel %vm1603_vm10, %v1607_v33, 0.0  ;;  %v8116_v27 = vld [vmem:[#allocation57_spill] sm:$0xff]  ;;  %v8117_v33 = vld [vmem:[#allocation170_spill] sm:$0xff]  ;;  %v8121_v63 = vld [vmem:[#allocation171_spill] sm:$0xff] }
 0x6ee   : > { %4541 = vmatmul.mubr.msk.f32.vlgmr.msra.gmra.mxu1 %vm1116_vm1, %v2298_v2  ;;  %v1636_v39 = vsel %vm1626_vm9, %v8104_v25, 0.0  ;;  %v1724_v55 = vsel %vm1714_vm3, %v8121_v63, 0.0  ;;  %vm2380_vm9 = vcmask 523264  }
 0x6ef   : > { %4570 = vmatpush3.msra.mxu1 %v8098_v31  ;;  %v1638_v45 = vadd.f32 %v1636_v39, %v1614_v21  ;;  %v1702_v31 = vsel %vm1692_vm0, %v8117_v33, 0.0  ;;  %v7340_v25 = vpop.permute.xlu0 %1826  ;;  %v8133_v33 = vld [vmem:[#allocation40_spill] sm:$0xff] }
 0x6f0   : > { %4571 = vmatprep.subr.mxu1 %v8099_v37  ;;  %v1629_v12 = vpop.permute.xlu1 %1628 }
 0x6f1   : > { %v1635_v51 = vsel %vm1625_vm8, %v1629_v12, 0.0  ;;  %4572 = vmatpush3.msra.mxu1 %v8099_v37  ;;  %5103 = vset.pattern.permute.xlu1 %v8072_v62  ;;  %v8106_v62 = vld [vmem:[#allocation121_spill] sm:$0xff]  ;;  %v8118_v37 = vld [vmem:[#allocation122_spill] sm:$0xff] }
 0x6f2   : > { %4573 = vmatprep.subr.mxu1 %v8103_v26  ;;  %2024 = vperm.xlu1 %5103, %v6937_v22   ;;  %vm1648_vm12 = vcmp.eq.f32.partialorder %v8106_v62, %v7073_v47  ;;  %v1637_v7 = vadd.f32 %v1635_v51, %v1613_v60  ;;  %vm1691_vm2 = vcmp.eq.f32.partialorder %v8118_v37, %v7073_v47  ;;  %v8120_v51 = vld [vmem:[#allocation32_spill] sm:$0xff]  ;;  %v8123_v60 = vld [vmem:[#allocation54_spill] sm:$0xff] }
 0x6f3   : > { %4574 = vmatpush3.msra.mxu1 %v8103_v26  ;;  %v1658_v43 = vsel %vm1648_vm12, %v8111_v15, 0.0  ;;  %v8122_v26 = vld [vmem:[#allocation133_spill] sm:$0xff]  ;;  %vm1736_vm5 = vcmp.eq.f32.partialorder %v8123_v60, %v7073_v47  ;;  %v1849_v59 = vpop.permute.xlu0 %1848  ;;  %v8134_v37 = vld [vmem:[#allocation36_spill] sm:$0xff] }
 0x6f4   : > { %4575 = vmatprep.subr.mxu1 %v8107_v0  ;;  %v1651_v11 = vpop.permute.xlu1 %1650  ;;  %v1660_v30 = vadd.f32 %v1658_v43, %v1638_v45  ;;  %vm1713_vm4 = vcmp.eq.f32.partialorder %v8122_v26, %v7073_v47  ;;  %v8128_v43 = vld [vmem:[#allocation42_spill] sm:$0xff]  ;;  %v8130_v45 = vld [vmem:[#allocation144_spill] sm:$0xff] }
 0x6f5   : > { %v1657_v34 = vsel %vm1647_vm13, %v1651_v11, 0.0  ;;  %4576 = vmatpush3.msra.mxu1 %v8107_v0  ;;  %v1723_v62 = vsel %vm1713_vm4, %v1717_v28, 0.0  ;;  %v8125_v0 = vld [vmem:[#allocation172_spill] sm:$0xff]  ;;  %v8126_v11 = vld [vmem:[#allocation134_spill] sm:$0xff]  ;;  %v8129_v28 = vld [vmem:[#allocation173_spill] sm:$0xff]  ;;  %vm1757_vm8 = vcmp.eq.f32.partialorder %v8130_v45, %v7073_v47 }
 0x6f6   : > { %v1659_v46 = vadd.f32 %v1657_v34, %v1637_v7  ;;  %4577 = vmatprep.subr.mxu1 %v8113_v20  ;;  %5104 = vset.pattern.permute.xlu1 %v8029_v6  ;;  %v1682_v12 = vadd.f32 %v1680_v17, %v1660_v30  ;;  %v8124_v7 = vld [vmem:[#allocation34_spill] sm:$0xff]  ;;  %v1746_v42 = vsel %vm1736_vm5, %v8125_v0, 0.0  ;;  %vm1735_vm6 = vcmp.eq.f32.partialorder %v8126_v11, %v7073_v47  ;;  %v8131_v30 = vld [vmem:[#allocation43_spill] sm:$0xff]  ;;  %v8140_v26 = vld [vmem:[#allocation80_spill] sm:$0xff] }
 0x6f7   : > { %4578 = vmatpush3.msra.mxu1 %v8113_v20  ;;  %2939 = vperm.xlu1 %5104, %v6992_v9   ;;  %v1767_v20 = vsel %vm1757_vm8, %v1761_v61, 0.0  ;;  %vm1823_vm12 = vcmp.eq.f32.partialorder %v8140_v26, %v7073_v47  ;;  %v8142_v0 = vld [vmem:[#allocation96_spill] sm:$0xff]  ;;  %v8143_v11 = vld [vmem:[#allocation30_spill] sm:$0xff] }
 0x6f8   : > { %4579 = vmatprep.subr.mxu1 %v8116_v27  ;;  %v1681_v2 = vadd.f32 %v1679_v19, %v1659_v46  ;;  %v1704_v48 = vadd.f32 %v1702_v31, %v1682_v12  ;;  %v8136_v12 = vld [vmem:[#allocation37_spill] sm:$0xff]  ;;  %v1833_v60 = vsel %vm1823_vm12, %v7340_v25, 0.0  ;;  %vm1845_vm13 = vcmp.eq.f32.partialorder %v8142_v0, %v7073_v47  ;;  %v8145_v25 = vld [vmem:[#allocation83_spill] sm:$0xff]  ;;  %v8147_v45 = vld [vmem:[#allocation84_spill] sm:$0xff] }
 0x6f9   : > { %4580 = vmatpush3.msra.mxu1 %v8116_v27  ;;  %v1695_v52 = vpop.permute.xlu1 %1694  ;;  %v7366_v27 = vpop.permute.xlu0 %3219  ;;  %vm1889_vm15 = vcmp.eq.f32.partialorder %v8145_v25, %v7073_v47  ;;  %vm1911_vm0 = vcmp.eq.f32.partialorder %v8147_v45, %v7073_v47  ;;  %v8156_v0 = vld [vmem:[#allocation86_spill] sm:$0xff] }
 0x6fa   : > { %v1701_v9 = vsel %vm1691_vm2, %v1695_v52, 0.0  ;;  %4581 = vmatprep.subr.mxu1 %v8120_v51  ;;  %v1726_v21 = vadd.f32 %v1724_v55, %v1704_v48  ;;  %v8135_v52 = vld [vmem:[#allocation135_spill] sm:$0xff]  ;;  %v8141_v48 = vld [vmem:[#allocation44_spill] sm:$0xff]  ;;  %vm3326_vm8 = vcmp.eq.f32.partialorder %v8156_v0, %v7073_v47  ;;  %v8173_v0 = vld [vmem:[#allocation126_spill] sm:$0xff] }
 0x6fb   : > { %v1703_v39 = vadd.f32 %v1701_v9, %v1681_v2  ;;  %4582 = vmatpush3.msra.mxu1 %v8120_v51  ;;  %5106 = vset.pattern.permute.xlu1 %v8060_v4  ;;  %v8127_v4 = vld [vmem:[#allocation79_spill] sm:$0xff]  ;;  %vm1801_vm10 = vcmp.eq.f32.partialorder %v8135_v52, %v7073_v47  ;;  %v8137_v9 = vld [vmem:[#allocation56_spill] sm:$0xff] }
 0x6fc   : > { %4583 = vmatprep.subr.mxu1 %v8124_v7  ;;  %2627 = vperm.xlu1 %5106, %v6937_v22   ;;  %vm1758_vm7 = vcmp.eq.f32.partialorder %v8127_v4, %v7073_v47  ;;  %v1748_v46 = vadd.f32 %v1746_v42, %v1726_v21  ;;  %v8132_v2 = vld [vmem:[#allocation39_spill] sm:$0xff]  ;;  %vm1779_vm11 = vcmp.eq.f32.partialorder %v8137_v9, %v7073_v47  ;;  %v1855_v42 = vsel %vm1845_vm13, %v1849_v59, 0.0  ;;  %v8153_v9 = vld [vmem:[#allocation82_spill] sm:$0xff] }
 0x6fd   : > { %4584 = vmatpush3.msra.mxu1 %v8124_v7  ;;  %v1739_v58 = vpop.permute.xlu1 %1738  ;;  %v1725_v8 = vadd.f32 %v1723_v62, %v1703_v39  ;;  %v1768_v34 = vsel %vm1758_vm7, %v8129_v28, 0.0  ;;  %v8139_v55 = vld [vmem:[#allocation55_spill] sm:$0xff]  ;;  %vm3260_vm5 = vcmp.eq.f32.partialorder %v8153_v9, %v7073_v47 }
 0x6fe   : > { %v1745_v15 = vsel %vm1735_vm6, %v1739_v58, 0.0  ;;  %4595 = vmatprep.subr.mxu1 %v8128_v43  ;;  %v1770_v19 = vadd.f32 %v1768_v34, %v1748_v46 }
 0x6ff   : > { %v1747_v16 = vadd.f32 %v1745_v15, %v1725_v8  ;;  %v8146_v15 = vld [vmem:[#allocation31_spill] sm:$0xff] }
 0x700   : > { %5107 = vset.pattern.permute.xlu1 %v8029_v6 }
 0x701   : > { %v1769_v17 = vadd.f32 %v1767_v20, %v1747_v16  ;;  %2961 = vperm.xlu1 %5107, %v6947_v32   ;;  %v8148_v20 = vld [vmem:[#allocation145_spill] sm:$0xff] }
 0x702   : > { %v1783_v5 = vpop.permute.xlu1 %1782  ;;  %vm1933_vm2 = vcmp.eq.f32.partialorder %v8148_v20, %v7073_v47  ;;  %v8161_v20 = vld [vmem:[#allocation109_spill] sm:$0xff] }
 0x703   : > { %4585 = vmatprep.mubr.msk.f32.mxu1 %vm2380_vm9, %v1769_v17 }
 0x704   : > { %4586 = vmatmul.mubr.msk.f32.vlgmr.msra.gmra.mxu1 %vm2380_vm9, %v1770_v19 }
 0x705   : > { %4596 = vmatpush3.msra.mxu1 %v8128_v43  ;;  %5108 = vset.pattern.permute.xlu1 %v8065_v38 }
 0x706   : > { %4597 = vmatprep.subr.mxu1 %v8131_v30  ;;  %v1805_v61 = vpop.permute.xlu1 %1804  ;;  %2068 = vperm.xlu1 %5108, %v6947_v32   ;;  %v1871_v32 = vpop.permute.xlu0 %1870 }
 0x707   : > { %4598 = vmatpush3.msra.mxu1 %v8131_v30  ;;  %v1811_v13 = vsel %vm1801_vm10, %v1805_v61, 0.0  ;;  %v8149_v61 = vld [vmem:[#allocation81_spill] sm:$0xff] }
 0x708   : > { %4599 = vmatprep.subr.mxu1 %v8132_v2  ;;  %vm3238_vm3 = vcmp.eq.f32.partialorder %v8149_v61, %v7073_v47 }
 0x709   : > { %4600 = vmatpush3.msra.mxu1 %v8132_v2 }
 0x70a   : > { %4601 = vmatprep.subr.mxu1 %v8133_v33  ;;  %5109 = vset.pattern.permute.xlu1 %v8029_v6  ;;  %v1789_v6 = vsel %vm1779_vm11, %v1783_v5, 0.0  ;;  %v3264_v39 = vpop.permute.xlu0 %3263 }
 0x70b   : > { %4602 = vmatpush3.msra.mxu1 %v8133_v33  ;;  %v3242_v31 = vpop.permute.xlu1 %3241  ;;  %2983 = vperm.xlu1 %5109, %v6975_v53   ;;  %v8138_v53 = vld [vmem:[#allocation33_spill] sm:$0xff]  ;;  %v1813_v63 = vadd.f32 %v1811_v13, %v1789_v6  ;;  %v8150_v33 = vld [vmem:[#allocation62_spill] sm:$0xff]  ;;  %v3270_v6 = vsel %vm3260_vm5, %v3264_v39, 0.0 }
 0x70c   : > { %4603 = vmatprep.subr.mxu1 %v8134_v37  ;;  %v3248_v2 = vsel %vm3238_vm3, %v3242_v31, 0.0  ;;  %v8152_v13 = vld [vmem:[#allocation149_spill] sm:$0xff] }
 0x70d   : > { %4604 = vmatpush3.msra.mxu1 %v8134_v37  ;;  %v1835_v62 = vadd.f32 %v1833_v60, %v1813_v63  ;;  %v8151_v37 = vld [vmem:[#allocation123_spill] sm:$0xff]  ;;  %v8154_v31 = vld [vmem:[#allocation97_spill] sm:$0xff] }
 0x70e   : > { %4605 = vmatprep.subr.mxu1 %v8136_v12  ;;  %v7398_v58 = vpop.permute.xlu0 %1417  ;;  %vm3216_vm4 = vcmp.eq.f32.partialorder %v8151_v37, %v7073_v47  ;;  %vm3282_vm6 = vcmp.eq.f32.partialorder %v8154_v31, %v7073_v47  ;;  %v8167_v37 = vld [vmem:[#allocation61_spill] sm:$0xff] }
 0x70f   : > { %4606 = vmatpush3.msra.mxu1 %v8136_v12  ;;  %3005 = vperm.xlu1 %5109, %v6937_v22   ;;  %v1857_v8 = vadd.f32 %v1855_v42, %v1835_v62  ;;  %v3226_v52 = vsel %vm3216_vm4, %v7366_v27, 0.0  ;;  %v8157_v42 = vld [vmem:[#allocation125_spill] sm:$0xff] }
 0x710   : > { %4607 = vmatprep.subr.mxu1 %v8138_v53  ;;  %v1893_v51 = vpop.permute.xlu1 %1892  ;;  %vm3349_vm10 = vcmp.eq.f32.partialorder %v8157_v42, %v7073_v47  ;;  %v8174_v42 = vld [vmem:[#allocation89_spill] sm:$0xff] }
 0x711   : > { %4608 = vmatpush3.msra.mxu1 %v8138_v53  ;;  %v1899_v21 = vsel %vm1889_vm15, %v1893_v51, 0.0  ;;  %vm1413_vm15 = vcmp.eq.f32.partialorder %v8167_v37, %v7073_v47 }
 0x712   : > { %4609 = vmatprep.subr.mxu1 %v8139_v55  ;;  %v1937_v28 = vpop.permute.xlu0 %1936 }
 0x713   : > { %4610 = vmatpush3.msra.mxu1 %v8139_v55  ;;  %5110 = vset.pattern.permute.xlu1 %v8065_v38  ;;  %v8144_v38 = vld [vmem:[#allocation58_spill] sm:$0xff]  ;;  %v1943_v17 = vsel %vm1933_vm2, %v1937_v28, 0.0  ;;  %v8155_v55 = vld [vmem:[#allocation63_spill] sm:$0xff] }
 0x714   : > { %4614 = vmatprep.subr.mxu1 %v8141_v48  ;;  %2112 = vperm.xlu1 %5110, %v6937_v22   ;;  %vm1867_vm14 = vcmp.eq.f32.partialorder %v8144_v38, %v7073_v47  ;;  %vm3304_vm7 = vcmp.eq.f32.partialorder %v8155_v55, %v7073_v47 }
 0x715   : > { %v3286_v7 = vpop.permute.xlu1 %3285  ;;  %v1877_v22 = vsel %vm1867_vm14, %v1871_v32, 0.0 }
 0x716   : > { %v1879_v43 = vadd.f32 %v1877_v22, %v1857_v8  ;;  %v3330_v30 = vpop.permute.xlu0 %3329  ;;  %v3292_v53 = vsel %vm3282_vm6, %v3286_v7, 0.0  ;;  %v3359_v7 = vsel %vm3349_vm10, %v7141_v50, 0.0  ;;  %v8158_v8 = vld [vmem:[#allocation88_spill] sm:$0xff]  ;;  %v8159_v22 = vld [vmem:[#allocation90_spill] sm:$0xff]  ;;  %vm1515_vm6 = vcmp.eq.f32.partialorder %v8173_v0, %v7073_v47 }
 0x717   : > { %v3336_v39 = vsel %vm3326_vm8, %v3330_v30, 0.0  ;;  %vm3348_vm11 = vcmp.eq.f32.partialorder %v8158_v8, %v7073_v47  ;;  %vm3371_vm12 = vcmp.eq.f32.partialorder %v8159_v22, %v7073_v47 }
 0x718   : > { %3473 = vrot.lane.b32.xlu1 %v8143_v11, %s5455_s29  ;;  %v1901_v34 = vadd.f32 %v1899_v21, %v1879_v43  ;;  %v8160_v43 = vld [vmem:[#allocation99_spill] sm:$0xff] }
 0x719   : > { %vm3370_vm13 = vcmp.eq.f32.partialorder %v8160_v43, %v7073_v47 }
 0x71a   : > { %v7400_v4 = vpop.permute.xlu1 %1443  ;;  %v7424_v12 = vpop.permute.xlu0 %1495 }
 0x71c   : > { %3471 = vrot.lane.b32.xlu1 %v8146_v15, %s5455_s29  ;;  %v3381_v15 = vsel %vm3371_vm12, %v7149_v41, 0.0 }
 0x71e   : > { %v7434_v26 = vpop.permute.xlu0 %2517 }
 0x71f   : > { %v1915_v16 = vpop.permute.xlu1 %1914 }
 0x720   : > { %v1921_v46 = vsel %vm1911_vm0, %v1915_v16, 0.0 }
 0x721   : > { %v1923_v59 = vadd.f32 %v1921_v46, %v1901_v34  ;;  %v3361_v34 = vadd.f32 %v3359_v7, %v7129_v57  ;;  %v8163_v57 = vld [vmem:[#allocation115_spill] sm:$0xff] }
 0x722   : > { %v3374_v11 = vpop.permute.xlu0 %3373 }
 0x723   : > { %v1945_v19 = vadd.f32 %v1943_v17, %v1923_v59  ;;  %v3380_v45 = vsel %vm3370_vm13, %v3374_v11, 0.0  ;;  %v3383_v16 = vadd.f32 %v3381_v15, %v3361_v34  ;;  %v8162_v59 = vld [vmem:[#allocation150_spill] sm:$0xff]  ;;  %v8178_v34 = vld [vmem:[#allocation139_spill] sm:$0xff] }
 0x724   : > { %v3308_v5 = vpop.permute.xlu1 %3307  ;;  %v8164_v17 = vld [vmem:[#allocation130_spill] sm:$0xff]  ;;  %vm1559_vm12 = vcmp.eq.f32.partialorder %v8178_v34, %v7073_v47 }
 0x725   : > { %4611 = vmatprep.mubr.msk.f32.mxu1 %vm2380_vm9, %v1945_v19  ;;  %v3314_v27 = vsel %vm3304_vm7, %v3308_v5, 0.0  ;;  %v8165_v5 = vld [vmem:[#allocation132_spill] sm:$0xff]  ;;  %vm1492_vm7 = vcmp.eq.f32.partialorder %v8174_v42, %v7073_v47  ;;  %v8189_v42 = vld [vmem:[#allocation162_spill] sm:$0xff] }
 0x726   : > { %4612 = vmatmul.mubr.msk.f32.vlgmr.msra.gmra.mxu1 %vm2380_vm9, %v7122_v44  ;;  %v3250_v44 = vadd.f32 %v3248_v2, %v3226_v52  ;;  %v8166_v2 = vld [vmem:[#allocation136_spill] sm:$0xff]  ;;  %v1541_v52 = vpop.permute.xlu0 %1540 }
 0x727   : > { %4615 = vmatpush3.msra.mxu1 %v8141_v48  ;;  %vm1439_vm14 = vcmp.eq.f32.partialorder %v8166_v2, %v7073_v47  ;;  %v8182_v2 = vld [vmem:[#allocation146_spill] sm:$0xff] }
 0x728   : > { %4616 = vmatprep.subr.mxu1 %v8150_v33  ;;  %v3272_v63 = vadd.f32 %v3270_v6, %v3250_v44  ;;  %v1425_v44 = vsel %vm1413_vm15, %v7398_v58, 0.0  ;;  %v8172_v58 = vld [vmem:[#allocation98_spill] sm:$0xff] }
 0x729   : > { %4617 = vmatpush3.msra.mxu1 %v8150_v33  ;;  %v1470_v32 = vpop.permute.xlu1 %1469  ;;  %v1451_v33 = vsel %vm1439_vm14, %v7400_v4, 0.0  ;;  %v8170_v4 = vld [vmem:[#allocation124_spill] sm:$0xff]  ;;  %vm1491_vm5 = vcmp.eq.f32.partialorder %v8172_v58, %v7073_v47  ;;  %v8188_v58 = vld [vmem:[#allocation127_spill] sm:$0xff] }
 0x72a   : > { %4621 = vmatprep.subr.mxu1 %v8152_v13  ;;  %v3294_v60 = vadd.f32 %v3292_v53, %v3272_v63  ;;  %v1453_v6 = vadd.f32 %v1451_v33, %v1425_v44  ;;  %v8169_v53 = vld [vmem:[#allocation48_spill] sm:$0xff]  ;;  %vm1466_vm3 = vcmp.eq.f32.partialorder %v8170_v4, %v7073_v47  ;;  %v1503_v7 = vsel %vm1491_vm5, %v7424_v12, 0.0  ;;  %v8177_v12 = vld [vmem:[#allocation91_spill] sm:$0xff]  ;;  %v8183_v44 = vld [vmem:[#allocation66_spill] sm:$0xff] }
 0x72b   : > { %vm1414_vm2 = vcmp.eq.f32.partialorder %v8169_v53, %v7073_v47  ;;  %vm2558_vm5 = vcmp.eq.f32.partialorder %v8188_v58, %v7073_v47  ;;  %v8208_v58 = vld [vmem:[#allocation152_spill] sm:$0xff] }
 0x72c   : > { %v3316_v62 = vadd.f32 %v3314_v27, %v3294_v60  ;;  %v1426_v63 = vsel %vm1414_vm2, %v7107_v35, 0.0  ;;  %v8171_v27 = vld [vmem:[#allocation64_spill] sm:$0xff]  ;;  %vm2470_vm2 = vcmp.eq.f32.partialorder %v8183_v44, %v7073_v47 }
 0x72d   : > { %vm1440_vm4 = vcmp.eq.f32.partialorder %v8171_v27, %v7073_v47 }
 0x72e   : > { %v7430_v51 = vpop.permute.xlu1 %2473  ;;  %v3338_v25 = vadd.f32 %v3336_v39, %v3316_v62  ;;  %v1452_v60 = vsel %vm1440_vm4, %v7099_v40, 0.0  ;;  %v1478_v62 = vsel %vm1466_vm3, %v7131_v36, 0.0  ;;  %v1504_v40 = vsel %vm1492_vm7, %v7135_v54, 0.0  ;;  %v8175_v36 = vld [vmem:[#allocation67_spill] sm:$0xff] }
 0x72f   : > { %v1454_v39 = vadd.f32 %v1452_v60, %v1426_v63  ;;  %vm1516_vm8 = vcmp.eq.f32.partialorder %v8175_v36, %v7073_v47  ;;  %v8184_v63 = vld [vmem:[#allocation137_spill] sm:$0xff]  ;;  %v8187_v60 = vld [vmem:[#allocation160_spill] sm:$0xff] }
 0x730   : > { %vm2514_vm3 = vcmp.eq.f32.partialorder %v8184_v63, %v7073_v47 }
 0x731   : > { %v2524_v4 = vsel %vm2514_vm3, %v7434_v26, 0.0 }
 0x732   : > { %v7436_v48 = vpop.permute.xlu1 %2495 }
 0x737   : > { %v3352_v38 = vpop.permute.xlu1 %3351 }
 0x738   : > { %v3358_v21 = vsel %vm3348_vm11, %v3352_v38, 0.0  ;;  %v1480_v38 = vadd.f32 %v1478_v62, %v1454_v39  ;;  %vm1537_vm11 = vcmp.eq.f32.partialorder %v8177_v12, %v7073_v47 }
 0x739   : > { %v3360_v28 = vadd.f32 %v3358_v21, %v3338_v25  ;;  %v1526_v25 = vsel %vm1516_vm8, %v7145_v24, 0.0  ;;  %v8176_v21 = vld [vmem:[#allocation69_spill] sm:$0xff] }
 0x73a   : > { %vm1538_vm10 = vcmp.eq.f32.partialorder %v8176_v21, %v7073_v47  ;;  %v1506_v15 = vadd.f32 %v1504_v40, %v1480_v38  ;;  %v8190_v40 = vld [vmem:[#allocation94_spill] sm:$0xff]  ;;  %v8193_v21 = vld [vmem:[#allocation148_spill] sm:$0xff] }
 0x73b   : > { %v3382_v50 = vadd.f32 %v3380_v45, %v3360_v28  ;;  %v1548_v28 = vsel %vm1538_vm10, %v7157_v23, 0.0  ;;  %v8179_v45 = vld [vmem:[#allocation71_spill] sm:$0xff]  ;;  %vm2602_vm10 = vcmp.eq.f32.partialorder %v8193_v21, %v7073_v47  ;;  %v8211_v21 = vld [vmem:[#allocation114_spill] sm:$0xff] }
 0x73c   : > { %v1519_v46 = vpop.permute.xlu1 %1518  ;;  %vm1560_vm13 = vcmp.eq.f32.partialorder %v8179_v45, %v7073_v47  ;;  %v1528_v24 = vadd.f32 %v1526_v25, %v1506_v15  ;;  %v8194_v15 = vld [vmem:[#allocation108_spill] sm:$0xff] }
 0x73d   : > { %4618 = vmatprep.mubr.msk.f32.mxu1 %vm1116_vm1, %v3382_v50  ;;  %v1525_v11 = vsel %vm1515_vm6, %v1519_v46, 0.0  ;;  %v1547_v50 = vsel %vm1537_vm11, %v1541_v52, 0.0  ;;  %v1570_v46 = vsel %vm1560_vm13, %v7183_v29, 0.0  ;;  %vm2580_vm6 = vcmp.eq.f32.partialorder %v8190_v40, %v7073_v47 }
 0x73e   : > { %4619 = vmatmul.mubr.msk.f32.vlgmr.msra.gmra.mxu1 %vm1116_vm1, %v3383_v16  ;;  %v1550_v23 = vadd.f32 %v1548_v28, %v1528_v24  ;;  %vm2625_vm11 = vcmp.eq.f32.partialorder %v8194_v15, %v7073_v47 }
 0x73f   : > { %4622 = vmatpush3.msra.mxu1 %v8152_v13  ;;  %v8168_v13 = vld [vmem:[#allocation85_spill] sm:$0xff]  ;;  %v2635_v34 = vsel %vm2625_vm11, %v7217_v3, 0.0  ;;  %vm2065_vm11 = vcmp.eq.f32.partialorder %v8208_v58, %v7073_v47 }
 0x740   : > { %4623 = vmatprep.subr.mxu1 %v8161_v20  ;;  %vm1465_vm0 = vcmp.eq.f32.partialorder %v8168_v13, %v7073_v47  ;;  %v1572_v37 = vadd.f32 %v1570_v46, %v1550_v23 }
 0x741   : > { %4624 = vmatpush3.msra.mxu1 %v8161_v20  ;;  %v7456_v41 = vpop.permute.xlu1 %2539  ;;  %v1477_v9 = vsel %vm1465_vm0, %v1470_v32, 0.0  ;;  %v7491_v32 = vpop.permute.xlu0 %2851  ;;  %vm1581_vm0 = vcmp.eq.f32.partialorder %v8182_v2, %v7073_v47 }
 0x742   : > { %4625 = vmatprep.subr.mxu1 %v8162_v59  ;;  %v1479_v55 = vadd.f32 %v1477_v9, %v1453_v6 }
 0x743   : > { %4626 = vmatpush3.msra.mxu1 %v8162_v59  ;;  %v8180_v59 = vld [vmem:[#allocation95_spill] sm:$0xff] }
 0x744   : > { %4627 = vmatprep.subr.mxu1 %v8163_v57  ;;  %v1505_v8 = vadd.f32 %v1503_v7, %v1479_v55  ;;  %vm1582_vm14 = vcmp.eq.f32.partialorder %v8180_v59, %v7073_v47  ;;  %v8186_v55 = vld [vmem:[#allocation116_spill] sm:$0xff]  ;;  %v8196_v59 = vld [vmem:[#allocation138_spill] sm:$0xff] }
 0x745   : > { %4628 = vmatpush3.msra.mxu1 %v8163_v57  ;;  %v7509_v54 = vpop.permute.xlu0 %2895  ;;  %v1592_v57 = vsel %vm1582_vm14, %v7189_v10, 0.0  ;;  %v2480_v10 = vsel %vm2470_vm2, %v7430_v51, 0.0  ;;  %vm2870_vm13 = vcmp.eq.f32.partialorder %v8196_v59, %v7073_v47  ;;  %v3635_v59 = vld [vmem:[#allocation12 + $0x60] sm:$0xff] }
 0x746   : > { %4629 = vmatprep.subr.mxu1 %v8164_v17  ;;  %v7463_v19 = vpop.permute.xlu1 %2873  ;;  %v1527_v22 = vadd.f32 %v1525_v11, %v1505_v8 }
 0x747   : > { %4630 = vmatpush3.msra.mxu1 %v8164_v17  ;;  %v8181_v17 = vld [vmem:[#allocation87_spill] sm:$0xff]  ;;  %v2880_v23 = vsel %vm2870_vm13, %v7463_v19, 0.0  ;;  %v8199_v19 = vld [vmem:[#allocation70_spill] sm:$0xff] }
 0x748   : > { %4631 = vmatprep.subr.mxu1 %v8165_v5  ;;  %v1549_v20 = vadd.f32 %v1547_v50, %v1527_v22  ;;  %vm2492_vm15 = vcmp.eq.f32.partialorder %v8181_v17, %v7073_v47  ;;  %v8192_v22 = vld [vmem:[#allocation103_spill] sm:$0xff] }
 0x749   : > { %4632 = vmatpush3.msra.mxu1 %v8165_v5  ;;  %v2502_v52 = vsel %vm2492_vm15, %v7436_v48, 0.0  ;;  %v2584_v29 = vpop.permute.xlu0 %2583  ;;  %v8185_v48 = vld [vmem:[#allocation100_spill] sm:$0xff]  ;;  %vm2603_vm8 = vcmp.eq.f32.partialorder %v8192_v22, %v7073_v47  ;;  %v8210_v22 = vld [vmem:[#allocation155_spill] sm:$0xff] }
 0x74a   : > { %v2504_v6 = vadd.f32 %v2502_v52, %v2480_v10  ;;  %vm2536_vm4 = vcmp.eq.f32.partialorder %v8185_v48, %v7073_v47  ;;  %v2590_v8 = vsel %vm2580_vm6, %v2584_v29, 0.0  ;;  %v8201_v52 = vld [vmem:[#allocation140_spill] sm:$0xff]  ;;  %v8202_v29 = vld [vmem:[#allocation147_spill] sm:$0xff]  ;;  %v8204_v48 = vld [vmem:[#allocation101_spill] sm:$0xff]  ;;  %vm2087_vm13 = vcmp.eq.f32.partialorder %v8210_v22, %v7073_v47 }
 0x74b   : > { %v7468_v30 = vpop.permute.xlu1 %1958  ;;  %v2546_v27 = vsel %vm2536_vm4, %v7456_v41, 0.0  ;;  %v8191_v41 = vld [vmem:[#allocation72_spill] sm:$0xff]  ;;  %vm2892_vm3 = vcmp.eq.f32.partialorder %v8201_v52, %v7073_v47  ;;  %vm2914_vm4 = vcmp.eq.f32.partialorder %v8202_v29, %v7073_v47  ;;  %vm2936_vm6 = vcmp.eq.f32.partialorder %v8204_v48, %v7073_v47 }
 0x74c   : > { %v2526_v62 = vadd.f32 %v2524_v4, %v2504_v6  ;;  %vm2581_vm7 = vcmp.eq.f32.partialorder %v8191_v41, %v7073_v47  ;;  %v8209_v41 = vld [vmem:[#allocation113_spill] sm:$0xff]  ;;  %v3629_v52 = vld [vmem:[#allocation12 + $0x30] sm:$0xff] }
 0x74d   : > { %v2606_v51 = vpop.permute.xlu0 %2605  ;;  %v2591_v38 = vsel %vm2581_vm7, %v7195_v1, 0.0  ;;  %v8195_v1 = vld [vmem:[#allocation106_spill] sm:$0xff] }
 0x74e   : > { %v2548_v39 = vadd.f32 %v2546_v27, %v2526_v62  ;;  %v2593_v28 = vadd.f32 %v2591_v38, %v7168_v18  ;;  %v2612_v12 = vsel %vm2602_vm10, %v2606_v51, 0.0  ;;  %v8197_v18 = vld [vmem:[#allocation68_spill] sm:$0xff]  ;;  %v8207_v62 = vld [vmem:[#allocation102_spill] sm:$0xff] }
 0x74f   : > { %v7470_v61 = vpop.permute.xlu1 %1980  ;;  %vm2848_vm14 = vcmp.eq.f32.partialorder %v8197_v18, %v7073_v47  ;;  %vm2043_vm10 = vcmp.eq.f32.partialorder %v8207_v62, %v7073_v47 }
 0x751   : > { %v2047_v26 = vpop.permute.xlu0 %2046 }
 0x754   : > { %v1563_v31 = vpop.permute.xlu1 %1562 }
 0x755   : > { %v1569_v16 = vsel %vm1559_vm12, %v1563_v31, 0.0  ;;  %v1594_v31 = vadd.f32 %v1592_v57, %v1572_v37  ;;  %v2091_v45 = vpop.permute.xlu0 %2090  ;;  %vm2624_vm12 = vcmp.eq.f32.partialorder %v8195_v1, %v7073_v47  ;;  %v2858_v57 = vsel %vm2848_vm14, %v7491_v32, 0.0  ;;  %v8200_v37 = vld [vmem:[#allocation93_spill] sm:$0xff] }
 0x756   : > { %v1571_v5 = vadd.f32 %v1569_v16, %v1549_v20  ;;  %v2882_v2 = vadd.f32 %v2880_v23, %v2858_v57  ;;  %vm1999_vm2 = vcmp.eq.f32.partialorder %v8200_v37, %v7073_v47  ;;  %vm2109_vm14 = vcmp.eq.f32.partialorder %v8211_v21, %v7073_v47  ;;  %v3630_v37 = vld [vmem:[#allocation12 + $0x38] sm:$0xff] }
 0x759   : > { %v2562_v35 = vpop.permute.xlu1 %2561  ;;  %v3017_v17 = vpop.permute.xlu0 %3016 }
 0x75a   : > { %v2568_v0 = vsel %vm2558_vm5, %v2562_v35, 0.0  ;;  %v2613_v35 = vsel %vm2603_vm8, %v7211_v14, 0.0 }
 0x75b   : > { %v2570_v11 = vadd.f32 %v2568_v0, %v2548_v39  ;;  %v2615_v16 = vadd.f32 %v2613_v35, %v2593_v28  ;;  %v2097_v35 = vsel %vm2087_vm13, %v2091_v45, 0.0 }
 0x75d   : > { %v2592_v25 = vadd.f32 %v2590_v8, %v2570_v11  ;;  %v2637_v20 = vadd.f32 %v2635_v34, %v2615_v16 }
 0x75e   : > { %v7504_v43 = vpop.permute.xlu1 %2002 }
 0x75f   : > { %v2614_v50 = vadd.f32 %v2612_v12, %v2592_v25 }
 0x763   : > { %v1585_v33 = vpop.permute.xlu1 %1584 }
 0x764   : > { %v1591_v13 = vsel %vm1581_vm0, %v1585_v33, 0.0  ;;  %vm1955_vm0 = vcmp.eq.f32.partialorder %v8199_v19, %v7073_v47  ;;  %v3631_v19 = vld [vmem:[#allocation12 + $0x40] sm:$0xff] }
 0x765   : > { %v1593_v9 = vadd.f32 %v1591_v13, %v1571_v5  ;;  %v8198_v5 = vld [vmem:[#allocation92_spill] sm:$0xff]  ;;  %v1965_v32 = vsel %vm1955_vm0, %v7468_v30, 0.0  ;;  %v2009_v13 = vsel %vm1999_vm2, %v7504_v43, 0.0  ;;  %v8205_v43 = vld [vmem:[#allocation107_spill] sm:$0xff]  ;;  %vm3609_vm0 = vcmask 1048320  }
 0x766   : > { %vm1977_vm15 = vcmp.eq.f32.partialorder %v8198_v5, %v7073_v47  ;;  %vm2958_vm7 = vcmp.eq.f32.partialorder %v8205_v43, %v7073_v47 }
 0x767   : > { %4559 = vmatprep.mubr.msk.f32.mxu0 %vm2380_vm9, %v1593_v9  ;;  %v1987_v33 = vsel %vm1977_vm15, %v7470_v61, 0.0  ;;  %v2902_v61 = vsel %vm2892_vm3, %v7509_v54, 0.0  ;;  %vm3576_vm15 = vcmask 261120  }
 0x768   : > { %v2918_v53 = vpop.permute.xlu1 %2917  ;;  %4560 = vmatmul.mubr.msk.f32.vlgmr.msra.gmra.mxu0 %vm2380_vm9, %v1594_v31  ;;  %v1989_v44 = vadd.f32 %v1987_v33, %v1965_v32  ;;  %v8203_v31 = vld [vmem:[#allocation104_spill] sm:$0xff]  ;;  %v2904_v6 = vadd.f32 %v2902_v61, %v2882_v2  ;;  %v3632_v33 = vld [vmem:[#allocation12 + $0x48] sm:$0xff] }
 0x769   : > { %4563 = vmatpush3.msra.mxu0 %v8186_v55  ;;  %v2924_v9 = vsel %vm2914_vm4, %v2918_v53, 0.0  ;;  %vm2021_vm5 = vcmp.eq.f32.partialorder %v8203_v31, %v7073_v47  ;;  %v8206_v53 = vld [vmem:[#allocation110_spill] sm:$0xff]  ;;  %v3633_v2 = vld [vmem:[#allocation12 + $0x50] sm:$0xff] }
 0x76a   : > { %4564 = vmatprep.subr.mxu0 %v8187_v60  ;;  %v2011_v55 = vadd.f32 %v2009_v13, %v1989_v44  ;;  %v2926_v4 = vadd.f32 %v2924_v9, %v2904_v6  ;;  %vm2980_vm8 = vcmp.eq.f32.partialorder %v8206_v53, %v7073_v47  ;;  %v3628_v13 = vld [vmem:[#allocation12 + $0x28] sm:$0xff]  ;;  %v3627_v44 = vld [vmem:[#allocation12 + $0x20] sm:$0xff]  ;;  %v3626_v6 = vld [vmem:[#allocation12 + $0x18] sm:$0xff] }
 0x76b   : > { %4565 = vmatpush3.msra.mxu0 %v8187_v60 }
 0x76c   : > { %4588 = vmatprep.subr.mxu0 %v8189_v42 }
 0x76d   : > { %v2025_v7 = vpop.permute.xlu1 %2024 }
 0x76e   : > { %v2031_v63 = vsel %vm2021_vm5, %v2025_v7, 0.0 }
 0x76f   : > { %v2033_v27 = vadd.f32 %v2031_v63, %v2011_v55  ;;  %v3625_v63 = vld [vmem:[#allocation12 + $0x10] sm:$0xff]  ;;  %v3624_v55 = vld [vmem:[#allocation12 + $0x8] sm:$0xff] }
 0x772   : > { %v2940_v36 = vpop.permute.xlu1 %2939 }
 0x773   : > { %v2946_v30 = vsel %vm2936_vm6, %v2940_v36, 0.0 }
 0x774   : > { %v2948_v54 = vadd.f32 %v2946_v30, %v2926_v4  ;;  %v3623_v30 = vld [vmem:[#allocation12] sm:$0xff] }
 0x777   : > { %v2628_v24 = vpop.permute.xlu1 %2627 }
 0x778   : > { %v2634_v46 = vsel %vm2624_vm12, %v2628_v24, 0.0  ;;  %vm3002_vm12 = vcmp.eq.f32.partialorder %v8209_v41, %v7073_v47 }
 0x779   : > { %v2636_v14 = vadd.f32 %v2634_v46, %v2614_v50  ;;  %v3638_v46 = vld [vmem:[#allocation12 + $0x78] sm:$0xff] }
 0x77b   : > { %4566 = vmatprep.mubr.msk.f32.mxu0 %vm1116_vm1, %v2636_v14  ;;  %v3637_v14 = vld [vmem:[#allocation12 + $0x70] sm:$0xff] }
 0x77c   : > { %v2962_v3 = vpop.permute.xlu1 %2961  ;;  %4567 = vmatmul.mubr.msk.f32.vlgmr.msra.gmra.mxu0 %vm1116_vm1, %v2637_v20  ;;  %v3636_v20 = vld [vmem:[#allocation12 + $0x68] sm:$0xff] }
 0x77d   : > { %4589 = vmatpush3.msra.mxu0 %v8189_v42  ;;  %v2968_v60 = vsel %vm2958_vm7, %v2962_v3, 0.0  ;;  %v2053_v42 = vsel %vm2043_vm10, %v2047_v26, 0.0 }
 0x77e   : > { %4590 = vmatprep.subr.mxu0 %v3017_v17  ;;  %v2970_v39 = vadd.f32 %v2968_v60, %v2948_v54  ;;  %v2055_v11 = vadd.f32 %v2053_v42, %v2033_v27 }
 0x77f   : > { %4591 = vmatpush3.msra.mxu0 %v3017_v17 }
 0x780   : > { %4640 = vmatprep.subr.mxu0 %v3638_v46 }
 0x781   : > { %v2069_v10 = vpop.permute.xlu1 %2068 }
 0x782   : > { %v2075_v7 = vsel %vm2065_vm11, %v2069_v10, 0.0 }
 0x783   : > { %v2077_v36 = vadd.f32 %v2075_v7, %v2055_v11  ;;  %v4274_v11 = vld [vmem:[%s8212_s28] ss:$0 sm:$0xff]  ;;  %s7642_s28 = scalar_lea.hbm %s8218_s21, %s4288_s18 }
 0x785   : > { %v2099_v15 = vadd.f32 %v2097_v35, %v2077_v36 }
 0x786   : > { %v2984_v51 = vpop.permute.xlu1 %2983 }
 0x787   : > { %v2990_v0 = vsel %vm2980_vm8, %v2984_v51, 0.0 }
 0x788   : > { %v2992_v40 = vadd.f32 %v2990_v0, %v2970_v39 }
 0x78a   : > { %v3006_v8 = vpop.permute.xlu1 %3005 }
 0x78b   : > { %v3012_v38 = vsel %vm3002_vm12, %v3006_v8, 0.0  ;;  %v5137_v8 = vld [vmem:[%s5880_s4] sm:$0xff] }
 0x78c   : > { %v3014_v25 = vadd.f32 %v3012_v38, %v2992_v40  ;;  %v5136_v40 = vld [vmem:[%s5880_s4 + $0x8] sm:$0xff]  ;;  %v3621_v36 = vadd.f32 %v5137_v8, %v4274_v11  ;;  %s4012_s4 = scalar_lea.sflag [#allocation5], %s5873_s15 }
 0x78d   : > { %v3622_v41 = vadd.f32 %v5136_v40, %v4274_v11  ;;  %v4276_v40 = vld [vmem:[%s8214_s7] ss:$0 sm:$0xff] }
 0x78e   : > { %4592 = vmatprep.mubr.msk.f32.mxu0 %vm1116_vm1, %v3014_v25 }
 0x78f   : > { %v2113_v26 = vpop.permute.xlu1 %2112  ;;  %4593 = vmatmul.mubr.msk.f32.vlgmr.msra.gmra.mxu0 %vm1116_vm1, %v7234_v56  ;;  %vm3587_vm1 = vcmask 523520  }
 0x790   : > { %v2119_v28 = vsel %vm2109_vm14, %v2113_v26, 0.0  ;;  %4641 = vmatpush3.msra.mxu0 %v3638_v46  ;;  %v3781_v46 = vld [vmem:[#allocation14 + $0x50] sm:$0xff] }
 0x791   : > { %v2121_v12 = vadd.f32 %v2119_v28, %v2099_v15  ;;  %4642 = vmatprep.subr.mxu0 %v3637_v14 }
 0x792   : > { %4643 = vmatpush3.msra.mxu0 %v3637_v14  ;;  %v3780_v14 = vld [vmem:[#allocation14 + $0x48] sm:$0xff] }
 0x793   : > { %v3474_v34 = vpop.permute.xlu1 %3473  ;;  %4637 = vmatprep.mubr.msk.f32.mxu1 %vm2380_vm9, %v2121_v12  ;;  %4644 = vmatprep.subr.mxu0 %v3636_v20 }
 0x794   : > { %4633 = vmatprep.subr.mxu1 %v3474_v34  ;;  %4645 = vmatpush3.msra.mxu0 %v3636_v20  ;;  %v3779_v20 = vld [vmem:[#allocation14 + $0x40] sm:$0xff] }
 0x795   : > { %4634 = vmatpush3.msra.mxu1 %v3474_v34  ;;  %4646 = vmatprep.subr.mxu0 %v3635_v59 }
 0x796   : > { %4647 = vmatpush3.msra.mxu0 %v3635_v59  ;;  %v3778_v59 = vld [vmem:[#allocation14 + $0x38] sm:$0xff] }
 0x797   : > { %v3472_v1 = vpop.permute.xlu1 %3471 }
 0x798   : > { %4635 = vmatprep.subr.mxu1 %v3472_v1 }
 0x799   : > { %4636 = vmatpush3.msra.mxu1 %v3472_v1 }
 0x79a   : > { %4638 = vmatmul.mubr.msk.f32.vlgmr.msra.gmra.mxu1 %vm2380_vm9, %v7239_v49  ;;  %v3634_v49 = vld [vmem:[#allocation12 + $0x58] sm:$0xff]  ;;  %vm3598_vm9 = vcmask 785920  }
 0x79b   : > { %4648 = vmatprep.subr.mxu0 %v3634_v49 }
 0x79c   : > { %4649 = vmatpush3.msra.mxu0 %v3634_v49  ;;  %v3776_v49 = vld [vmem:[#allocation14 + $0x28] sm:$0xff] }
 0x79d   : > { %4650 = vmatprep.subr.mxu0 %v3633_v2 }
 0x79e   : > { %4651 = vmatpush3.msra.mxu0 %v3633_v2  ;;  %v3879_v2 = vld [vmem:[#allocation15 + $0x78] sm:$0xff] }
 0x79f   : > { %4652 = vmatprep.subr.mxu0 %v3632_v33 }
 0x7a0   : > { %4653 = vmatpush3.msra.mxu0 %v3632_v33  ;;  %v3878_v33 = vld [vmem:[#allocation15 + $0x70] sm:$0xff] }
 0x7a1   : > { %4654 = vmatprep.subr.mxu0 %v3631_v19 }
 0x7a2   : > { %4655 = vmatpush3.msra.mxu0 %v3631_v19  ;;  %v3877_v19 = vld [vmem:[#allocation15 + $0x68] sm:$0xff] }
 0x7a3   : > { %4656 = vmatprep.subr.mxu0 %v3630_v37 }
 0x7a4   : > { %4657 = vmatpush3.msra.mxu0 %v3630_v37  ;;  %v3876_v37 = vld [vmem:[#allocation15 + $0x60] sm:$0xff] }
 0x7a5   : > { %4658 = vmatprep.subr.mxu0 %v3629_v52 }
 0x7a6   : > { %4659 = vmatpush3.msra.mxu0 %v3629_v52  ;;  %v3875_v52 = vld [vmem:[#allocation15 + $0x58] sm:$0xff] }
 0x7a7   : > { %4660 = vmatprep.subr.mxu0 %v3628_v13 }
 0x7a8   : > { %4661 = vmatpush3.msra.mxu0 %v3628_v13  ;;  %v3873_v13 = vld [vmem:[#allocation15 + $0x48] sm:$0xff] }
 0x7a9   : > { %4662 = vmatprep.subr.mxu0 %v3627_v44 }
 0x7aa   : > { %4663 = vmatpush3.msra.mxu0 %v3627_v44  ;;  %v3870_v44 = vld [vmem:[#allocation15 + $0x30] sm:$0xff] }
 0x7ab   : > { %4664 = vmatprep.subr.mxu0 %v3626_v6 }
 0x7ac   : > { %4665 = vmatpush3.msra.mxu0 %v3626_v6 }
 0x7ad   : > { %4666 = vmatprep.subr.mxu0 %v3625_v63 }
 0x7ae   : > { %v4542_v45 = vpop.f32.mrf.mxu1  ;;  %4667 = vmatpush3.msra.mxu0 %v3625_v63 }
 0x7af   : > { %4668 = vmatprep.subr.mxu0 %v3624_v55 }
 0x7b0   : > { %v2371_v50 = vpop.f32.mrf.mxu1  ;;  %4669 = vmatpush3.msra.mxu0 %v3624_v55 }
 0x7b1   : > { %4670 = vmatprep.subr.mxu0 %v3623_v30 }
 0x7b2   : > { %4671 = vmatpush3.msra.mxu0 %v3623_v30 }
 0x7b3   : > { %4710 = vmatprep.subr.mxu0 %v3879_v2 }
 0x7c4   : > { %v4587_v23 = vpop.f32.mrf.mxu1 }
 0x7c6   : > { %v2831_v57 = vpop.f32.mrf.mxu1 }
 0x7e6   : > { %v4613_v32 = vpop.f32.mrf.mxu1 }
 0x7e8   : > { %v3199_v9 = vpop.f32.mrf.mxu1 }
 0x7fe   : > { %v4620_v48 = vpop.f32.mrf.mxu1 }
 0x800   : > { %v3462_v4 = vpop.f32.mrf.mxu1 }
 0x828   : > { %v4561_v47 = vpop.f32.mrf.mxu0 }
 0x829   : > { %v2459_v24 = vadd.f32 %v4561_v47, %v4542_v45  ;;  %v3786_v47 = vld [vmem:[#allocation14 + $0x78] sm:$0xff] }
 0x82a   : > { %v2453_v16 = vpop.f32.mrf.mxu0  ;;  %4675 = vmatprep.subr.mxu1 %v3786_v47 }
 0x82b   : > { %3578 = vst.msk [vmem:[#allocation2 + $0x8] sm:$0xff] %vm3576_vm15, %v2459_v24  ;;  %v2454_v56 = vadd.f32 %v2453_v16, %v2371_v50  ;;  %4676 = vmatpush3.msra.mxu1 %v3786_v47  ;;  %v3785_v24 = vld [vmem:[#allocation14 + $0x70] sm:$0xff]  ;;  %v3784_v50 = vld [vmem:[#allocation14 + $0x68] sm:$0xff]  ;;  %v3783_v16 = vld [vmem:[#allocation14 + $0x60] sm:$0xff] }
 0x82c   : > { %4677 = vmatprep.subr.mxu1 %v3785_v24 }
 0x82d   : > { %3577 = vst.msk [vmem:[#allocation2] sm:$0xff] %vm3576_vm15, %v2454_v56  ;;  %4678 = vmatpush3.msra.mxu1 %v3785_v24  ;;  %v3782_v56 = vld [vmem:[#allocation14 + $0x58] sm:$0xff] }
 0x82e   : > { %4679 = vmatprep.subr.mxu1 %v3784_v50 }
 0x82f   : > { %4680 = vmatpush3.msra.mxu1 %v3784_v50 }
 0x830   : > { %4681 = vmatprep.subr.mxu1 %v3783_v16 }
 0x831   : > { %4682 = vmatpush3.msra.mxu1 %v3783_v16 }
 0x832   : > { %4683 = vmatprep.subr.mxu1 %v3782_v56 }
 0x833   : > { %4684 = vmatpush3.msra.mxu1 %v3782_v56 }
 0x834   : > { %4685 = vmatprep.subr.mxu1 %v3781_v46 }
 0x835   : > { %4686 = vmatpush3.msra.mxu1 %v3781_v46 }
 0x836   : > { %4687 = vmatprep.subr.mxu1 %v3780_v14 }
 0x837   : > { %4688 = vmatpush3.msra.mxu1 %v3780_v14 }
 0x838   : > { %4689 = vmatprep.subr.mxu1 %v3779_v20 }
 0x839   : > { %4690 = vmatpush3.msra.mxu1 %v3779_v20 }
 0x83a   : > { %4691 = vmatprep.subr.mxu1 %v3778_v59 }
 0x83b   : > { %4692 = vmatpush3.msra.mxu1 %v3778_v59 }
 0x83c   : > { %v4568_v18 = vpop.f32.mrf.mxu0 }
 0x83d   : > { %v2837_v3 = vadd.f32 %v4587_v23, %v4568_v18  ;;  %v3777_v23 = vld [vmem:[#allocation14 + $0x30] sm:$0xff]  ;;  %v3775_v18 = vld [vmem:[#allocation14 + $0x20] sm:$0xff] }
 0x83e   : > { %v2718_v17 = vpop.f32.mrf.mxu0  ;;  %4693 = vmatprep.subr.mxu1 %v3777_v23 }
 0x83f   : > { %v2832_v5 = vadd.f32 %v2831_v57, %v2718_v17  ;;  %3583 = vrot.lane.b32.xlu1 %v2837_v3, %s5455_s29  ;;  %4694 = vmatpush3.msra.mxu1 %v3777_v23  ;;  %v3774_v3 = vld [vmem:[#allocation14 + $0x18] sm:$0xff]  ;;  %v3773_v57 = vld [vmem:[#allocation14 + $0x10] sm:$0xff]  ;;  %v3772_v17 = vld [vmem:[#allocation14 + $0x8] sm:$0xff] }
 0x840   : > { %4695 = vmatprep.subr.mxu1 %v3776_v49 }
 0x841   : > { %3581 = vrot.lane.b32.xlu0 %v2832_v5, %s5455_s29  ;;  %4696 = vmatpush3.msra.mxu1 %v3776_v49  ;;  %v3771_v5 = vld [vmem:[#allocation14] sm:$0xff] }
 0x842   : > { %4697 = vmatprep.subr.mxu1 %v3775_v18 }
 0x843   : > { %4698 = vmatpush3.msra.mxu1 %v3775_v18 }
 0x844   : > { %4699 = vmatprep.subr.mxu1 %v3774_v3 }
 0x845   : > { %4700 = vmatpush3.msra.mxu1 %v3774_v3 }
 0x846   : > { %4701 = vmatprep.subr.mxu1 %v3773_v57 }
 0x847   : > { %4702 = vmatpush3.msra.mxu1 %v3773_v57 }
 0x848   : > { %4703 = vmatprep.subr.mxu1 %v3772_v17 }
 0x849   : > { %4704 = vmatpush3.msra.mxu1 %v3772_v17 }
 0x84a   : > { %4705 = vmatprep.subr.mxu1 %v3771_v5 }
 0x84b   : > { %4706 = vmatpush3.msra.mxu1 %v3771_v5 }
 0x84f   : > { %v4594_v29 = vpop.f32.mrf.mxu0 }
 0x850   : > { %v3205_v61 = vadd.f32 %v4613_v32, %v4594_v29  ;;  %v3874_v32 = vld [vmem:[#allocation15 + $0x50] sm:$0xff]  ;;  %v3872_v29 = vld [vmem:[#allocation15 + $0x40] sm:$0xff] }
 0x851   : > { %v3094_v31 = vpop.f32.mrf.mxu0 }
 0x852   : > { %v3200_v10 = vadd.f32 %v3199_v9, %v3094_v31  ;;  %3594 = vrot.lane.b32.xlu1 %v3205_v61, %s5453_s3  ;;  %v3871_v61 = vld [vmem:[#allocation15 + $0x38] sm:$0xff]  ;;  %v3869_v9 = vld [vmem:[#allocation15 + $0x28] sm:$0xff]  ;;  %v3868_v31 = vld [vmem:[#allocation15 + $0x20] sm:$0xff] }
 0x854   : > { %3592 = vrot.lane.b32.xlu0 %v3200_v10, %s5453_s3  ;;  %v3867_v10 = vld [vmem:[#allocation15 + $0x18] sm:$0xff] }
 0x85a   : > { %v4639_v43 = vpop.f32.mrf.mxu1 }
 0x85b   : > { %v3573_v27 = vadd.f32 %v4639_v43, %v4620_v48 }
 0x85c   : > { %v3567_v60 = vpop.f32.mrf.mxu1 }
 0x85d   : > { %v3568_v54 = vadd.f32 %v3567_v60, %v3462_v4  ;;  %3605 = vrot.lane.b32.xlu1 %v3573_v27, %s5451_s14 }
 0x85f   : > { %3603 = vrot.lane.b32.xlu0 %v3568_v54, %s5451_s14 }
 0x8b1   : > { %v3584_v53 = vpop.permute.xlu1 %3583 }
 0x8b2   : > { %3589 = vst.msk [vmem:[#allocation2 + $0x8] sm:$0xff] %vm3587_vm1, %v3584_v53 }
 0x8b3   : > { %v3582_v51 = vpop.permute.xlu0 %3581 }
 0x8b4   : > { %3588 = vst.msk [vmem:[#allocation2] sm:$0xff] %vm3587_vm1, %v3582_v51 }
 0x8c4   : > { %v3595_v62 = vpop.permute.xlu1 %3594 }
 0x8c5   : > { %3600 = vst.msk [vmem:[#allocation2 + $0x8] sm:$0xff] %vm3598_vm9, %v3595_v62 }
 0x8c6   : > { %v3593_v58 = vpop.permute.xlu0 %3592 }
 0x8c7   : > { %3599 = vst.msk [vmem:[#allocation2] sm:$0xff] %vm3598_vm9, %v3593_v58 }
 0x8cf   : > { %v3606_v0 = vpop.permute.xlu1 %3605 }
 0x8d0   : > { %3611 = vst.msk [vmem:[#allocation2 + $0x8] sm:$0xff] %vm3609_vm0, %v3606_v0 }
 0x8d1   : > { %v3604_v42 = vpop.permute.xlu0 %3603 }
 0x8d2   : > { %3610 = vst.msk [vmem:[#allocation2] sm:$0xff] %vm3609_vm0, %v3604_v42 }
 0x8d7   : > { %v3613_v7 = vld [vmem:[#allocation2 + $0x8] sm:$0xff] }
 0x8d9   : > { %v3612_v39 = vld [vmem:[#allocation2] sm:$0xff] }
 0x8da   : > { %4672 = vmatprep.mubr.f32.mxu0 %v3612_v39 }
 0x8db   : > { %4673 = vmatmul.mubr.f32.vlgmr.msra.gmra.mxu0 %v3613_v7  ;;  %v4275_v7 = vld [vmem:[%s8213_s19] ss:$0 sm:$0xff]  ;;  %s5360_s19 = scalar_lea.vmem %s5359_s30, 512 }
 0x8dc   : > { %4711 = vmatpush3.msra.mxu0 %v3879_v2  ;;  %p5362_p13 = scmp.lt.s32.totalorder %s5360_s19, %s5354_s11 }
 0x8dd   : > { %4712 = vmatprep.subr.mxu0 %v3878_v33 }
 0x8de   : > { %4713 = vmatpush3.msra.mxu0 %v3878_v33  ;;  %p5363_p0 = por %p5362_p13, %p5361_p2 }
 0x8df   : > { %4714 = vmatprep.subr.mxu0 %v3877_v19 }
 0x8e0   : > { %4715 = vmatpush3.msra.mxu0 %v3877_v19  ;;  %p5364_p9 = pnand %p5363_p0, %p5357_p7 }
 0x8e1   : > { %4716 = vmatprep.subr.mxu0 %v3876_v37 }
 0x8e2   : > { %4717 = vmatpush3.msra.mxu0 %v3876_v37 }
 0x8e3   : > { %4718 = vmatprep.subr.mxu0 %v3875_v52 }
 0x8e4   : > { %4719 = vmatpush3.msra.mxu0 %v3875_v52 }
 0x8e5   : > { %4720 = vmatprep.subr.mxu0 %v3874_v32 }
 0x8e6   : > { %4721 = vmatpush3.msra.mxu0 %v3874_v32 }
 0x8e7   : > { %4722 = vmatprep.subr.mxu0 %v3873_v13 }
 0x8e8   : > { %4723 = vmatpush3.msra.mxu0 %v3873_v13 }
 0x8e9   : > { %4724 = vmatprep.subr.mxu0 %v3872_v29 }
 0x8ea   : > { %4725 = vmatpush3.msra.mxu0 %v3872_v29 }
 0x8eb   : > { %4726 = vmatprep.subr.mxu0 %v3871_v61 }
 0x8ec   : > { %4727 = vmatpush3.msra.mxu0 %v3871_v61 }
 0x8ed   : > { %4728 = vmatprep.subr.mxu0 %v3870_v44 }
 0x8ee   : > { %4729 = vmatpush3.msra.mxu0 %v3870_v44 }
 0x8ef   : > { %4730 = vmatprep.subr.mxu0 %v3869_v9 }
 0x8f0   : > { %4731 = vmatpush3.msra.mxu0 %v3869_v9 }
 0x8f1   : > { %4732 = vmatprep.subr.mxu0 %v3868_v31 }
 0x8f2   : > { %4733 = vmatpush3.msra.mxu0 %v3868_v31  ;;  %v4277_v31 = vld [vmem:[%s8215_s20] ss:$0 sm:$0xff] }
 0x8f3   : > { %4734 = vmatprep.subr.mxu0 %v3867_v10 }
 0x8f4   : > { %4735 = vmatpush3.msra.mxu0 %v3867_v10 }
 0x99b   : > { %v4674_v38 = vpop.f32.mrf.mxu0 }
 0x99c   : > { %v3715_v25 = vadd.f32 %v4674_v38, %v3622_v41 }
 0x99d   : > { %v3705_v22 = vpop.f32.mrf.mxu0 }
 0x99e   : > { %v3714_v35 = vadd.f32 %v3705_v22, %v3621_v36  ;;  %3720 = vadd.xlane.f32.xlu1 %v3715_v25 }
 0x9a0   : > { %3718 = vadd.xlane.f32.xlu0 %v3714_v35 }
 0xa27   : > { %v3721_v21 = vpop.xlane.xlu1 %3720 }
 0xa28   : > { %v3724_v15 = vmul.f32 0.0078125, %v3721_v21  ;;  %v3865_v21 = vld [vmem:[#allocation15 + $0x8] sm:$0xff] }
 0xa29   : > { %v3719_v26 = vpop.xlane.xlu0 %3718 }
 0xa2a   : > { %v3723_v28 = vmul.f32 0.0078125, %v3719_v26  ;;  %v7617_v34 = vsub.f32 %v3715_v25, %v3724_v15  ;;  %v3864_v26 = vld [vmem:[#allocation15] sm:$0xff] }
 0xa2c   : > { %v7615_v12 = vsub.f32 %v3714_v35, %v3723_v28  ;;  %v3728_v45 = vmul.f32 %v7617_v34, %v7617_v34  ;;  %v3866_v35 = vld [vmem:[#allocation15 + $0x10] sm:$0xff] }
 0xa2d   : > { %4736 = vmatprep.subr.mxu0 %v3866_v35 }
 0xa2e   : > { %v3727_v1 = vmul.f32 %v7615_v12, %v7615_v12  ;;  %4737 = vmatpush3.msra.mxu0 %v3866_v35 }
 0xa2f   : > { %4738 = vmatprep.subr.mxu0 %v3865_v21 }
 0xa30   : > { %3729 = vadd.xlane.f32.xlu0 %v3727_v1  ;;  %4739 = vmatpush3.msra.mxu0 %v3865_v21 }
 0xa31   : > { %4740 = vmatprep.subr.mxu0 %v3864_v26 }
 0xa32   : > { %4741 = vmatpush3.msra.mxu0 %v3864_v26 }
 0xa34   : > { %3731 = vadd.xlane.f32.xlu0 %v3728_v45 }
 0xab9   : > { %v3730_v6 = vpop.xlane.xlu0 %3729 }
 0xaba   : > { %v3733_v63 = vmul.f32 0.0078125, %v3730_v6  ;;  %v4278_v6 = vld [vmem:[%s8216_s10] ss:$0 sm:$0xff] }
 0xabc   : > { %v3735_v48 = vadd.f32 1e-05, %v3733_v63 }
 0xabd   : > { %v3732_v55 = vpop.xlane.xlu0 %3731 }
 0xabe   : > { %5120 = vrsqrt.f32 %v3735_v48  ;;  %v3734_v30 = vmul.f32 0.0078125, %v3732_v55  ;;  %vm3739_vm2 = vcmp.eq.f32.partialorder %v3735_v48, inf  ;;  %v3742_v60 = vand.u32 2147483648, %v3735_v48 }
 0xabf   : > { %vm3741_vm3 = vcmp.eq.f32.partialorder %v3735_v48, 0.0 }
 0xac0   : > { %v3736_v4 = vadd.f32 1e-05, %v3734_v30 }
 0xac2   : > { %5122 = vrsqrt.f32 %v3736_v4  ;;  %vm3746_vm4 = vcmp.eq.f32.partialorder %v3736_v4, inf  ;;  %v3749_v58 = vand.u32 2147483648, %v3736_v4  ;;  %vm3748_vm5 = vcmp.eq.f32.partialorder %v3736_v4, 0.0 }
 0xacb   : > { %v5121_v43 = vpop.eup %5120 }
 0xacc   : > { %v3738_v27 = vmul.f32 %v5121_v43, %v3735_v48 }
 0xace   : > { %v3740_v54 = vsel %vm3739_vm2, %v3735_v48, %v3738_v27 }
 0xacf   : > { %v3743_v53 = vsel %vm3741_vm3, %v3742_v60, %v3740_v54  ;;  %v5123_v51 = vpop.eup %5122 }
 0xad0   : > { %5124 = vrcp.f32 %v3743_v53  ;;  %v3745_v62 = vmul.f32 %v5123_v51, %v3736_v4 }
 0xad2   : > { %v3747_v0 = vsel %vm3746_vm4, %v3736_v4, %v3745_v62 }
 0xad3   : > { %v3750_v42 = vsel %vm3748_vm5, %v3749_v58, %v3747_v0 }
 0xad4   : > { %5126 = vrcp.f32 %v3750_v42 }
 0xadd   : > { %v5125_v39 = vpop.eup %5124 }
 0xade   : > { %v3752_v11 = vmul.f32 %v5125_v39, %v7615_v12 }
 0xae0   : > { %v3761_v41 = vmul.f32 %v4275_v7, %v3752_v11 }
 0xae1   : > { %v5127_v8 = vpop.eup %5126 }
 0xae2   : > { %v3769_v36 = vadd.f32 %v4276_v40, %v3761_v41  ;;  %v3754_v38 = vmul.f32 %v5127_v8, %v7617_v34 }
 0xae4   : > { %4707 = vmatprep.mubr.f32.mxu1 %v3769_v36  ;;  %v3762_v25 = vmul.f32 %v4275_v7, %v3754_v38 }
 0xae6   : > { %v3770_v22 = vadd.f32 %v4276_v40, %v3762_v25 }
 0xae8   : > { %4708 = vmatmul.mubr.f32.vlgmr.msra.gmra.mxu1 %v3770_v22 }
 0xba8   : > { %v4709_v15 = vpop.f32.mrf.mxu1 }
 0xba9   : > { %v3863_v1 = vmax.f32 %v4709_v15, 0.0 }
 0xbaa   : > { %v3853_v28 = vpop.f32.mrf.mxu1 }
 0xbab   : > { %v3862_v12 = vmax.f32 %v3853_v28, 0.0 }
 0xbad   : > { %4742 = vmatprep.mubr.f32.mxu0 %v3862_v12 }
 0xbae   : > { %4743 = vmatmul.mubr.f32.vlgmr.msra.gmra.mxu0 %v3863_v1 }
 0xc6e   : > { %v4744_v34 = vpop.f32.mrf.mxu0 }
 0xc6f   : > { %v3952_v45 = vadd.f32 %v4744_v34, %v3770_v22 }
 0xc70   : > { %v3946_v47 = vpop.f32.mrf.mxu0 }
 0xc71   : > { %v3947_v24 = vadd.f32 %v3946_v47, %v3769_v36  ;;  %3959 = vadd.xlane.f32.xlu0 %v3952_v45 }
 0xc73   : > { %3957 = vadd.xlane.f32.xlu1 %v3947_v24 }
 0xcfa   : > { %v3960_v50 = vpop.xlane.xlu0 %3959 }
 0xcfb   : > { %v3962_v16 = vmul.f32 0.0078125, %v3960_v50 }
 0xcfc   : > { %v3958_v56 = vpop.xlane.xlu1 %3957 }
 0xcfd   : > { %v3964_v46 = vsub.f32 %v3952_v45, %v3962_v16  ;;  %v3961_v14 = vmul.f32 0.0078125, %v3958_v56 }
 0xcff   : > { %v3963_v20 = vsub.f32 %v3947_v24, %v3961_v14  ;;  %v3966_v59 = vmul.f32 %v3964_v46, %v3964_v46 }
 0xd01   : > { %3969 = vadd.xlane.f32.xlu0 %v3966_v59  ;;  %v3965_v23 = vmul.f32 %v3963_v20, %v3963_v20 }
 0xd03   : > { %3967 = vadd.xlane.f32.xlu1 %v3965_v23 }
 0xd8a   : > { %v3970_v49 = vpop.xlane.xlu0 %3969 }
 0xd8b   : > { %v3972_v18 = vmul.f32 0.0078125, %v3970_v49 }
 0xd8c   : > { %v3968_v3 = vpop.xlane.xlu1 %3967 }
 0xd8d   : > { %v3974_v57 = vadd.f32 1e-05, %v3972_v18  ;;  %v3971_v17 = vmul.f32 0.0078125, %v3968_v3 }
 0xd8f   : > { %5128 = vrsqrt.f32 %v3974_v57  ;;  %v3973_v5 = vadd.f32 1e-05, %v3971_v17  ;;  %vm3984_vm6 = vcmp.eq.f32.partialorder %v3974_v57, inf  ;;  %v3987_v19 = vand.u32 2147483648, %v3974_v57 }
 0xd90   : > { %vm3986_vm7 = vcmp.eq.f32.partialorder %v3974_v57, 0.0 }
 0xd91   : > { %5130 = vrsqrt.f32 %v3973_v5  ;;  %vm3977_vm8 = vcmp.eq.f32.partialorder %v3973_v5, inf  ;;  %v3980_v29 = vand.u32 2147483648, %v3973_v5  ;;  %vm3979_vm10 = vcmp.eq.f32.partialorder %v3973_v5, 0.0 }
 0xd9c   : > { %v5129_v2 = vpop.eup %5128 }
 0xd9d   : > { %v3983_v33 = vmul.f32 %v5129_v2, %v3974_v57 }
 0xd9e   : > { %v5131_v37 = vpop.eup %5130 }
 0xd9f   : > { %v3985_v52 = vsel %vm3984_vm6, %v3974_v57, %v3983_v33  ;;  %v3976_v13 = vmul.f32 %v5131_v37, %v3973_v5 }
 0xda0   : > { %v3988_v32 = vsel %vm3986_vm7, %v3987_v19, %v3985_v52 }
 0xda1   : > { %5132 = vrcp.f32 %v3988_v32  ;;  %v3978_v61 = vsel %vm3977_vm8, %v3973_v5, %v3976_v13 }
 0xda2   : > { %v3981_v44 = vsel %vm3979_vm10, %v3980_v29, %v3978_v61 }
 0xda3   : > { %5134 = vrcp.f32 %v3981_v44 }
 0xdae   : > { %v5133_v9 = vpop.eup %5132 }
 0xdaf   : > { %v3992_v10 = vmul.f32 %v5133_v9, %v3964_v46 }
 0xdb0   : > { %v5135_v63 = vpop.eup %5134 }
 0xdb1   : > { %v4000_v48 = vmul.f32 %v4277_v31, %v3992_v10  ;;  %v3990_v55 = vmul.f32 %v5135_v63, %v3963_v20 }
 0xdb3   : > { %v4008_v30 = vadd.f32 %v4278_v6, %v4000_v48  ;;  %v3999_v4 = vmul.f32 %v4277_v31, %v3990_v55 }
 0xdb5   : > { %4010 = vst [vmem:[%s837_s12 + $0x8] sm:$0xff] %v4008_v30  ;;  %v4007_v43 = vadd.f32 %v4278_v6, %v3999_v4 }
 0xdb7   : > { %4009 = vst [vmem:[%s837_s12] sm:$0xff] %v4007_v43 }
 0xdb8   : > { %5367 = shalt.err (!%p5364_p9)
}
 0xdb9   : > { %s5368_s0 = scalar_lea.hbm %s7642_s28, 256  ;;  %s5372_s27 = scalar_lea.hbm %s8218_s21, 512 }
 0xdba   : > { %p5369_p1 = scmp.ne.s32.totalorder %s7642_s28, %s5368_s0  ;;  %p5373_p11 = scmp.lt.s32.totalorder %s7642_s28, %s8218_s21 }
 0xdbb   : > { %p5374_p12 = scmp.lt.s32.totalorder %s5372_s27, %s5368_s0 }
 0xdbc   : > { %p5370_p6 = pnand %p5369_p1, %p8219_p5 }
 0xdbd   : > { %p5375_p4 = por %p5374_p12, %p5373_p11 }
 0xdbe   : > { %p5371_p8 = pneg %p5370_p6 }
 0xdc0   : > { %p5376_p10 = pnand %p5375_p4, %p5371_p8 }
 0xdc2   : > { %5379 = shalt.err (!%p5376_p10)
}
 0xdc3   : > { %s5488_s3 = smov 128   ;;  %s5489_s29 = smov 8  }
 0xdc4   : > { %4770 = dma.vmem_to_hbm [thread:$0]  (%p8219_p5), %s7644_s1, 256, %s7642_s28, %s4012_s4, %s5488_s3, %s5488_s3, %s5489_s29  }
 0xdc5 PF: > { %s8220_s10 = sld [smem:[#allocation25_spill]]  ;;  %p8223_p7 = scmp.ge.s32.totalorder %s5438_s24, 2 }
 0xdc6   : > { %s8221_s18 = sld [smem:[#allocation26_spill]] }
 0xdcb   : > { %s4040_s12 = sand.u32 1, %s8220_s10  }
 0xdcc   : > { %p8222_p3 = scmp.ne.s32.totalorder %s8221_s18, 0  ;;  %s4041_s25 = scalar_lea.sflag [#allocation5], %s4040_s12 }
 0xdce   : > { %p4799_p2 = pnand %p8223_p7, %p8222_p3 }
 0xdd0   : > { %p4800_p13 = pneg %p4799_p2 }
 0xdd2   : > { %5421 = dma.done.wait (%p4800_p13), %s4041_s25, 256  }
 0xdd3   : > { %5423 = vsyncadd (%p4800_p13), %s4041_s25, 4294967040  ;;  %s8224_s24 = sld [smem:[#allocation27_spill]]  ;;  %s8226_s1 = smov %s5430_s22 }
 0xdd4   : > { %s8225_s13 = sld [smem:[#allocation29_spill]]  ;;  %s8227_s22 = smov %s5434_s23 }
 0xdd9   : > { %p41_p0 = scmp.ge.s32.totalorder %s8224_s24, 4  }
 0xdda   : > { %s8228_s23 = smov %s8225_s13 }
 0xddb   :  { %43 = sbr.rel (!%p41_p0) target bundleno = 31 (0x1f), region = 201 }
 0xde0   :  { %4046 = vsyncpa [#allocation4], 1 }
 0xde1   :  { %4048 = vsyncpa [#allocation4 + $0x1], 1 }
 0xde2   :  { %4049 = vsyncpa [#allocation7], 1 }
 0xde3   :  { %4051 = vsyncpa [#allocation7 + $0x1], 1 }
 0xde4   :  { %4052 = vsyncpa [#allocation10], 1 }
 0xde5   :  { %4054 = vsyncpa [#allocation10 + $0x1], 1 }
 0xde6   :  { %4055 = vsyncpa [#allocation13], 1 }
 0xde7   :  { %4056 = vsyncpa [#allocation16], 1 }
 0xde8   :  { %4057 = vsyncpa [#allocation5], 1 }
 0xde9   :  { %4059 = vsyncpa [#allocation5 + $0x1], 1 }

</bundles_post_ra>
